<compile_context>
chip_gen: v7x
topology: tpu7x:2x2x1
jax: 0.10.0
libtpu: 0.0.40
codegen_flags: <defaults>
</compile_context>

<pallas_src>
import math
import jax
import jax.numpy as jnp
from jax.experimental import pallas as pl
from jax.experimental.pallas import tpu as pltpu

# --- model hyper-parameters (consistent with the module's __init__) ---------
EMBEDDING_DIM = 32
NUM_HEADS = 4
NUM_LAYERS = 2
VOCAB_SIZE = 64
D_MODEL = 2 * EMBEDDING_DIM          # d_model of the decoder
HEAD_DIM = D_MODEL // NUM_HEADS
DIM_FF = 2048                        # nn.TransformerDecoderLayer default
FF_CHUNK = 512                       # FFN hidden-dim chunk (4 chunks)
LN_EPS = 1e-5
BATCH = 2
SEQ = 8
R = BATCH * SEQ                      # rows fed to every matmul

# rows of the packed per-layer vector slab (shape (16, D_MODEL)):
#  0..2  self  q/k/v bias     3  self  out-proj bias
#  4..6  cross q/k/v bias     7  cross out-proj bias
#  8/9   ln1 gamma/beta      10/11 ln2 gamma/beta     12/13 ln3 gamma/beta
#  14    ffn linear2 bias    15  (unused)


def _user_tower_kernel(item_ids_ref, cat_ids_ref, emb_tbl_ref,
                       s_in_w_ref, s_out_w_ref, c_in_w_ref, c_out_w_ref,
                       vecs_ref, ffn_w1_ref, ffn_b1_ref, ffn_w2_ref,
                       o_ref, x_sc, mem_sc):
    l = pl.program_id(0)
    D = D_MODEL
    scale = 1.0 / math.sqrt(HEAD_DIM)

    # --- step 0 only: embedding lookup + concat as one one-hot matmul -------
    @pl.when(l == 0)
    def _():
        ids_i = item_ids_ref[...]                       # (R, 1) int32
        ids_c = cat_ids_ref[...]                        # (R, 1) int32
        lane = jax.lax.broadcasted_iota(jnp.int32, (R, 2 * VOCAB_SIZE), 1)
        onehot = ((lane == ids_i).astype(jnp.bfloat16)
                  + (lane == ids_c + VOCAB_SIZE).astype(jnp.bfloat16))
        combined = jnp.dot(onehot, emb_tbl_ref[...],
                           preferred_element_type=jnp.float32)      # (R, D)
        x_sc[...] = combined
        mem_sc[...] = combined

    vs = vecs_ref[...]                                  # (16, D) packed vectors
    x = x_sc[...]                                       # (R, D) f32
    mem = mem_sc[...]                                   # (R, D) f32

    def layer_norm(z, g, b):
        mu = jnp.mean(z, axis=-1, keepdims=True)
        var = jnp.mean(jnp.square(z - mu), axis=-1, keepdims=True)
        return (z - mu) * jax.lax.rsqrt(var + LN_EPS) * g + b

    # lane index used to build per-head masks (VPU-only, no relayouts)
    d_idx = jax.lax.broadcasted_iota(jnp.int32, (1, 1, D), 2)

    def attention(q, k, v, w_out_bf, b_out):
        q3 = (q * scale).reshape(BATCH, SEQ, D)
        k3 = k.reshape(BATCH, SEQ, D)
        v3 = v.reshape(BATCH, SEQ, D)
        attn = jnp.zeros((BATCH, SEQ, D), jnp.float32)
        for h in range(NUM_HEADS):                      # static unroll (4 heads)
            mh = ((d_idx >= h * HEAD_DIM)
                  & (d_idx < (h + 1) * HEAD_DIM)).astype(jnp.float32)
            s = jnp.einsum('bqd,bkd->bqk', q3 * mh, k3,
                           preferred_element_type=jnp.float32)      # (B, S, S)
            s = s - jnp.max(s, axis=-1, keepdims=True)
            p = jnp.exp(s)
            p = p * pl.reciprocal(jnp.sum(p, axis=-1, keepdims=True),
                                  approx=True)
            # heads land in their own contiguous 16-lane groups of attn
            attn = attn + jnp.einsum('bqk,bkd->bqd', p, v3 * mh,
                                     preferred_element_type=jnp.float32)
        # single output projection over the already lane-contiguous heads
        return jnp.dot(attn.reshape(R, D).astype(jnp.bfloat16), w_out_bf,
                       preferred_element_type=jnp.float32) + b_out

    s_in = s_in_w_ref[...]                              # (D, 3D) bf16
    c_in = c_in_w_ref[...]                              # (D, 3D) bf16

    # fused self q/k/v projection + hoisted cross k/v projection of `mem`
    qkv = jnp.dot(x.astype(jnp.bfloat16), s_in,
                  preferred_element_type=jnp.float32)
    q_s = qkv[:, 0:D] + vs[0:1]
    k_s = qkv[:, D:2 * D] + vs[1:2]
    v_s = qkv[:, 2 * D:3 * D] + vs[2:3]
    kv_c = jnp.dot(mem.astype(jnp.bfloat16), c_in[:, D:3 * D],
                   preferred_element_type=jnp.float32)
    k_c = kv_c[:, 0:D] + vs[5:6]
    v_c = kv_c[:, D:2 * D] + vs[6:7]

    # self-attention block
    sa = attention(q_s, k_s, v_s, s_out_w_ref[...], vs[3:4])
    x = layer_norm(x + sa, vs[8:9], vs[9:10])

    # cross-attention block (memory == original combined embedding)
    q_c = jnp.dot(x.astype(jnp.bfloat16), c_in[:, 0:D],
                  preferred_element_type=jnp.float32) + vs[4:5]
    ca = attention(q_c, k_c, v_c, c_out_w_ref[...], vs[7:8])
    x = layer_norm(x + ca, vs[10:11], vs[11:12])

    # feed-forward block, chunked over the 2048 hidden dim (4 x 512)
    x_bf = x.astype(jnp.bfloat16)
    ff = jnp.zeros((R, D), jnp.float32)
    for c0 in range(0, DIM_FF, FF_CHUNK):               # static unroll (4)
        h1 = jnp.dot(x_bf, ffn_w1_ref[:, c0:c0 + FF_CHUNK],
                     preferred_element_type=jnp.float32)
        h1 = jnp.maximum(h1 + ffn_b1_ref[:, c0:c0 + FF_CHUNK], 0.0)
        ff = ff + jnp.dot(h1.astype(jnp.bfloat16),
                          ffn_w2_ref[c0:c0 + FF_CHUNK, :],
                          preferred_element_type=jnp.float32)
    ff = ff + vs[14:15]
    x = layer_norm(x + ff, vs[12:13], vs[13:14])

    x_sc[...] = x                                       # carry to next layer

    @pl.when(l == NUM_LAYERS - 1)
    def _():
        o_ref[...] = x.astype(o_ref.dtype)


def user_tower_forward(item_seq_item, item_seq_category, params):
    """Full forward pass as one layer-pipelined pallas_call; out (B,S,D_MODEL)."""
    B, S = item_seq_item.shape
    ids_i = item_seq_item.reshape(R, 1).astype(jnp.int32)
    ids_c = item_seq_category.reshape(R, 1).astype(jnp.int32)
    D, F = D_MODEL, DIM_FF

    in_specs = [
        pl.BlockSpec((R, 1), lambda l: (0, 0)),                  # item ids
        pl.BlockSpec((R, 1), lambda l: (0, 0)),                  # category ids
        pl.BlockSpec((2 * VOCAB_SIZE, D), lambda l: (0, 0)),     # stacked emb table
        pl.BlockSpec((None, D, 3 * D), lambda l: (l, 0, 0)),     # self in-proj
        pl.BlockSpec((None, D, D), lambda l: (l, 0, 0)),         # self out-proj
        pl.BlockSpec((None, D, 3 * D), lambda l: (l, 0, 0)),     # cross in-proj
        pl.BlockSpec((None, D, D), lambda l: (l, 0, 0)),         # cross out-proj
        pl.BlockSpec((None, 16, D), lambda l: (l, 0, 0)),        # packed vectors
        pl.BlockSpec((None, D, F), lambda l: (l, 0, 0)),         # ffn w1
        pl.BlockSpec((None, 1, F), lambda l: (l, 0, 0)),         # ffn b1
        pl.BlockSpec((None, F, D), lambda l: (l, 0, 0)),         # ffn w2
    ]

    # TODO(synk): at B*S >= a few hundred rows, add a ("parallel",) row axis to
    # engage v7x's second TensorCore; at R=16 it would just duplicate weight DMA.
    out = pl.pallas_call(
        _user_tower_kernel,
        out_shape=jax.ShapeDtypeStruct((R, D), jnp.float32),
        grid=(NUM_LAYERS,),
        in_specs=in_specs,
        out_specs=pl.BlockSpec((R, D), lambda l: (0, 0)),
        scratch_shapes=[pltpu.VMEM((R, D), jnp.float32),   # running x
                        pltpu.VMEM((R, D), jnp.float32)],  # decoder memory
        compiler_params=pltpu.CompilerParams(
            dimension_semantics=("arbitrary",)),
        cost_estimate=pl.CostEstimate(flops=17_000_000,
                                      transcendentals=2_048,
                                      bytes_accessed=1_400_000),
    )(ids_i, ids_c, params["emb_tbl"],
      params["self_in_w"], params["self_out_w"],
      params["cross_in_w"], params["cross_out_w"],
      params["vecs"], params["ffn_w1"], params["ffn_b1"], params["ffn_w2"])
    return out.reshape(B, S, D)


def init_params(key):
    """Deterministic synthetic initialization, packed for the fused kernel."""
    keys = jax.random.split(key, 2 + NUM_LAYERS)
    D, F, V = D_MODEL, DIM_FF, VOCAB_SIZE

    item_tbl = jax.random.normal(keys[0], (V, EMBEDDING_DIM), jnp.float32)
    cat_tbl = jax.random.normal(keys[1], (V, EMBEDDING_DIM), jnp.float32)
    # stacked table: row v -> [item_tbl[v], 0], row V+v -> [0, cat_tbl[v]]
    # so that onehot @ emb_tbl == concat([item_emb, cat_emb], -1)
    emb_tbl = jnp.zeros((2 * V, D), jnp.float32)
    emb_tbl = emb_tbl.at[:V, :EMBEDDING_DIM].set(item_tbl)
    emb_tbl = emb_tbl.at[V:, EMBEDDING_DIM:].set(cat_tbl)

    # NOTE: nn.TransformerDecoder deep-copies one layer's initial weights; here
    # each layer gets its own deterministic init, which does not change the
    # forward-pass semantics being implemented.
    s_in_w, s_out_w, c_in_w, c_out_w, vecs, w1s, b1s, w2s = ([] for _ in range(8))
    for l in range(NUM_LAYERS):
        k = jax.random.split(keys[2 + l], 6)
        s_in = jax.random.normal(k[0], (3 * D, D), jnp.float32) / math.sqrt(D)
        c_in = jax.random.normal(k[1], (3 * D, D), jnp.float32) / math.sqrt(D)
        s_out = jax.random.normal(k[2], (D, D), jnp.float32) / math.sqrt(D)
        c_out = jax.random.normal(k[3], (D, D), jnp.float32) / math.sqrt(D)
        w1 = jax.random.normal(k[4], (F, D), jnp.float32) / math.sqrt(D)
        w2 = jax.random.normal(k[5], (D, F), jnp.float32) / math.sqrt(F)
        # pre-transposed so the kernel computes x @ W (columns = [Wq|Wk|Wv]),
        # bf16 MXU operands everywhere (f32 accumulation in-kernel).
        s_in_w.append(s_in.T.astype(jnp.bfloat16))      # (D, 3D)
        c_in_w.append(c_in.T.astype(jnp.bfloat16))      # (D, 3D)
        s_out_w.append(s_out.T.astype(jnp.bfloat16))    # (D, D)
        c_out_w.append(c_out.T.astype(jnp.bfloat16))    # (D, D)
        v = jnp.zeros((16, D), jnp.float32)              # all biases zero
        v = v.at[8].set(1.0)                             # ln1 gamma
        v = v.at[10].set(1.0)                            # ln2 gamma
        v = v.at[12].set(1.0)                            # ln3 gamma
        vecs.append(v)
        w1s.append(w1.T.astype(jnp.bfloat16))            # (D, F) bf16
        b1s.append(jnp.zeros((1, F), jnp.float32))
        w2s.append(w2.T.astype(jnp.bfloat16))            # (F, D) bf16

    return {
        "emb_tbl": emb_tbl.astype(jnp.bfloat16),  # (2V, D) bf16
        "self_in_w": jnp.stack(s_in_w),           # (L, D, 3D) bf16
        "self_out_w": jnp.stack(s_out_w),         # (L, D, D)  bf16
        "cross_in_w": jnp.stack(c_in_w),          # (L, D, 3D) bf16
        "cross_out_w": jnp.stack(c_out_w),        # (L, D, D)  bf16
        "vecs": jnp.stack(vecs),                  # (L, 16, D) f32
        "ffn_w1": jnp.stack(w1s),                 # (L, D, F)  bf16
        "ffn_b1": jnp.stack(b1s),                 # (L, 1, F)  f32
        "ffn_w2": jnp.stack(w2s),                 # (L, F, D)  bf16
    }


if __name__ == "__main__":
    key = jax.random.PRNGKey(0)
    pkey, ikey, ckey = jax.random.split(key, 3)
    params = init_params(pkey)
    item_ids = jax.random.randint(ikey, (BATCH, SEQ), 0, VOCAB_SIZE, dtype=jnp.int32)
    cat_ids = jax.random.randint(ckey, (BATCH, SEQ), 0, VOCAB_SIZE, dtype=jnp.int32)

    fwd = jax.jit(user_tower_forward)
    out = jax.block_until_ready(fwd(item_ids, cat_ids, params))

    assert out.shape == (BATCH, SEQ, D_MODEL), out.shape
    assert bool(jnp.all(jnp.isfinite(out)))
    print("KERNEL_OK")
</pallas_src>

<mosaic_0001>
module attributes {stable_mosaic.version = 11 : i64} {
  func.func @_user_tower_kernel(%arg0: i32, %arg1: memref<16x1xi32, #tpu.memory_space<vmem>>, %arg2: memref<16x1xi32, #tpu.memory_space<vmem>>, %arg3: memref<128x64xbf16, #tpu.memory_space<vmem>>, %arg4: memref<1x64x192xbf16, #tpu.memory_space<vmem>>, %arg5: memref<1x64x64xbf16, #tpu.memory_space<vmem>>, %arg6: memref<1x64x192xbf16, #tpu.memory_space<vmem>>, %arg7: memref<1x64x64xbf16, #tpu.memory_space<vmem>>, %arg8: memref<1x16x64xf32, #tpu.memory_space<vmem>>, %arg9: memref<1x64x2048xbf16, #tpu.memory_space<vmem>>, %arg10: memref<1x1x2048xf32, #tpu.memory_space<vmem>>, %arg11: memref<1x2048x64xbf16, #tpu.memory_space<vmem>>, %arg12: memref<16x64xf32, #tpu.memory_space<vmem>>, %arg13: memref<16x64xf32, #tpu.memory_space<vmem>>, %arg14: memref<16x64xf32, #tpu.memory_space<vmem>>) attributes {dimension_semantics = [#tpu.dimension_semantics<arbitrary>], iteration_bounds = array<i64: 2>, scalar_prefetch = 0 : i64, scratch_operands = 2 : i64, tpu.core_type = #tpu.core_type<tc>, window_params = [{pipeline_mode = #tpu.pipeline_mode<synchronous>, transform_indices = @transform_0, window_bounds = array<i64: 16, 1>}, {pipeline_mode = #tpu.pipeline_mode<synchronous>, transform_indices = @transform_1, window_bounds = array<i64: 16, 1>}, {pipeline_mode = #tpu.pipeline_mode<synchronous>, transform_indices = @transform_2, window_bounds = array<i64: 128, 64>}, {transform_indices = @transform_3, window_bounds = array<i64: 1, 64, 192>}, {transform_indices = @transform_4, window_bounds = array<i64: 1, 64, 64>}, {transform_indices = @transform_5, window_bounds = array<i64: 1, 64, 192>}, {transform_indices = @transform_6, window_bounds = array<i64: 1, 64, 64>}, {transform_indices = @transform_7, window_bounds = array<i64: 1, 16, 64>}, {transform_indices = @transform_8, window_bounds = array<i64: 1, 64, 2048>}, {transform_indices = @transform_9, window_bounds = array<i64: 1, 1, 2048>}, {transform_indices = @transform_10, window_bounds = array<i64: 1, 2048, 64>}, {pipeline_mode = #tpu.pipeline_mode<synchronous>, transform_indices = @transform_11, window_bounds = array<i64: 16, 64>}]} {
    %c0_i32 = arith.constant 0 : i32
    %0 = arith.cmpi eq, %arg0, %c0_i32 : i32
    %1 = arith.extui %0 : i1 to i32
    %c0_i32_0 = arith.constant 0 : i32
    %2 = arith.cmpi ne, %1, %c0_i32_0 : i32
    scf.if %2 {
      %c0_135 = arith.constant 0 : index
      %c0_136 = arith.constant 0 : index
      %403 = vector.load %arg1[%c0_135, %c0_136] : memref<16x1xi32, #tpu.memory_space<vmem>>, vector<16x1xi32>
      %c0_137 = arith.constant 0 : index
      %c0_138 = arith.constant 0 : index
      %404 = vector.load %arg2[%c0_137, %c0_138] : memref<16x1xi32, #tpu.memory_space<vmem>>, vector<16x1xi32>
      %405 = tpu.iota {dimensions = array<i32: 1>} : vector<16x128xi32>
      %406 = vector.broadcast %403 : vector<16x1xi32> to vector<16x128xi32>
      %407 = arith.cmpi eq, %405, %406 : vector<16x128xi32>
      %408 = arith.extui %407 : vector<16x128xi1> to vector<16x128xi32>
      %409 = arith.sitofp %408 : vector<16x128xi32> to vector<16x128xf32>
      %410 = arith.truncf %409 : vector<16x128xf32> to vector<16x128xbf16>
      %c64_i32_139 = arith.constant 64 : i32
      %411 = vector.broadcast %c64_i32_139 : i32 to vector<16x1xi32>
      %412 = arith.addi %404, %411 : vector<16x1xi32>
      %413 = vector.broadcast %412 : vector<16x1xi32> to vector<16x128xi32>
      %414 = arith.cmpi eq, %405, %413 : vector<16x128xi32>
      %415 = arith.extui %414 : vector<16x128xi1> to vector<16x128xi32>
      %416 = arith.sitofp %415 : vector<16x128xi32> to vector<16x128xf32>
      %417 = arith.truncf %416 : vector<16x128xf32> to vector<16x128xbf16>
      %418 = arith.addf %410, %417 : vector<16x128xbf16>
      %c0_140 = arith.constant 0 : index
      %c0_141 = arith.constant 0 : index
      %419 = vector.load %arg3[%c0_140, %c0_141] : memref<128x64xbf16, #tpu.memory_space<vmem>>, vector<128x64xbf16>
      %cst_142 = arith.constant dense<0.000000e+00> : vector<16x64xf32>
      %420 = tpu.matmul %418, %419, %cst_142 {dimension_numbers = #tpu.dot_dimension_numbers<[1], [0], [0], [1], [0, 0, 1, 1], [], []>} : vector<16x128xbf16>, vector<128x64xbf16>, vector<16x64xf32> -> vector<16x64xf32>
      %c0_143 = arith.constant 0 : index
      %c0_144 = arith.constant 0 : index
      %421 = vector.load %arg13[%c0_143, %c0_144] : memref<16x64xf32, #tpu.memory_space<vmem>>, vector<16x64xf32>
      tpu.vector_store %arg13[%c0_143, %c0_144], %420 {strides = array<i32>} : memref<16x64xf32, #tpu.memory_space<vmem>>, vector<16x64xf32>,
      %c0_145 = arith.constant 0 : index
      %c0_146 = arith.constant 0 : index
      %422 = vector.load %arg14[%c0_145, %c0_146] : memref<16x64xf32, #tpu.memory_space<vmem>>, vector<16x64xf32>
      tpu.vector_store %arg14[%c0_145, %c0_146], %420 {strides = array<i32>} : memref<16x64xf32, #tpu.memory_space<vmem>>, vector<16x64xf32>,
    } else {
    }
    %c0 = arith.constant 0 : index
    %c0_1 = arith.constant 0 : index
    %c0_2 = arith.constant 0 : index
    %3 = vector.load %arg8[%c0, %c0_1, %c0_2] : memref<1x16x64xf32, #tpu.memory_space<vmem>>, vector<1x16x64xf32>
    %4 = vector.shape_cast %3 : vector<1x16x64xf32> to vector<16x64xf32>
    %c0_3 = arith.constant 0 : index
    %c0_4 = arith.constant 0 : index
    %5 = vector.load %arg13[%c0_3, %c0_4] : memref<16x64xf32, #tpu.memory_space<vmem>>, vector<16x64xf32>
    %c0_5 = arith.constant 0 : index
    %c0_6 = arith.constant 0 : index
    %6 = vector.load %arg14[%c0_5, %c0_6] : memref<16x64xf32, #tpu.memory_space<vmem>>, vector<16x64xf32>
    %7 = tpu.iota {dimensions = array<i32: 2>} : vector<1x1x64xi32>
    %c0_7 = arith.constant 0 : index
    %c0_8 = arith.constant 0 : index
    %c0_9 = arith.constant 0 : index
    %8 = vector.load %arg4[%c0_7, %c0_8, %c0_9] : memref<1x64x192xbf16, #tpu.memory_space<vmem>>, vector<1x64x192xbf16>
    %9 = vector.shape_cast %8 : vector<1x64x192xbf16> to vector<64x192xbf16>
    %c0_10 = arith.constant 0 : index
    %c0_11 = arith.constant 0 : index
    %c0_12 = arith.constant 0 : index
    %10 = vector.load %arg6[%c0_10, %c0_11, %c0_12] : memref<1x64x192xbf16, #tpu.memory_space<vmem>>, vector<1x64x192xbf16>
    %11 = vector.shape_cast %10 : vector<1x64x192xbf16> to vector<64x192xbf16>
    %12 = arith.truncf %5 : vector<16x64xf32> to vector<16x64xbf16>
    %cst = arith.constant dense<0.000000e+00> : vector<16x192xf32>
    %13 = tpu.matmul %12, %9, %cst {dimension_numbers = #tpu.dot_dimension_numbers<[1], [0], [0], [1], [0, 0, 1, 1], [], []>} : vector<16x64xbf16>, vector<64x192xbf16>, vector<16x192xf32> -> vector<16x192xf32>
    %14 = vector.extract_strided_slice %13 {offsets = [0, 0], sizes = [16, 64], strides = [1, 1]} : vector<16x192xf32> to vector<16x64xf32>
    %15 = vector.extract_strided_slice %4 {offsets = [0, 0], sizes = [1, 64], strides = [1, 1]} : vector<16x64xf32> to vector<1x64xf32>
    %16 = vector.broadcast %15 : vector<1x64xf32> to vector<16x64xf32>
    %17 = arith.addf %14, %16 : vector<16x64xf32>
    %18 = vector.extract_strided_slice %13 {offsets = [0, 64], sizes = [16, 64], strides = [1, 1]} : vector<16x192xf32> to vector<16x64xf32>
    %19 = vector.extract_strided_slice %4 {offsets = [1, 0], sizes = [1, 64], strides = [1, 1]} : vector<16x64xf32> to vector<1x64xf32>
    %20 = vector.broadcast %19 : vector<1x64xf32> to vector<16x64xf32>
    %21 = arith.addf %18, %20 : vector<16x64xf32>
    %22 = vector.extract_strided_slice %13 {offsets = [0, 128], sizes = [16, 64], strides = [1, 1]} : vector<16x192xf32> to vector<16x64xf32>
    %23 = vector.extract_strided_slice %4 {offsets = [2, 0], sizes = [1, 64], strides = [1, 1]} : vector<16x64xf32> to vector<1x64xf32>
    %24 = vector.broadcast %23 : vector<1x64xf32> to vector<16x64xf32>
    %25 = arith.addf %22, %24 : vector<16x64xf32>
    %26 = arith.truncf %6 : vector<16x64xf32> to vector<16x64xbf16>
    %27 = vector.extract_strided_slice %11 {offsets = [0, 64], sizes = [64, 128], strides = [1, 1]} : vector<64x192xbf16> to vector<64x128xbf16>
    %cst_13 = arith.constant dense<0.000000e+00> : vector<16x128xf32>
    %28 = tpu.matmul %26, %27, %cst_13 {dimension_numbers = #tpu.dot_dimension_numbers<[1], [0], [0], [1], [0, 0, 1, 1], [], []>} : vector<16x64xbf16>, vector<64x128xbf16>, vector<16x128xf32> -> vector<16x128xf32>
    %29 = vector.extract_strided_slice %28 {offsets = [0, 0], sizes = [16, 64], strides = [1, 1]} : vector<16x128xf32> to vector<16x64xf32>
    %30 = vector.extract_strided_slice %4 {offsets = [5, 0], sizes = [1, 64], strides = [1, 1]} : vector<16x64xf32> to vector<1x64xf32>
    %31 = vector.broadcast %30 : vector<1x64xf32> to vector<16x64xf32>
    %32 = arith.addf %29, %31 : vector<16x64xf32>
    %33 = vector.extract_strided_slice %28 {offsets = [0, 64], sizes = [16, 64], strides = [1, 1]} : vector<16x128xf32> to vector<16x64xf32>
    %34 = vector.extract_strided_slice %4 {offsets = [6, 0], sizes = [1, 64], strides = [1, 1]} : vector<16x64xf32> to vector<1x64xf32>
    %35 = vector.broadcast %34 : vector<1x64xf32> to vector<16x64xf32>
    %36 = arith.addf %33, %35 : vector<16x64xf32>
    %c0_14 = arith.constant 0 : index
    %c0_15 = arith.constant 0 : index
    %c0_16 = arith.constant 0 : index
    %37 = vector.load %arg5[%c0_14, %c0_15, %c0_16] : memref<1x64x64xbf16, #tpu.memory_space<vmem>>, vector<1x64x64xbf16>
    %38 = vector.shape_cast %37 : vector<1x64x64xbf16> to vector<64x64xbf16>
    %39 = vector.extract_strided_slice %4 {offsets = [3, 0], sizes = [1, 64], strides = [1, 1]} : vector<16x64xf32> to vector<1x64xf32>
    %cst_17 = arith.constant 2.500000e-01 : f32
    %40 = vector.broadcast %cst_17 : f32 to vector<16x64xf32>
    %41 = arith.mulf %17, %40 : vector<16x64xf32>
    %42 = vector.shape_cast %41 : vector<16x64xf32> to vector<2x8x64xf32>
    %43 = vector.shape_cast %21 : vector<16x64xf32> to vector<2x8x64xf32>
    %44 = vector.shape_cast %25 : vector<16x64xf32> to vector<2x8x64xf32>
    %cst_18 = arith.constant 0.000000e+00 : f32
    %45 = vector.broadcast %cst_18 : f32 to vector<2x8x64xf32>
    %c0_i32_19 = arith.constant 0 : i32
    %46 = vector.broadcast %c0_i32_19 : i32 to vector<1x1x64xi32>
    %47 = arith.cmpi sge, %7, %46 : vector<1x1x64xi32>
    %c16_i32 = arith.constant 16 : i32
    %48 = vector.broadcast %c16_i32 : i32 to vector<1x1x64xi32>
    %49 = arith.cmpi slt, %7, %48 : vector<1x1x64xi32>
    %50 = arith.andi %47, %49 : vector<1x1x64xi1>
    %51 = arith.extui %50 : vector<1x1x64xi1> to vector<1x1x64xi32>
    %52 = arith.sitofp %51 : vector<1x1x64xi32> to vector<1x1x64xf32>
    %53 = vector.broadcast %52 : vector<1x1x64xf32> to vector<2x8x64xf32>
    %54 = arith.mulf %42, %53 : vector<2x8x64xf32>
    "tpu.trace_start"() <{level = 10 : i32, message = "bqd,bkd->bqk"}> : () -> ()
    %cst_20 = arith.constant dense<0.000000e+00> : vector<2x8x8xf32>
    %55 = tpu.matmul %54, %43, %cst_20 {dimension_numbers = #tpu.dot_dimension_numbers<[2], [2], [1], [1], [0, 0, 0, 1, 1, 1], [0], [0]>} : vector<2x8x64xf32>, vector<2x8x64xf32>, vector<2x8x8xf32> -> vector<2x8x8xf32>
    "tpu.trace_stop"() : () -> ()
    %cst_21 = arith.constant dense<0xFF800000> : vector<2x8xf32>
    %56 = vector.multi_reduction <maximumf>, %55, %cst_21 [2] : vector<2x8x8xf32> to vector<2x8xf32>
    %57 = vector.shape_cast %56 : vector<2x8xf32> to vector<2x8x1xf32>
    %58 = vector.broadcast %57 : vector<2x8x1xf32> to vector<2x8x8xf32>
    %59 = arith.subf %55, %58 : vector<2x8x8xf32>
    %60 = math.exp %59 : vector<2x8x8xf32>
    %cst_22 = arith.constant dense<0.000000e+00> : vector<2x8xf32>
    %61 = vector.multi_reduction <add>, %60, %cst_22 [2] : vector<2x8x8xf32> to vector<2x8xf32>
    %62 = vector.shape_cast %61 : vector<2x8xf32> to vector<2x8x1xf32>
    %63 = tpu.reciprocal %62 {approx = true} : vector<2x8x1xf32> -> vector<2x8x1xf32>
    %64 = vector.broadcast %63 : vector<2x8x1xf32> to vector<2x8x8xf32>
    %65 = arith.mulf %60, %64 : vector<2x8x8xf32>
    %66 = vector.broadcast %52 : vector<1x1x64xf32> to vector<2x8x64xf32>
    %67 = arith.mulf %44, %66 : vector<2x8x64xf32>
    "tpu.trace_start"() <{level = 10 : i32, message = "bqk,bkd->bqd"}> : () -> ()
    %cst_23 = arith.constant dense<0.000000e+00> : vector<2x8x64xf32>
    %68 = tpu.matmul %65, %67, %cst_23 {dimension_numbers = #tpu.dot_dimension_numbers<[2], [1], [1], [2], [0, 0, 0, 1, 1, 2], [0], [0]>} : vector<2x8x8xf32>, vector<2x8x64xf32>, vector<2x8x64xf32> -> vector<2x8x64xf32>
    "tpu.trace_stop"() : () -> ()
    %69 = arith.addf %45, %68 : vector<2x8x64xf32>
    %c16_i32_24 = arith.constant 16 : i32
    %70 = vector.broadcast %c16_i32_24 : i32 to vector<1x1x64xi32>
    %71 = arith.cmpi sge, %7, %70 : vector<1x1x64xi32>
    %c32_i32 = arith.constant 32 : i32
    %72 = vector.broadcast %c32_i32 : i32 to vector<1x1x64xi32>
    %73 = arith.cmpi slt, %7, %72 : vector<1x1x64xi32>
    %74 = arith.andi %71, %73 : vector<1x1x64xi1>
    %75 = arith.extui %74 : vector<1x1x64xi1> to vector<1x1x64xi32>
    %76 = arith.sitofp %75 : vector<1x1x64xi32> to vector<1x1x64xf32>
    %77 = vector.broadcast %76 : vector<1x1x64xf32> to vector<2x8x64xf32>
    %78 = arith.mulf %42, %77 : vector<2x8x64xf32>
    "tpu.trace_start"() <{level = 10 : i32, message = "bqd,bkd->bqk"}> : () -> ()
    %cst_25 = arith.constant dense<0.000000e+00> : vector<2x8x8xf32>
    %79 = tpu.matmul %78, %43, %cst_25 {dimension_numbers = #tpu.dot_dimension_numbers<[2], [2], [1], [1], [0, 0, 0, 1, 1, 1], [0], [0]>} : vector<2x8x64xf32>, vector<2x8x64xf32>, vector<2x8x8xf32> -> vector<2x8x8xf32>
    "tpu.trace_stop"() : () -> ()
    %cst_26 = arith.constant dense<0xFF800000> : vector<2x8xf32>
    %80 = vector.multi_reduction <maximumf>, %79, %cst_26 [2] : vector<2x8x8xf32> to vector<2x8xf32>
    %81 = vector.shape_cast %80 : vector<2x8xf32> to vector<2x8x1xf32>
    %82 = vector.broadcast %81 : vector<2x8x1xf32> to vector<2x8x8xf32>
    %83 = arith.subf %79, %82 : vector<2x8x8xf32>
    %84 = math.exp %83 : vector<2x8x8xf32>
    %cst_27 = arith.constant dense<0.000000e+00> : vector<2x8xf32>
    %85 = vector.multi_reduction <add>, %84, %cst_27 [2] : vector<2x8x8xf32> to vector<2x8xf32>
    %86 = vector.shape_cast %85 : vector<2x8xf32> to vector<2x8x1xf32>
    %87 = tpu.reciprocal %86 {approx = true} : vector<2x8x1xf32> -> vector<2x8x1xf32>
    %88 = vector.broadcast %87 : vector<2x8x1xf32> to vector<2x8x8xf32>
    %89 = arith.mulf %84, %88 : vector<2x8x8xf32>
    %90 = vector.broadcast %76 : vector<1x1x64xf32> to vector<2x8x64xf32>
    %91 = arith.mulf %44, %90 : vector<2x8x64xf32>
    "tpu.trace_start"() <{level = 10 : i32, message = "bqk,bkd->bqd"}> : () -> ()
    %cst_28 = arith.constant dense<0.000000e+00> : vector<2x8x64xf32>
    %92 = tpu.matmul %89, %91, %cst_28 {dimension_numbers = #tpu.dot_dimension_numbers<[2], [1], [1], [2], [0, 0, 0, 1, 1, 2], [0], [0]>} : vector<2x8x8xf32>, vector<2x8x64xf32>, vector<2x8x64xf32> -> vector<2x8x64xf32>
    "tpu.trace_stop"() : () -> ()
    %93 = arith.addf %69, %92 : vector<2x8x64xf32>
    %c32_i32_29 = arith.constant 32 : i32
    %94 = vector.broadcast %c32_i32_29 : i32 to vector<1x1x64xi32>
    %95 = arith.cmpi sge, %7, %94 : vector<1x1x64xi32>
    %c48_i32 = arith.constant 48 : i32
    %96 = vector.broadcast %c48_i32 : i32 to vector<1x1x64xi32>
    %97 = arith.cmpi slt, %7, %96 : vector<1x1x64xi32>
    %98 = arith.andi %95, %97 : vector<1x1x64xi1>
    %99 = arith.extui %98 : vector<1x1x64xi1> to vector<1x1x64xi32>
    %100 = arith.sitofp %99 : vector<1x1x64xi32> to vector<1x1x64xf32>
    %101 = vector.broadcast %100 : vector<1x1x64xf32> to vector<2x8x64xf32>
    %102 = arith.mulf %42, %101 : vector<2x8x64xf32>
    "tpu.trace_start"() <{level = 10 : i32, message = "bqd,bkd->bqk"}> : () -> ()
    %cst_30 = arith.constant dense<0.000000e+00> : vector<2x8x8xf32>
    %103 = tpu.matmul %102, %43, %cst_30 {dimension_numbers = #tpu.dot_dimension_numbers<[2], [2], [1], [1], [0, 0, 0, 1, 1, 1], [0], [0]>} : vector<2x8x64xf32>, vector<2x8x64xf32>, vector<2x8x8xf32> -> vector<2x8x8xf32>
    "tpu.trace_stop"() : () -> ()
    %cst_31 = arith.constant dense<0xFF800000> : vector<2x8xf32>
    %104 = vector.multi_reduction <maximumf>, %103, %cst_31 [2] : vector<2x8x8xf32> to vector<2x8xf32>
    %105 = vector.shape_cast %104 : vector<2x8xf32> to vector<2x8x1xf32>
    %106 = vector.broadcast %105 : vector<2x8x1xf32> to vector<2x8x8xf32>
    %107 = arith.subf %103, %106 : vector<2x8x8xf32>
    %108 = math.exp %107 : vector<2x8x8xf32>
    %cst_32 = arith.constant dense<0.000000e+00> : vector<2x8xf32>
    %109 = vector.multi_reduction <add>, %108, %cst_32 [2] : vector<2x8x8xf32> to vector<2x8xf32>
    %110 = vector.shape_cast %109 : vector<2x8xf32> to vector<2x8x1xf32>
    %111 = tpu.reciprocal %110 {approx = true} : vector<2x8x1xf32> -> vector<2x8x1xf32>
    %112 = vector.broadcast %111 : vector<2x8x1xf32> to vector<2x8x8xf32>
    %113 = arith.mulf %108, %112 : vector<2x8x8xf32>
    %114 = vector.broadcast %100 : vector<1x1x64xf32> to vector<2x8x64xf32>
    %115 = arith.mulf %44, %114 : vector<2x8x64xf32>
    "tpu.trace_start"() <{level = 10 : i32, message = "bqk,bkd->bqd"}> : () -> ()
    %cst_33 = arith.constant dense<0.000000e+00> : vector<2x8x64xf32>
    %116 = tpu.matmul %113, %115, %cst_33 {dimension_numbers = #tpu.dot_dimension_numbers<[2], [1], [1], [2], [0, 0, 0, 1, 1, 2], [0], [0]>} : vector<2x8x8xf32>, vector<2x8x64xf32>, vector<2x8x64xf32> -> vector<2x8x64xf32>
    "tpu.trace_stop"() : () -> ()
    %117 = arith.addf %93, %116 : vector<2x8x64xf32>
    %c48_i32_34 = arith.constant 48 : i32
    %118 = vector.broadcast %c48_i32_34 : i32 to vector<1x1x64xi32>
    %119 = arith.cmpi sge, %7, %118 : vector<1x1x64xi32>
    %c64_i32 = arith.constant 64 : i32
    %120 = vector.broadcast %c64_i32 : i32 to vector<1x1x64xi32>
    %121 = arith.cmpi slt, %7, %120 : vector<1x1x64xi32>
    %122 = arith.andi %119, %121 : vector<1x1x64xi1>
    %123 = arith.extui %122 : vector<1x1x64xi1> to vector<1x1x64xi32>
    %124 = arith.sitofp %123 : vector<1x1x64xi32> to vector<1x1x64xf32>
    %125 = vector.broadcast %124 : vector<1x1x64xf32> to vector<2x8x64xf32>
    %126 = arith.mulf %42, %125 : vector<2x8x64xf32>
    "tpu.trace_start"() <{level = 10 : i32, message = "bqd,bkd->bqk"}> : () -> ()
    %cst_35 = arith.constant dense<0.000000e+00> : vector<2x8x8xf32>
    %127 = tpu.matmul %126, %43, %cst_35 {dimension_numbers = #tpu.dot_dimension_numbers<[2], [2], [1], [1], [0, 0, 0, 1, 1, 1], [0], [0]>} : vector<2x8x64xf32>, vector<2x8x64xf32>, vector<2x8x8xf32> -> vector<2x8x8xf32>
    "tpu.trace_stop"() : () -> ()
    %cst_36 = arith.constant dense<0xFF800000> : vector<2x8xf32>
    %128 = vector.multi_reduction <maximumf>, %127, %cst_36 [2] : vector<2x8x8xf32> to vector<2x8xf32>
    %129 = vector.shape_cast %128 : vector<2x8xf32> to vector<2x8x1xf32>
    %130 = vector.broadcast %129 : vector<2x8x1xf32> to vector<2x8x8xf32>
    %131 = arith.subf %127, %130 : vector<2x8x8xf32>
    %132 = math.exp %131 : vector<2x8x8xf32>
    %cst_37 = arith.constant dense<0.000000e+00> : vector<2x8xf32>
    %133 = vector.multi_reduction <add>, %132, %cst_37 [2] : vector<2x8x8xf32> to vector<2x8xf32>
    %134 = vector.shape_cast %133 : vector<2x8xf32> to vector<2x8x1xf32>
    %135 = tpu.reciprocal %134 {approx = true} : vector<2x8x1xf32> -> vector<2x8x1xf32>
    %136 = vector.broadcast %135 : vector<2x8x1xf32> to vector<2x8x8xf32>
    %137 = arith.mulf %132, %136 : vector<2x8x8xf32>
    %138 = vector.broadcast %124 : vector<1x1x64xf32> to vector<2x8x64xf32>
    %139 = arith.mulf %44, %138 : vector<2x8x64xf32>
    "tpu.trace_start"() <{level = 10 : i32, message = "bqk,bkd->bqd"}> : () -> ()
    %cst_38 = arith.constant dense<0.000000e+00> : vector<2x8x64xf32>
    %140 = tpu.matmul %137, %139, %cst_38 {dimension_numbers = #tpu.dot_dimension_numbers<[2], [1], [1], [2], [0, 0, 0, 1, 1, 2], [0], [0]>} : vector<2x8x8xf32>, vector<2x8x64xf32>, vector<2x8x64xf32> -> vector<2x8x64xf32>
    "tpu.trace_stop"() : () -> ()
    %141 = arith.addf %117, %140 : vector<2x8x64xf32>
    %142 = vector.shape_cast %141 : vector<2x8x64xf32> to vector<16x64xf32>
    %143 = arith.truncf %142 : vector<16x64xf32> to vector<16x64xbf16>
    %cst_39 = arith.constant dense<0.000000e+00> : vector<16x64xf32>
    %144 = tpu.matmul %143, %38, %cst_39 {dimension_numbers = #tpu.dot_dimension_numbers<[1], [0], [0], [1], [0, 0, 1, 1], [], []>} : vector<16x64xbf16>, vector<64x64xbf16>, vector<16x64xf32> -> vector<16x64xf32>
    %145 = vector.broadcast %39 : vector<1x64xf32> to vector<16x64xf32>
    %146 = arith.addf %144, %145 : vector<16x64xf32>
    %147 = arith.addf %5, %146 : vector<16x64xf32>
    %148 = vector.extract_strided_slice %4 {offsets = [8, 0], sizes = [1, 64], strides = [1, 1]} : vector<16x64xf32> to vector<1x64xf32>
    %149 = vector.extract_strided_slice %4 {offsets = [9, 0], sizes = [1, 64], strides = [1, 1]} : vector<16x64xf32> to vector<1x64xf32>
    %cst_40 = arith.constant dense<0.000000e+00> : vector<16xf32>
    %150 = vector.multi_reduction <add>, %147, %cst_40 [1] : vector<16x64xf32> to vector<16xf32>
    %151 = vector.shape_cast %150 : vector<16xf32> to vector<16x1xf32>
    %cst_41 = arith.constant 6.400000e+01 : f32
    %152 = vector.broadcast %cst_41 : f32 to vector<16x1xf32>
    %153 = arith.divf %151, %152 : vector<16x1xf32>
    %154 = vector.broadcast %153 : vector<16x1xf32> to vector<16x64xf32>
    %155 = arith.subf %147, %154 : vector<16x64xf32>
    %156 = arith.mulf %155, %155 : vector<16x64xf32>
    %cst_42 = arith.constant dense<0.000000e+00> : vector<16xf32>
    %157 = vector.multi_reduction <add>, %156, %cst_42 [1] : vector<16x64xf32> to vector<16xf32>
    %158 = vector.shape_cast %157 : vector<16xf32> to vector<16x1xf32>
    %cst_43 = arith.constant 6.400000e+01 : f32
    %159 = vector.broadcast %cst_43 : f32 to vector<16x1xf32>
    %160 = arith.divf %158, %159 : vector<16x1xf32>
    %161 = vector.broadcast %153 : vector<16x1xf32> to vector<16x64xf32>
    %162 = arith.subf %147, %161 : vector<16x64xf32>
    %cst_44 = arith.constant 9.99999974E-6 : f32
    %163 = vector.broadcast %cst_44 : f32 to vector<16x1xf32>
    %164 = arith.addf %160, %163 : vector<16x1xf32>
    %165 = math.rsqrt %164 : vector<16x1xf32>
    %166 = vector.broadcast %165 : vector<16x1xf32> to vector<16x64xf32>
    %167 = arith.mulf %162, %166 : vector<16x64xf32>
    %168 = vector.broadcast %148 : vector<1x64xf32> to vector<16x64xf32>
    %169 = arith.mulf %167, %168 : vector<16x64xf32>
    %170 = vector.broadcast %149 : vector<1x64xf32> to vector<16x64xf32>
    %171 = arith.addf %169, %170 : vector<16x64xf32>
    %172 = arith.truncf %171 : vector<16x64xf32> to vector<16x64xbf16>
    %173 = vector.extract_strided_slice %11 {offsets = [0, 0], sizes = [64, 64], strides = [1, 1]} : vector<64x192xbf16> to vector<64x64xbf16>
    %cst_45 = arith.constant dense<0.000000e+00> : vector<16x64xf32>
    %174 = tpu.matmul %172, %173, %cst_45 {dimension_numbers = #tpu.dot_dimension_numbers<[1], [0], [0], [1], [0, 0, 1, 1], [], []>} : vector<16x64xbf16>, vector<64x64xbf16>, vector<16x64xf32> -> vector<16x64xf32>
    %175 = vector.extract_strided_slice %4 {offsets = [4, 0], sizes = [1, 64], strides = [1, 1]} : vector<16x64xf32> to vector<1x64xf32>
    %176 = vector.broadcast %175 : vector<1x64xf32> to vector<16x64xf32>
    %177 = arith.addf %174, %176 : vector<16x64xf32>
    %c0_46 = arith.constant 0 : index
    %c0_47 = arith.constant 0 : index
    %c0_48 = arith.constant 0 : index
    %178 = vector.load %arg7[%c0_46, %c0_47, %c0_48] : memref<1x64x64xbf16, #tpu.memory_space<vmem>>, vector<1x64x64xbf16>
    %179 = vector.shape_cast %178 : vector<1x64x64xbf16> to vector<64x64xbf16>
    %180 = vector.extract_strided_slice %4 {offsets = [7, 0], sizes = [1, 64], strides = [1, 1]} : vector<16x64xf32> to vector<1x64xf32>
    %cst_49 = arith.constant 2.500000e-01 : f32
    %181 = vector.broadcast %cst_49 : f32 to vector<16x64xf32>
    %182 = arith.mulf %177, %181 : vector<16x64xf32>
    %183 = vector.shape_cast %182 : vector<16x64xf32> to vector<2x8x64xf32>
    %184 = vector.shape_cast %32 : vector<16x64xf32> to vector<2x8x64xf32>
    %185 = vector.shape_cast %36 : vector<16x64xf32> to vector<2x8x64xf32>
    %cst_50 = arith.constant 0.000000e+00 : f32
    %186 = vector.broadcast %cst_50 : f32 to vector<2x8x64xf32>
    %c0_i32_51 = arith.constant 0 : i32
    %187 = vector.broadcast %c0_i32_51 : i32 to vector<1x1x64xi32>
    %188 = arith.cmpi sge, %7, %187 : vector<1x1x64xi32>
    %c16_i32_52 = arith.constant 16 : i32
    %189 = vector.broadcast %c16_i32_52 : i32 to vector<1x1x64xi32>
    %190 = arith.cmpi slt, %7, %189 : vector<1x1x64xi32>
    %191 = arith.andi %188, %190 : vector<1x1x64xi1>
    %192 = arith.extui %191 : vector<1x1x64xi1> to vector<1x1x64xi32>
    %193 = arith.sitofp %192 : vector<1x1x64xi32> to vector<1x1x64xf32>
    %194 = vector.broadcast %193 : vector<1x1x64xf32> to vector<2x8x64xf32>
    %195 = arith.mulf %183, %194 : vector<2x8x64xf32>
    "tpu.trace_start"() <{level = 10 : i32, message = "bqd,bkd->bqk"}> : () -> ()
    %cst_53 = arith.constant dense<0.000000e+00> : vector<2x8x8xf32>
    %196 = tpu.matmul %195, %184, %cst_53 {dimension_numbers = #tpu.dot_dimension_numbers<[2], [2], [1], [1], [0, 0, 0, 1, 1, 1], [0], [0]>} : vector<2x8x64xf32>, vector<2x8x64xf32>, vector<2x8x8xf32> -> vector<2x8x8xf32>
    "tpu.trace_stop"() : () -> ()
    %cst_54 = arith.constant dense<0xFF800000> : vector<2x8xf32>
    %197 = vector.multi_reduction <maximumf>, %196, %cst_54 [2] : vector<2x8x8xf32> to vector<2x8xf32>
    %198 = vector.shape_cast %197 : vector<2x8xf32> to vector<2x8x1xf32>
    %199 = vector.broadcast %198 : vector<2x8x1xf32> to vector<2x8x8xf32>
    %200 = arith.subf %196, %199 : vector<2x8x8xf32>
    %201 = math.exp %200 : vector<2x8x8xf32>
    %cst_55 = arith.constant dense<0.000000e+00> : vector<2x8xf32>
    %202 = vector.multi_reduction <add>, %201, %cst_55 [2] : vector<2x8x8xf32> to vector<2x8xf32>
    %203 = vector.shape_cast %202 : vector<2x8xf32> to vector<2x8x1xf32>
    %204 = tpu.reciprocal %203 {approx = true} : vector<2x8x1xf32> -> vector<2x8x1xf32>
    %205 = vector.broadcast %204 : vector<2x8x1xf32> to vector<2x8x8xf32>
    %206 = arith.mulf %201, %205 : vector<2x8x8xf32>
    %207 = vector.broadcast %193 : vector<1x1x64xf32> to vector<2x8x64xf32>
    %208 = arith.mulf %185, %207 : vector<2x8x64xf32>
    "tpu.trace_start"() <{level = 10 : i32, message = "bqk,bkd->bqd"}> : () -> ()
    %cst_56 = arith.constant dense<0.000000e+00> : vector<2x8x64xf32>
    %209 = tpu.matmul %206, %208, %cst_56 {dimension_numbers = #tpu.dot_dimension_numbers<[2], [1], [1], [2], [0, 0, 0, 1, 1, 2], [0], [0]>} : vector<2x8x8xf32>, vector<2x8x64xf32>, vector<2x8x64xf32> -> vector<2x8x64xf32>
    "tpu.trace_stop"() : () -> ()
    %210 = arith.addf %186, %209 : vector<2x8x64xf32>
    %c16_i32_57 = arith.constant 16 : i32
    %211 = vector.broadcast %c16_i32_57 : i32 to vector<1x1x64xi32>
    %212 = arith.cmpi sge, %7, %211 : vector<1x1x64xi32>
    %c32_i32_58 = arith.constant 32 : i32
    %213 = vector.broadcast %c32_i32_58 : i32 to vector<1x1x64xi32>
    %214 = arith.cmpi slt, %7, %213 : vector<1x1x64xi32>
    %215 = arith.andi %212, %214 : vector<1x1x64xi1>
    %216 = arith.extui %215 : vector<1x1x64xi1> to vector<1x1x64xi32>
    %217 = arith.sitofp %216 : vector<1x1x64xi32> to vector<1x1x64xf32>
    %218 = vector.broadcast %217 : vector<1x1x64xf32> to vector<2x8x64xf32>
    %219 = arith.mulf %183, %218 : vector<2x8x64xf32>
    "tpu.trace_start"() <{level = 10 : i32, message = "bqd,bkd->bqk"}> : () -> ()
    %cst_59 = arith.constant dense<0.000000e+00> : vector<2x8x8xf32>
    %220 = tpu.matmul %219, %184, %cst_59 {dimension_numbers = #tpu.dot_dimension_numbers<[2], [2], [1], [1], [0, 0, 0, 1, 1, 1], [0], [0]>} : vector<2x8x64xf32>, vector<2x8x64xf32>, vector<2x8x8xf32> -> vector<2x8x8xf32>
    "tpu.trace_stop"() : () -> ()
    %cst_60 = arith.constant dense<0xFF800000> : vector<2x8xf32>
    %221 = vector.multi_reduction <maximumf>, %220, %cst_60 [2] : vector<2x8x8xf32> to vector<2x8xf32>
    %222 = vector.shape_cast %221 : vector<2x8xf32> to vector<2x8x1xf32>
    %223 = vector.broadcast %222 : vector<2x8x1xf32> to vector<2x8x8xf32>
    %224 = arith.subf %220, %223 : vector<2x8x8xf32>
    %225 = math.exp %224 : vector<2x8x8xf32>
    %cst_61 = arith.constant dense<0.000000e+00> : vector<2x8xf32>
    %226 = vector.multi_reduction <add>, %225, %cst_61 [2] : vector<2x8x8xf32> to vector<2x8xf32>
    %227 = vector.shape_cast %226 : vector<2x8xf32> to vector<2x8x1xf32>
    %228 = tpu.reciprocal %227 {approx = true} : vector<2x8x1xf32> -> vector<2x8x1xf32>
    %229 = vector.broadcast %228 : vector<2x8x1xf32> to vector<2x8x8xf32>
    %230 = arith.mulf %225, %229 : vector<2x8x8xf32>
    %231 = vector.broadcast %217 : vector<1x1x64xf32> to vector<2x8x64xf32>
    %232 = arith.mulf %185, %231 : vector<2x8x64xf32>
    "tpu.trace_start"() <{level = 10 : i32, message = "bqk,bkd->bqd"}> : () -> ()
    %cst_62 = arith.constant dense<0.000000e+00> : vector<2x8x64xf32>
    %233 = tpu.matmul %230, %232, %cst_62 {dimension_numbers = #tpu.dot_dimension_numbers<[2], [1], [1], [2], [0, 0, 0, 1, 1, 2], [0], [0]>} : vector<2x8x8xf32>, vector<2x8x64xf32>, vector<2x8x64xf32> -> vector<2x8x64xf32>
    "tpu.trace_stop"() : () -> ()
    %234 = arith.addf %210, %233 : vector<2x8x64xf32>
    %c32_i32_63 = arith.constant 32 : i32
    %235 = vector.broadcast %c32_i32_63 : i32 to vector<1x1x64xi32>
    %236 = arith.cmpi sge, %7, %235 : vector<1x1x64xi32>
    %c48_i32_64 = arith.constant 48 : i32
    %237 = vector.broadcast %c48_i32_64 : i32 to vector<1x1x64xi32>
    %238 = arith.cmpi slt, %7, %237 : vector<1x1x64xi32>
    %239 = arith.andi %236, %238 : vector<1x1x64xi1>
    %240 = arith.extui %239 : vector<1x1x64xi1> to vector<1x1x64xi32>
    %241 = arith.sitofp %240 : vector<1x1x64xi32> to vector<1x1x64xf32>
    %242 = vector.broadcast %241 : vector<1x1x64xf32> to vector<2x8x64xf32>
    %243 = arith.mulf %183, %242 : vector<2x8x64xf32>
    "tpu.trace_start"() <{level = 10 : i32, message = "bqd,bkd->bqk"}> : () -> ()
    %cst_65 = arith.constant dense<0.000000e+00> : vector<2x8x8xf32>
    %244 = tpu.matmul %243, %184, %cst_65 {dimension_numbers = #tpu.dot_dimension_numbers<[2], [2], [1], [1], [0, 0, 0, 1, 1, 1], [0], [0]>} : vector<2x8x64xf32>, vector<2x8x64xf32>, vector<2x8x8xf32> -> vector<2x8x8xf32>
    "tpu.trace_stop"() : () -> ()
    %cst_66 = arith.constant dense<0xFF800000> : vector<2x8xf32>
    %245 = vector.multi_reduction <maximumf>, %244, %cst_66 [2] : vector<2x8x8xf32> to vector<2x8xf32>
    %246 = vector.shape_cast %245 : vector<2x8xf32> to vector<2x8x1xf32>
    %247 = vector.broadcast %246 : vector<2x8x1xf32> to vector<2x8x8xf32>
    %248 = arith.subf %244, %247 : vector<2x8x8xf32>
    %249 = math.exp %248 : vector<2x8x8xf32>
    %cst_67 = arith.constant dense<0.000000e+00> : vector<2x8xf32>
    %250 = vector.multi_reduction <add>, %249, %cst_67 [2] : vector<2x8x8xf32> to vector<2x8xf32>
    %251 = vector.shape_cast %250 : vector<2x8xf32> to vector<2x8x1xf32>
    %252 = tpu.reciprocal %251 {approx = true} : vector<2x8x1xf32> -> vector<2x8x1xf32>
    %253 = vector.broadcast %252 : vector<2x8x1xf32> to vector<2x8x8xf32>
    %254 = arith.mulf %249, %253 : vector<2x8x8xf32>
    %255 = vector.broadcast %241 : vector<1x1x64xf32> to vector<2x8x64xf32>
    %256 = arith.mulf %185, %255 : vector<2x8x64xf32>
    "tpu.trace_start"() <{level = 10 : i32, message = "bqk,bkd->bqd"}> : () -> ()
    %cst_68 = arith.constant dense<0.000000e+00> : vector<2x8x64xf32>
    %257 = tpu.matmul %254, %256, %cst_68 {dimension_numbers = #tpu.dot_dimension_numbers<[2], [1], [1], [2], [0, 0, 0, 1, 1, 2], [0], [0]>} : vector<2x8x8xf32>, vector<2x8x64xf32>, vector<2x8x64xf32> -> vector<2x8x64xf32>
    "tpu.trace_stop"() : () -> ()
    %258 = arith.addf %234, %257 : vector<2x8x64xf32>
    %c48_i32_69 = arith.constant 48 : i32
    %259 = vector.broadcast %c48_i32_69 : i32 to vector<1x1x64xi32>
    %260 = arith.cmpi sge, %7, %259 : vector<1x1x64xi32>
    %c64_i32_70 = arith.constant 64 : i32
    %261 = vector.broadcast %c64_i32_70 : i32 to vector<1x1x64xi32>
    %262 = arith.cmpi slt, %7, %261 : vector<1x1x64xi32>
    %263 = arith.andi %260, %262 : vector<1x1x64xi1>
    %264 = arith.extui %263 : vector<1x1x64xi1> to vector<1x1x64xi32>
    %265 = arith.sitofp %264 : vector<1x1x64xi32> to vector<1x1x64xf32>
    %266 = vector.broadcast %265 : vector<1x1x64xf32> to vector<2x8x64xf32>
    %267 = arith.mulf %183, %266 : vector<2x8x64xf32>
    "tpu.trace_start"() <{level = 10 : i32, message = "bqd,bkd->bqk"}> : () -> ()
    %cst_71 = arith.constant dense<0.000000e+00> : vector<2x8x8xf32>
    %268 = tpu.matmul %267, %184, %cst_71 {dimension_numbers = #tpu.dot_dimension_numbers<[2], [2], [1], [1], [0, 0, 0, 1, 1, 1], [0], [0]>} : vector<2x8x64xf32>, vector<2x8x64xf32>, vector<2x8x8xf32> -> vector<2x8x8xf32>
    "tpu.trace_stop"() : () -> ()
    %cst_72 = arith.constant dense<0xFF800000> : vector<2x8xf32>
    %269 = vector.multi_reduction <maximumf>, %268, %cst_72 [2] : vector<2x8x8xf32> to vector<2x8xf32>
    %270 = vector.shape_cast %269 : vector<2x8xf32> to vector<2x8x1xf32>
    %271 = vector.broadcast %270 : vector<2x8x1xf32> to vector<2x8x8xf32>
    %272 = arith.subf %268, %271 : vector<2x8x8xf32>
    %273 = math.exp %272 : vector<2x8x8xf32>
    %cst_73 = arith.constant dense<0.000000e+00> : vector<2x8xf32>
    %274 = vector.multi_reduction <add>, %273, %cst_73 [2] : vector<2x8x8xf32> to vector<2x8xf32>
    %275 = vector.shape_cast %274 : vector<2x8xf32> to vector<2x8x1xf32>
    %276 = tpu.reciprocal %275 {approx = true} : vector<2x8x1xf32> -> vector<2x8x1xf32>
    %277 = vector.broadcast %276 : vector<2x8x1xf32> to vector<2x8x8xf32>
    %278 = arith.mulf %273, %277 : vector<2x8x8xf32>
    %279 = vector.broadcast %265 : vector<1x1x64xf32> to vector<2x8x64xf32>
    %280 = arith.mulf %185, %279 : vector<2x8x64xf32>
    "tpu.trace_start"() <{level = 10 : i32, message = "bqk,bkd->bqd"}> : () -> ()
    %cst_74 = arith.constant dense<0.000000e+00> : vector<2x8x64xf32>
    %281 = tpu.matmul %278, %280, %cst_74 {dimension_numbers = #tpu.dot_dimension_numbers<[2], [1], [1], [2], [0, 0, 0, 1, 1, 2], [0], [0]>} : vector<2x8x8xf32>, vector<2x8x64xf32>, vector<2x8x64xf32> -> vector<2x8x64xf32>
    "tpu.trace_stop"() : () -> ()
    %282 = arith.addf %258, %281 : vector<2x8x64xf32>
    %283 = vector.shape_cast %282 : vector<2x8x64xf32> to vector<16x64xf32>
    %284 = arith.truncf %283 : vector<16x64xf32> to vector<16x64xbf16>
    %cst_75 = arith.constant dense<0.000000e+00> : vector<16x64xf32>
    %285 = tpu.matmul %284, %179, %cst_75 {dimension_numbers = #tpu.dot_dimension_numbers<[1], [0], [0], [1], [0, 0, 1, 1], [], []>} : vector<16x64xbf16>, vector<64x64xbf16>, vector<16x64xf32> -> vector<16x64xf32>
    %286 = vector.broadcast %180 : vector<1x64xf32> to vector<16x64xf32>
    %287 = arith.addf %285, %286 : vector<16x64xf32>
    %288 = arith.addf %171, %287 : vector<16x64xf32>
    %289 = vector.extract_strided_slice %4 {offsets = [10, 0], sizes = [1, 64], strides = [1, 1]} : vector<16x64xf32> to vector<1x64xf32>
    %290 = vector.extract_strided_slice %4 {offsets = [11, 0], sizes = [1, 64], strides = [1, 1]} : vector<16x64xf32> to vector<1x64xf32>
    %cst_76 = arith.constant dense<0.000000e+00> : vector<16xf32>
    %291 = vector.multi_reduction <add>, %288, %cst_76 [1] : vector<16x64xf32> to vector<16xf32>
    %292 = vector.shape_cast %291 : vector<16xf32> to vector<16x1xf32>
    %cst_77 = arith.constant 6.400000e+01 : f32
    %293 = vector.broadcast %cst_77 : f32 to vector<16x1xf32>
    %294 = arith.divf %292, %293 : vector<16x1xf32>
    %295 = vector.broadcast %294 : vector<16x1xf32> to vector<16x64xf32>
    %296 = arith.subf %288, %295 : vector<16x64xf32>
    %297 = arith.mulf %296, %296 : vector<16x64xf32>
    %cst_78 = arith.constant dense<0.000000e+00> : vector<16xf32>
    %298 = vector.multi_reduction <add>, %297, %cst_78 [1] : vector<16x64xf32> to vector<16xf32>
    %299 = vector.shape_cast %298 : vector<16xf32> to vector<16x1xf32>
    %cst_79 = arith.constant 6.400000e+01 : f32
    %300 = vector.broadcast %cst_79 : f32 to vector<16x1xf32>
    %301 = arith.divf %299, %300 : vector<16x1xf32>
    %302 = vector.broadcast %294 : vector<16x1xf32> to vector<16x64xf32>
    %303 = arith.subf %288, %302 : vector<16x64xf32>
    %cst_80 = arith.constant 9.99999974E-6 : f32
    %304 = vector.broadcast %cst_80 : f32 to vector<16x1xf32>
    %305 = arith.addf %301, %304 : vector<16x1xf32>
    %306 = math.rsqrt %305 : vector<16x1xf32>
    %307 = vector.broadcast %306 : vector<16x1xf32> to vector<16x64xf32>
    %308 = arith.mulf %303, %307 : vector<16x64xf32>
    %309 = vector.broadcast %289 : vector<1x64xf32> to vector<16x64xf32>
    %310 = arith.mulf %308, %309 : vector<16x64xf32>
    %311 = vector.broadcast %290 : vector<1x64xf32> to vector<16x64xf32>
    %312 = arith.addf %310, %311 : vector<16x64xf32>
    %313 = arith.truncf %312 : vector<16x64xf32> to vector<16x64xbf16>
    %cst_81 = arith.constant 0.000000e+00 : f32
    %314 = vector.broadcast %cst_81 : f32 to vector<16x64xf32>
    %c0_82 = arith.constant 0 : index
    %c0_83 = arith.constant 0 : index
    %c0_84 = arith.constant 0 : index
    %315 = vector.load %arg9[%c0_82, %c0_83, %c0_84] : memref<1x64x2048xbf16, #tpu.memory_space<vmem>>, vector<1x64x512xbf16>
    %316 = vector.shape_cast %315 : vector<1x64x512xbf16> to vector<64x512xbf16>
    %cst_85 = arith.constant dense<0.000000e+00> : vector<16x512xf32>
    %317 = tpu.matmul %313, %316, %cst_85 {dimension_numbers = #tpu.dot_dimension_numbers<[1], [0], [0], [1], [0, 0, 1, 1], [], []>} : vector<16x64xbf16>, vector<64x512xbf16>, vector<16x512xf32> -> vector<16x512xf32>
    %c0_86 = arith.constant 0 : index
    %c0_87 = arith.constant 0 : index
    %c0_88 = arith.constant 0 : index
    %318 = vector.load %arg10[%c0_86, %c0_87, %c0_88] : memref<1x1x2048xf32, #tpu.memory_space<vmem>>, vector<1x1x512xf32>
    %319 = vector.shape_cast %318 : vector<1x1x512xf32> to vector<1x512xf32>
    %320 = vector.broadcast %319 : vector<1x512xf32> to vector<16x512xf32>
    %321 = arith.addf %317, %320 : vector<16x512xf32>
    %cst_89 = arith.constant 0.000000e+00 : f32
    %322 = vector.broadcast %cst_89 : f32 to vector<16x512xf32>
    %323 = arith.maximumf %321, %322 : vector<16x512xf32>
    %324 = arith.truncf %323 : vector<16x512xf32> to vector<16x512xbf16>
    %c0_90 = arith.constant 0 : index
    %c0_91 = arith.constant 0 : index
    %c0_92 = arith.constant 0 : index
    %325 = vector.load %arg11[%c0_90, %c0_91, %c0_92] : memref<1x2048x64xbf16, #tpu.memory_space<vmem>>, vector<1x512x64xbf16>
    %326 = vector.shape_cast %325 : vector<1x512x64xbf16> to vector<512x64xbf16>
    %cst_93 = arith.constant dense<0.000000e+00> : vector<16x64xf32>
    %327 = tpu.matmul %324, %326, %cst_93 {dimension_numbers = #tpu.dot_dimension_numbers<[1], [0], [0], [1], [0, 0, 1, 1], [], []>} : vector<16x512xbf16>, vector<512x64xbf16>, vector<16x64xf32> -> vector<16x64xf32>
    %328 = arith.addf %314, %327 : vector<16x64xf32>
    %c0_94 = arith.constant 0 : index
    %c0_95 = arith.constant 0 : index
    %c512 = arith.constant 512 : index
    %329 = vector.load %arg9[%c0_94, %c0_95, %c512] : memref<1x64x2048xbf16, #tpu.memory_space<vmem>>, vector<1x64x512xbf16>
    %330 = vector.shape_cast %329 : vector<1x64x512xbf16> to vector<64x512xbf16>
    %cst_96 = arith.constant dense<0.000000e+00> : vector<16x512xf32>
    %331 = tpu.matmul %313, %330, %cst_96 {dimension_numbers = #tpu.dot_dimension_numbers<[1], [0], [0], [1], [0, 0, 1, 1], [], []>} : vector<16x64xbf16>, vector<64x512xbf16>, vector<16x512xf32> -> vector<16x512xf32>
    %c0_97 = arith.constant 0 : index
    %c0_98 = arith.constant 0 : index
    %c512_99 = arith.constant 512 : index
    %332 = vector.load %arg10[%c0_97, %c0_98, %c512_99] : memref<1x1x2048xf32, #tpu.memory_space<vmem>>, vector<1x1x512xf32>
    %333 = vector.shape_cast %332 : vector<1x1x512xf32> to vector<1x512xf32>
    %334 = vector.broadcast %333 : vector<1x512xf32> to vector<16x512xf32>
    %335 = arith.addf %331, %334 : vector<16x512xf32>
    %cst_100 = arith.constant 0.000000e+00 : f32
    %336 = vector.broadcast %cst_100 : f32 to vector<16x512xf32>
    %337 = arith.maximumf %335, %336 : vector<16x512xf32>
    %338 = arith.truncf %337 : vector<16x512xf32> to vector<16x512xbf16>
    %c0_101 = arith.constant 0 : index
    %c512_102 = arith.constant 512 : index
    %c0_103 = arith.constant 0 : index
    %339 = vector.load %arg11[%c0_101, %c512_102, %c0_103] : memref<1x2048x64xbf16, #tpu.memory_space<vmem>>, vector<1x512x64xbf16>
    %340 = vector.shape_cast %339 : vector<1x512x64xbf16> to vector<512x64xbf16>
    %cst_104 = arith.constant dense<0.000000e+00> : vector<16x64xf32>
    %341 = tpu.matmul %338, %340, %cst_104 {dimension_numbers = #tpu.dot_dimension_numbers<[1], [0], [0], [1], [0, 0, 1, 1], [], []>} : vector<16x512xbf16>, vector<512x64xbf16>, vector<16x64xf32> -> vector<16x64xf32>
    %342 = arith.addf %328, %341 : vector<16x64xf32>
    %c0_105 = arith.constant 0 : index
    %c0_106 = arith.constant 0 : index
    %c1024 = arith.constant 1024 : index
    %343 = vector.load %arg9[%c0_105, %c0_106, %c1024] : memref<1x64x2048xbf16, #tpu.memory_space<vmem>>, vector<1x64x512xbf16>
    %344 = vector.shape_cast %343 : vector<1x64x512xbf16> to vector<64x512xbf16>
    %cst_107 = arith.constant dense<0.000000e+00> : vector<16x512xf32>
    %345 = tpu.matmul %313, %344, %cst_107 {dimension_numbers = #tpu.dot_dimension_numbers<[1], [0], [0], [1], [0, 0, 1, 1], [], []>} : vector<16x64xbf16>, vector<64x512xbf16>, vector<16x512xf32> -> vector<16x512xf32>
    %c0_108 = arith.constant 0 : index
    %c0_109 = arith.constant 0 : index
    %c1024_110 = arith.constant 1024 : index
    %346 = vector.load %arg10[%c0_108, %c0_109, %c1024_110] : memref<1x1x2048xf32, #tpu.memory_space<vmem>>, vector<1x1x512xf32>
    %347 = vector.shape_cast %346 : vector<1x1x512xf32> to vector<1x512xf32>
    %348 = vector.broadcast %347 : vector<1x512xf32> to vector<16x512xf32>
    %349 = arith.addf %345, %348 : vector<16x512xf32>
    %cst_111 = arith.constant 0.000000e+00 : f32
    %350 = vector.broadcast %cst_111 : f32 to vector<16x512xf32>
    %351 = arith.maximumf %349, %350 : vector<16x512xf32>
    %352 = arith.truncf %351 : vector<16x512xf32> to vector<16x512xbf16>
    %c0_112 = arith.constant 0 : index
    %c1024_113 = arith.constant 1024 : index
    %c0_114 = arith.constant 0 : index
    %353 = vector.load %arg11[%c0_112, %c1024_113, %c0_114] : memref<1x2048x64xbf16, #tpu.memory_space<vmem>>, vector<1x512x64xbf16>
    %354 = vector.shape_cast %353 : vector<1x512x64xbf16> to vector<512x64xbf16>
    %cst_115 = arith.constant dense<0.000000e+00> : vector<16x64xf32>
    %355 = tpu.matmul %352, %354, %cst_115 {dimension_numbers = #tpu.dot_dimension_numbers<[1], [0], [0], [1], [0, 0, 1, 1], [], []>} : vector<16x512xbf16>, vector<512x64xbf16>, vector<16x64xf32> -> vector<16x64xf32>
    %356 = arith.addf %342, %355 : vector<16x64xf32>
    %c0_116 = arith.constant 0 : index
    %c0_117 = arith.constant 0 : index
    %c1536 = arith.constant 1536 : index
    %357 = vector.load %arg9[%c0_116, %c0_117, %c1536] : memref<1x64x2048xbf16, #tpu.memory_space<vmem>>, vector<1x64x512xbf16>
    %358 = vector.shape_cast %357 : vector<1x64x512xbf16> to vector<64x512xbf16>
    %cst_118 = arith.constant dense<0.000000e+00> : vector<16x512xf32>
    %359 = tpu.matmul %313, %358, %cst_118 {dimension_numbers = #tpu.dot_dimension_numbers<[1], [0], [0], [1], [0, 0, 1, 1], [], []>} : vector<16x64xbf16>, vector<64x512xbf16>, vector<16x512xf32> -> vector<16x512xf32>
    %c0_119 = arith.constant 0 : index
    %c0_120 = arith.constant 0 : index
    %c1536_121 = arith.constant 1536 : index
    %360 = vector.load %arg10[%c0_119, %c0_120, %c1536_121] : memref<1x1x2048xf32, #tpu.memory_space<vmem>>, vector<1x1x512xf32>
    %361 = vector.shape_cast %360 : vector<1x1x512xf32> to vector<1x512xf32>
    %362 = vector.broadcast %361 : vector<1x512xf32> to vector<16x512xf32>
    %363 = arith.addf %359, %362 : vector<16x512xf32>
    %cst_122 = arith.constant 0.000000e+00 : f32
    %364 = vector.broadcast %cst_122 : f32 to vector<16x512xf32>
    %365 = arith.maximumf %363, %364 : vector<16x512xf32>
    %366 = arith.truncf %365 : vector<16x512xf32> to vector<16x512xbf16>
    %c0_123 = arith.constant 0 : index
    %c1536_124 = arith.constant 1536 : index
    %c0_125 = arith.constant 0 : index
    %367 = vector.load %arg11[%c0_123, %c1536_124, %c0_125] : memref<1x2048x64xbf16, #tpu.memory_space<vmem>>, vector<1x512x64xbf16>
    %368 = vector.shape_cast %367 : vector<1x512x64xbf16> to vector<512x64xbf16>
    %cst_126 = arith.constant dense<0.000000e+00> : vector<16x64xf32>
    %369 = tpu.matmul %366, %368, %cst_126 {dimension_numbers = #tpu.dot_dimension_numbers<[1], [0], [0], [1], [0, 0, 1, 1], [], []>} : vector<16x512xbf16>, vector<512x64xbf16>, vector<16x64xf32> -> vector<16x64xf32>
    %370 = arith.addf %356, %369 : vector<16x64xf32>
    %371 = vector.extract_strided_slice %4 {offsets = [14, 0], sizes = [1, 64], strides = [1, 1]} : vector<16x64xf32> to vector<1x64xf32>
    %372 = vector.broadcast %371 : vector<1x64xf32> to vector<16x64xf32>
    %373 = arith.addf %370, %372 : vector<16x64xf32>
    %374 = arith.addf %312, %373 : vector<16x64xf32>
    %375 = vector.extract_strided_slice %4 {offsets = [12, 0], sizes = [1, 64], strides = [1, 1]} : vector<16x64xf32> to vector<1x64xf32>
    %376 = vector.extract_strided_slice %4 {offsets = [13, 0], sizes = [1, 64], strides = [1, 1]} : vector<16x64xf32> to vector<1x64xf32>
    %cst_127 = arith.constant dense<0.000000e+00> : vector<16xf32>
    %377 = vector.multi_reduction <add>, %374, %cst_127 [1] : vector<16x64xf32> to vector<16xf32>
    %378 = vector.shape_cast %377 : vector<16xf32> to vector<16x1xf32>
    %cst_128 = arith.constant 6.400000e+01 : f32
    %379 = vector.broadcast %cst_128 : f32 to vector<16x1xf32>
    %380 = arith.divf %378, %379 : vector<16x1xf32>
    %381 = vector.broadcast %380 : vector<16x1xf32> to vector<16x64xf32>
    %382 = arith.subf %374, %381 : vector<16x64xf32>
    %383 = arith.mulf %382, %382 : vector<16x64xf32>
    %cst_129 = arith.constant dense<0.000000e+00> : vector<16xf32>
    %384 = vector.multi_reduction <add>, %383, %cst_129 [1] : vector<16x64xf32> to vector<16xf32>
    %385 = vector.shape_cast %384 : vector<16xf32> to vector<16x1xf32>
    %cst_130 = arith.constant 6.400000e+01 : f32
    %386 = vector.broadcast %cst_130 : f32 to vector<16x1xf32>
    %387 = arith.divf %385, %386 : vector<16x1xf32>
    %388 = vector.broadcast %380 : vector<16x1xf32> to vector<16x64xf32>
    %389 = arith.subf %374, %388 : vector<16x64xf32>
    %cst_131 = arith.constant 9.99999974E-6 : f32
    %390 = vector.broadcast %cst_131 : f32 to vector<16x1xf32>
    %391 = arith.addf %387, %390 : vector<16x1xf32>
    %392 = math.rsqrt %391 : vector<16x1xf32>
    %393 = vector.broadcast %392 : vector<16x1xf32> to vector<16x64xf32>
    %394 = arith.mulf %389, %393 : vector<16x64xf32>
    %395 = vector.broadcast %375 : vector<1x64xf32> to vector<16x64xf32>
    %396 = arith.mulf %394, %395 : vector<16x64xf32>
    %397 = vector.broadcast %376 : vector<1x64xf32> to vector<16x64xf32>
    %398 = arith.addf %396, %397 : vector<16x64xf32>
    %c0_132 = arith.constant 0 : index
    %c0_133 = arith.constant 0 : index
    %399 = vector.load %arg13[%c0_132, %c0_133] : memref<16x64xf32, #tpu.memory_space<vmem>>, vector<16x64xf32>
    tpu.vector_store %arg13[%c0_132, %c0_133], %398 {strides = array<i32>} : memref<16x64xf32, #tpu.memory_space<vmem>>, vector<16x64xf32>,
    %c1_i32 = arith.constant 1 : i32
    %400 = arith.cmpi eq, %arg0, %c1_i32 : i32
    %401 = arith.extui %400 : i1 to i32
    %c0_i32_134 = arith.constant 0 : i32
    %402 = arith.cmpi ne, %401, %c0_i32_134 : i32
    scf.if %402 {
      %c0_135 = arith.constant 0 : index
      %c0_136 = arith.constant 0 : index
      %403 = vector.load %arg12[%c0_135, %c0_136] : memref<16x64xf32, #tpu.memory_space<vmem>>, vector<16x64xf32>
      tpu.vector_store %arg12[%c0_135, %c0_136], %398 {strides = array<i32>} : memref<16x64xf32, #tpu.memory_space<vmem>>, vector<16x64xf32>,
    } else {
    }
    return
  }
  func.func @transform_0(%arg0: i32) -> (i32, i32) {
    %c0_i32 = arith.constant 0 : i32
    %c0_i32_0 = arith.constant 0 : i32
    %c0_i32_1 = arith.constant 0 : i32
    return %c0_i32, %c0_i32_0 : i32, i32
  }
  func.func @transform_1(%arg0: i32) -> (i32, i32) {
    %c0_i32 = arith.constant 0 : i32
    %c0_i32_0 = arith.constant 0 : i32
    %c0_i32_1 = arith.constant 0 : i32
    return %c0_i32, %c0_i32_0 : i32, i32
  }
  func.func @transform_2(%arg0: i32) -> (i32, i32) {
    %c0_i32 = arith.constant 0 : i32
    %c0_i32_0 = arith.constant 0 : i32
    %c0_i32_1 = arith.constant 0 : i32
    return %c0_i32, %c0_i32_0 : i32, i32
  }
  func.func @transform_3(%arg0: i32) -> (i32, i32, i32) {
    %c0_i32 = arith.constant 0 : i32
    %c0_i32_0 = arith.constant 0 : i32
    %c0_i32_1 = arith.constant 0 : i32
    return %arg0, %c0_i32, %c0_i32_0 : i32, i32, i32
  }
  func.func @transform_4(%arg0: i32) -> (i32, i32, i32) {
    %c0_i32 = arith.constant 0 : i32
    %c0_i32_0 = arith.constant 0 : i32
    %c0_i32_1 = arith.constant 0 : i32
    return %arg0, %c0_i32, %c0_i32_0 : i32, i32, i32
  }
  func.func @transform_5(%arg0: i32) -> (i32, i32, i32) {
    %c0_i32 = arith.constant 0 : i32
    %c0_i32_0 = arith.constant 0 : i32
    %c0_i32_1 = arith.constant 0 : i32
    return %arg0, %c0_i32, %c0_i32_0 : i32, i32, i32
  }
  func.func @transform_6(%arg0: i32) -> (i32, i32, i32) {
    %c0_i32 = arith.constant 0 : i32
    %c0_i32_0 = arith.constant 0 : i32
    %c0_i32_1 = arith.constant 0 : i32
    return %arg0, %c0_i32, %c0_i32_0 : i32, i32, i32
  }
  func.func @transform_7(%arg0: i32) -> (i32, i32, i32) {
    %c0_i32 = arith.constant 0 : i32
    %c0_i32_0 = arith.constant 0 : i32
    %c0_i32_1 = arith.constant 0 : i32
    return %arg0, %c0_i32, %c0_i32_0 : i32, i32, i32
  }
  func.func @transform_8(%arg0: i32) -> (i32, i32, i32) {
    %c0_i32 = arith.constant 0 : i32
    %c0_i32_0 = arith.constant 0 : i32
    %c0_i32_1 = arith.constant 0 : i32
    return %arg0, %c0_i32, %c0_i32_0 : i32, i32, i32
  }
  func.func @transform_9(%arg0: i32) -> (i32, i32, i32) {
    %c0_i32 = arith.constant 0 : i32
    %c0_i32_0 = arith.constant 0 : i32
    %c0_i32_1 = arith.constant 0 : i32
    return %arg0, %c0_i32, %c0_i32_0 : i32, i32, i32
  }
  func.func @transform_10(%arg0: i32) -> (i32, i32, i32) {
    %c0_i32 = arith.constant 0 : i32
    %c0_i32_0 = arith.constant 0 : i32
    %c0_i32_1 = arith.constant 0 : i32
    return %arg0, %c0_i32, %c0_i32_0 : i32, i32, i32
  }
  func.func @transform_11(%arg0: i32) -> (i32, i32) {
    %c0_i32 = arith.constant 0 : i32
    %c0_i32_0 = arith.constant 0 : i32
    %c0_i32_1 = arith.constant 0 : i32
    return %c0_i32, %c0_i32_0 : i32, i32
  }
}

</mosaic_0001>

<bundles_post_ra>
// kernel: user_tower_forward.1
= control target key start
LH: loop header
LB: loop body
LE: loop exit
PB: predicated region body
PF: predicated region fallthrough
CT: control target
= control target key end

     0   :  { %s8378_s0 = inlined_call_operand.vmem [shape: s32[16,1], index: 0, kind: input, shape index: {}]   ;;  %s8379_s1 = inlined_call_operand.vmem [shape: s32[16,1], index: 1, kind: input, shape index: {}]   ;;  %s8380_s2 = inlined_call_operand.vmem [shape: bf16[128,64], index: 2, kind: input, shape index: {}]   ;;  %s8381_s3 = inlined_call_operand.vmem [shape: bf16[2,64,192], index: 3, kind: input, shape index: {}]   ;;  %s8382_s4 = inlined_call_operand.vmem [shape: bf16[2,64,64], index: 4, kind: input, shape index: {}]   ;;  %s8383_s5 = inlined_call_operand.vmem [shape: bf16[2,64,192], index: 5, kind: input, shape index: {}]   ;;  %s8384_s6 = inlined_call_operand.vmem [shape: bf16[2,64,64], index: 6, kind: input, shape index: {}]   ;;  %s8385_s7 = inlined_call_operand.vmem [shape: f32[2,16,64], index: 7, kind: input, shape index: {}]   ;;  %s8386_s8 = inlined_call_operand.vmem [shape: bf16[2,64,2048], index: 8, kind: input, shape index: {}]   ;;  %s8387_s9 = inlined_call_operand.vmem [shape: f32[2,1,2048], index: 9, kind: input, shape index: {}]   ;;  %s8388_s10 = inlined_call_operand.vmem [shape: bf16[2,2048,64], index: 10, kind: input, shape index: {}]   ;;  %s8389_s11 = inlined_call_operand.hbm [shape: f32[16,64], index: 11, kind: output, shape index: {}]  }
   0x1   :  { %8390 = sst [smem:[#allocation7_spill]] %s8381_s3 }
   0x2   :  { %8391 = sst [smem:[#allocation8_spill]] %s8382_s4 }
   0x3   :  { %8392 = sst [smem:[#allocation9_spill]] %s8383_s5 }
   0x4   :  { %16 = vsyncpa [#allocation5], 0  ;;  %s7491_s17 = smov 0  }
   0x5 LB: > { %s7497_s18 = sadd.s32 4294967295, %s7419_s17   ;;  %p6262_p0 = scmp.ge.s32.totalorder %s7419_s17, 1  ;;  %s7419_s17 = sphi %s7491_s17, %s22_s17  }
   0x6   : > { %p402_p1 = scmp.lt.s32.totalorder %s7419_s17, 3 }
   0x8   : > { %p403_p2 = pnand %p6262_p0, %p402_p1 }
   0x9   : > { %p471_p3 = scmp.lt.s32.totalorder (!%p403_p2), %s7497_s18, 1  ;;  %s8393_s3 = sld [smem:[#allocation7_spill]] (!%p403_p2) }
   0xa   : > { %406 = sbr.rel (%p403_p2) target bundleno = 6992 (0x1b50), region = 64  ;;  %s8394_s4 = sld [smem:[#allocation8_spill]] (!%p403_p2) }
   0xb   : > { %s8395_s5 = sld [smem:[#allocation9_spill]] (!%p403_p2)  ;;  %p6278_p4 = scmp.ne.s32.totalorder (!%p403_p2), %s7497_s18, 0 }
  0x11   : > { %s472_s19 = scalar_select %p471_p3, %s7497_s18, 1 }
  0x12   : > { %v515_v0 = vld [vmem:[%s8378_s0] sm:$0xff] (!%p6278_p4)  ;;  %v7421_v2 = vmov (!%p6278_p4), 0   ;;  %v518_v4 = vld [vmem:[%s8379_s1 + $0x8] sm:$0xff] (!%p6278_p4)  ;;  %v7422_v5 = vmov (!%p6278_p4), 0.0   ;;  %v7133_v10 = vld [vmem:[%s8380_s2 + $0x10] sm:$0xff] (!%p6278_p4)   ;;  %vm7423_vm0 = vmmov (!%p6278_p4), 0   ;;  %v519_v16 = vlaneseq (!%p6278_p4) }
  0x13   : > { %s6577_s20 = sshll.u32 %s472_s19, 6  ;;  %s6578_s21 = sshll.u32 %s472_s19, 5  ;;  %v517_v1 = vld [vmem:[%s8379_s1] sm:$0xff] (!%p6278_p4)  ;;  %7129 = vset.pattern.permute.xlu0 (!%p6278_p4), %v7421_v2  ;;  %7130 = vset.pattern.permute.xlu1 (!%p6278_p4), %v7421_v2  ;;  %v516_v7 = vld [vmem:[%s8378_s0 + $0x8] sm:$0xff] (!%p6278_p4)  ;;  %v535_v8 = vadd.s32 (!%p6278_p4), 64, %v518_v4  ;;  %v7134_v11 = vld [vmem:[%s8380_s2 + $0x18] sm:$0xff] (!%p6278_p4)  }
  0x14   : > { %s7506_s24 = scalar_lea.vmem %s8393_s3, %s6577_s20  ;;  %s7511_s27 = scalar_lea.vmem %s8394_s4, %s6578_s21  ;;  %v534_v3 = vadd.s32 (!%p6278_p4), 64, %v517_v1  ;;  %522 = vperm.xlu0 (!%p6278_p4), %7129, %v515_v0   ;;  %6853 = vmatprep.subr.bf16.mxu0 (!%p6278_p4), %v7422_v5  ;;  %v7131_v6 = vld [vmem:[%s8380_s2] sm:$0xff] (!%p6278_p4)   ;;  %v7132_v9 = vld [vmem:[%s8380_s2 + $0x8] sm:$0xff] (!%p6278_p4)   ;;  %v7137_v14 = vld [vmem:[%s8380_s2 + $0x30] sm:$0xff] (!%p6278_p4)   ;;  %v520_v17 = vand.u32 (!%p6278_p4), 127, %v519_v16  ;;  %vm655_vm5 = vcmask (!%p6278_p4), 523264  }
  0x15   : > { %s7516_s30 = scalar_lea.vmem %s8395_s5, %s6577_s20  ;;  %s7521_s14 = scalar_lea.vmem %s8384_s6, %s6578_s21  ;;  %6854 = vmatpush3.bf16.msra.mxu0 (!%p6278_p4), %v7131_v6  ;;  %6869 = vmatprep.mubr.msk.bf16.mxu0 (!%p6278_p4), %vm7423_vm0, %v7422_v5  ;;  %v7135_v12 = vld [vmem:[%s8380_s2 + $0x20] sm:$0xff] (!%p6278_p4)   ;;  %v7136_v13 = vld [vmem:[%s8380_s2 + $0x28] sm:$0xff] (!%p6278_p4)   ;;  %v7138_v15 = vld [vmem:[%s8380_s2 + $0x38] sm:$0xff] (!%p6278_p4)  }
  0x16   : > { %s6581_s15 = sshll.u32 %s472_s19, 4  ;;  %s6582_s16 = sshll.u32 %s472_s19, 9  ;;  %537 = vperm.xlu1 (!%p6278_p4), %7130, %v534_v3   ;;  %6855 = vmatprep.subr.bf16.mxu0 (!%p6278_p4), %v7422_v5 }
  0x17   : > { %s7526_s3 = scalar_lea.vmem %s8385_s7, %s6581_s15  ;;  %s7531_s4 = scalar_lea.vmem %s8386_s8, %s6582_s16 }
  0x18   : > { %s7536_s29 = scalar_lea.vmem %s8387_s9, %s6581_s15  ;;  %s6583_s12 = sshll.u32 %s472_s19, 10  ;;  %525 = vperm.xlu0 (!%p6278_p4), %7129, %v516_v7  }
  0x19   : > { %s7541_s5 = scalar_lea.vmem %s8388_s10, %s6583_s12  ;;  %514 = sbr.rel (%p6278_p4) target bundleno = 375 (0x177), region = 68  ;;  %6856 = vmatpush3.bf16.msra.mxu0 (!%p6278_p4), %v7132_v9 }
  0x1a   : > { %540 = vperm.xlu1 (!%p6278_p4), %7130, %v535_v8   ;;  %6857 = vmatprep.subr.bf16.mxu0 (!%p6278_p4), %v7422_v5 }
  0x1d   : > { %6858 = vmatpush3.bf16.msra.mxu0 (!%p6278_p4), %v7133_v10 }
  0x1e   : > { %6859 = vmatprep.subr.bf16.mxu0 (!%p6278_p4), %v7422_v5 }
  0x21   : > { %6860 = vmatpush3.bf16.msra.mxu0 %v7134_v11 }
  0x22   : > { %6861 = vmatprep.subr.bf16.mxu0 %v7422_v5 }
  0x25   : > { %6862 = vmatpush3.bf16.msra.mxu0 %v7135_v12 }
  0x26   : > { %6863 = vmatprep.subr.bf16.mxu0 %v7422_v5 }
  0x29   : > { %6864 = vmatpush3.bf16.msra.mxu0 %v7136_v13 }
  0x2a   : > { %6865 = vmatprep.subr.bf16.mxu0 %v7422_v5 }
  0x2d   : > { %6866 = vmatpush3.bf16.msra.mxu0 %v7137_v14 }
  0x2e   : > { %6867 = vmatprep.subr.bf16.mxu0 %v7422_v5 }
  0x31   : > { %6868 = vmatpush3.bf16.msra.mxu0 %v7138_v15 }
  0x93   : > { %v523_v18 = vpop.permute.xlu0 %522 }
  0x94   : > { %vm527_vm1 = vcmp.eq.s32.totalorder %v520_v17, %v523_v18 }
  0x95   : > { %v538_v19 = vpop.permute.xlu1 %537  ;;  %v6279_v22 = vsel %vm527_vm1, 1.0, %v7422_v5 }
  0x96   : > { %vm542_vm2 = vcmp.eq.s32.totalorder %v520_v17, %v538_v19 }
  0x97   : > { %v526_v20 = vpop.permute.xlu0 %525  ;;  %v6281_v24 = vsel %vm542_vm2, 1.0, %v7422_v5 }
  0x98   : > { %vm528_vm3 = vcmp.eq.s32.totalorder %v520_v17, %v526_v20 }
  0x99   : > { %v541_v21 = vpop.permute.xlu1 %540  ;;  %v6280_v23 = vsel %vm528_vm3, 1.0, %v7422_v5 }
  0x9a   : > { %vm543_vm4 = vcmp.eq.s32.totalorder %v520_v17, %v541_v21  ;;  %v533_v25 = vpack.c.bf16 %v6280_v23, %v6279_v22 }
  0x9b   : > { %v6282_v26 = vsel %vm543_vm4, 1.0, %v7422_v5 }
  0x9c   : > { %v548_v27 = vpack.c.bf16 %v6282_v26, %v6281_v24 }
  0x9e   : > { %v549_v28 = vadd.bf16 %v548_v27, %v533_v25 }
  0xa0   : > { %6870 = vmatmul.mubr.bf16.vlgmr.msra.gmra.mrb[0].mxu0 %v549_v28 }
 0x173   : > { %v648_v29 = vpop.f32.mrb[0].mxu0 }
 0x174   : > { %656 = vst.msk [vmem:[#allocation2] sm:$0xff] %vm655_vm5, %v648_v29  ;;  %658 = vst.msk [vmem:[#allocation3] sm:$0xff] %vm655_vm5, %v648_v29  ;;  %v6871_v30 = vpop.f32.mrb[1].mxu0 }
 0x175   : > { %v651_v31 = vpop.f32.mrb[2].mxu0 }
 0x176   : > { %657 = vst.msk [vmem:[#allocation2 + $0x8] sm:$0xff] %vm655_vm5, %v651_v31  ;;  %659 = vst.msk [vmem:[#allocation3 + $0x8] sm:$0xff] %vm655_vm5, %v651_v31  ;;  %v6872_v32 = vpop.f32.mrb[3].mxu0 }
 0x177 PF: > { %v7139_v33 = vld [vmem:[%s7506_s24 + $0x4] ss:$8 sps:$4 sm:$0xff]   ;;  %v666_v34 = vlaneseq  ;;  %v7141_v35 = vld [vmem:[%s7506_s24] ss:$8 sps:$4 sm:$0xff]   ;;  %v7424_v36 = vmov 0   ;;  %s7425_s22 = smov 64  }
 0x178   : > { %761 = vmatprep.mubr.bf16.mxu0 %v7424_v36  ;;  %729 = vmatprep.subr.bf16.mxu0 %v7139_v33  ;;  %v7142_v37 = vld [vmem:[%s7506_s24 + $0x14] ss:$8 sps:$4 sm:$0xff]   ;;  %v7144_v39 = vld [vmem:[%s7506_s24 + $0x10] ss:$8 sps:$4 sm:$0xff]   ;;  %v7145_v40 = vld [vmem:[%s7506_s24 + $0x24] ss:$8 sps:$4 sm:$0xff]  }
 0x179   : > { %v7585_v38 = vshrl.u32 %v666_v34, 7  ;;  %730 = vmatpush1.bf16.msra.mxu0 %v7141_v35  ;;  %v7147_v42 = vld [vmem:[%s7506_s24 + $0x20] ss:$8 sps:$4 sm:$0xff]   ;;  %v7148_v44 = vld [vmem:[%s7506_s24 + $0x34] ss:$8 sps:$4 sm:$0xff]   ;;  %vm725_vm6 = vcmask 523264  }
 0x17a   : > { %731 = vmatprep.subr.bf16.mxu0 %v7142_v37  ;;  %v7594_v43 = vld [vmem:[%s7526_s3] sm:$0xff]  ;;  %v7154_v48 = vld [vmem:[%s7516_s30 + $0x10] ss:$8 sps:$4 sm:$0xff]   ;;  %v7156_v52 = vld [vmem:[%s7516_s30 + $0x14] ss:$8 sps:$4 sm:$0xff]   ;;  %v7426_v58 = vmov 0.0  }
 0x17b   : > { %v7590_v41 = vsub.s32 1, %v7585_v38  ;;  %v7151_v46 = vld [vmem:[%s7516_s30 + $0x4] ss:$8 sps:$4 sm:$0xff]   ;;  %v7153_v47 = vld [vmem:[%s7516_s30] ss:$8 sps:$4 sm:$0xff]   ;;  %6873 = vmatprep.subr.bf16.mxu1 %v7426_v58  ;;  %vm7427_vm7 = vmmov 0  }
 0x17c   : > { %v7150_v49 = vld [vmem:[%s7506_s24 + $0x30] ss:$8 sps:$4 sm:$0xff]   ;;  %829 = vrot.lane.b32.xlu1 %v7151_v46, %s7425_s22  ;;  %v662_v50 = vld [vmem:[#allocation2] sm:$0xff]  ;;  %v7162_v57 = vld [vmem:[%s7516_s30 + $0x34] ss:$8 sps:$4 sm:$0xff]   ;;  %6881 = vmatprep.mubr.msk.bf16.mxu1 %vm7427_vm7, %v7426_v58  ;;  %v7636_v11 = vand.u32 127, %v666_v34 }
 0x17d   : > { %732 = vmatpush1.bf16.msra.mxu0 %v7144_v39  ;;  %v781_v45 = vrot.slane %v7594_v43, %v7590_v41  ;;  %v663_v51 = vld [vmem:[#allocation2 + $0x8] sm:$0xff]  ;;  %v7160_v56 = vld [vmem:[%s7516_s30 + $0x30] ss:$8 sps:$4 sm:$0xff]   ;;  %v7639_v12 = vsub.s32 2, %v7585_v38  ;;  %v7658_v24 = vsub.s32 0, %v7585_v38  ;;  %v898_v34 = vsub.s32 5, %v7585_v38 }
 0x17e   : > { %733 = vmatprep.subr.bf16.mxu0 %v7145_v40  ;;  %v7157_v53 = vld [vmem:[%s7516_s30 + $0x20] ss:$8 sps:$4 sm:$0xff]   ;;  %v684_v54 = vpack.c.bf16 %v663_v51, %v662_v50  ;;  %v7159_v55 = vld [vmem:[%s7516_s30 + $0x24] ss:$8 sps:$4 sm:$0xff]   ;;  %v664_v6 = vld [vmem:[#allocation3] sm:$0xff]  ;;  %vm1110_vm8 = vcmp.ge.s32.totalorder %v7636_v11, 16 }
 0x17f   : > { %783 = vrot.lane.b32.xlu0 %v781_v45, %s7425_s22  ;;  %v665_v7 = vld [vmem:[#allocation3 + $0x8] sm:$0xff]  ;;  %vm1111_vm9 = vcmp.lt.s32.totalorder %v7636_v11, 32  ;;  %v791_v13 = vrot.slane %v7594_v43, %v7639_v12  ;;  %v775_v25 = vrot.slane %v7594_v43, %v7658_v24  ;;  %vm923_vm11 = vcmp.lt.s32.totalorder %v7636_v11, 16  ;;  %p6572_p5 = scmp.ne.s32.totalorder %s7497_s18, 1 }
 0x180   : > { %831 = vrot.lane.b32.xlu1 %v7154_v48, %s7425_s22  ;;  %v794_v10 = vpack.c.bf16 %v665_v7, %v664_v6  ;;  %vm1112_vm10 = vmand %vm1110_vm8, %vm1111_vm9  ;;  %v7666_v29 = vsel %vm923_vm11, 1.0, %v7426_v58  ;;  %v7692_v37 = vrot.slane %v7594_v43, %v898_v34  ;;  %vm1085_vm12 = vcmask 64512  }
 0x181   : > { %734 = vmatpush1.bf16.msra.mxu0 %v7147_v42  ;;  %v7646_v15 = vsel %vm1112_vm10, 1.0, %v7426_v58  ;;  %vm1579_vm13 = vcmp.ge.s32.totalorder %v7636_v11, 32  ;;  %vm1580_vm14 = vcmp.lt.s32.totalorder %v7636_v11, 48  ;;  %vm1904_vm0 = vcmp.ge.s32.totalorder %v7636_v11, 48 }
 0x182   : > { %735 = vmatprep.subr.bf16.mxu0 %v7148_v44  ;;  %vm1581_vm15 = vmand %vm1579_vm13, %vm1580_vm14  ;;  %vm1905_vm1 = vcmp.lt.s32.totalorder %v7636_v11, 64 }
 0x183   : > { %827 = vrot.lane.b32.xlu0 %v7153_v47, %s7425_s22  ;;  %vm1906_vm2 = vmand %vm1904_vm0, %vm1905_vm1 }
 0x184   : > { %835 = vrot.lane.b32.xlu1 %v7157_v53, %s7425_s22 }
 0x185   : > { %736 = vmatpush1.bf16.msra.mxu0 %v7150_v49 }
 0x186   : > { %6905 = vmatprep.subr.mxu0 %v7426_v58 }
 0x187   : > { %833 = vrot.lane.b32.xlu0 %v7156_v52, %s7425_s22 }
 0x188   : > { %6299 = vmatmul.mubr.msk.bf16.vlgmr.msra.gmra.mrb[0].mxu0 %vm725_vm6, %v684_v54  ;;  %839 = vrot.lane.b32.xlu1 %v7160_v56, %s7425_s22 }
 0x189   : > { %6907 = vmatprep.mubr.msk.f32.mxu0 %vm7427_vm7, %v7426_v58 }
 0x18b   : > { %837 = vrot.lane.b32.xlu0 %v7159_v55, %s7425_s22 }
 0x18f   : > { %841 = vrot.lane.b32.xlu0 %v7162_v57, %s7425_s22 }
 0x1ee   : > { %v830_v60 = vpop.permute.xlu1 %829 }
 0x1f1   : > { %v784_v59 = vpop.permute.xlu0 %783 }
 0x1f2   : > { %v832_v62 = vpop.permute.xlu1 %831 }
 0x1f5   : > { %v828_v61 = vpop.permute.xlu0 %827 }
 0x1f6   : > { %v844_v63 = vsel %vm725_vm6, %v828_v61, %v830_v60  ;;  %v836_v1 = vpop.permute.xlu1 %835 }
 0x1f7   : > { %6874 = vmatpush3.bf16.msra.mxu1 %v844_v63 }
 0x1f8   : > { %6875 = vmatprep.subr.bf16.mxu1 %v7426_v58 }
 0x1f9   : > { %v834_v0 = vpop.permute.xlu0 %833 }
 0x1fa   : > { %v845_v2 = vsel %vm725_vm6, %v832_v62, %v834_v0  ;;  %v840_v5 = vpop.permute.xlu1 %839 }
 0x1fb   : > { %6876 = vmatpush3.bf16.msra.mxu1 %v845_v2 }
 0x1fc   : > { %6877 = vmatprep.subr.bf16.mxu1 %v7426_v58 }
 0x1fd   : > { %v838_v3 = vpop.permute.xlu0 %837 }
 0x1fe   : > { %v846_v4 = vsel %vm725_vm6, %v836_v1, %v838_v3 }
 0x1ff   : > { %6878 = vmatpush3.bf16.msra.mxu1 %v846_v4 }
 0x200   : > { %6879 = vmatprep.subr.bf16.mxu1 %v7426_v58 }
 0x201   : > { %v842_v8 = vpop.permute.xlu0 %841 }
 0x202   : > { %v847_v9 = vsel %vm725_vm6, %v840_v5, %v842_v8 }
 0x203   : > { %6880 = vmatpush3.bf16.msra.mxu1 %v847_v9 }
 0x204   : > { %6885 = vmatprep.subr.mxu1 %v7426_v58 }
 0x206   : > { %6882 = vmatmul.mubr.msk.bf16.vlgmr.msra.gmra.mrb[0].mxu1 %vm725_vm6, %v794_v10 }
 0x207   : > { %6887 = vmatprep.mubr.msk.f32.mxu1 %vm7427_vm7, %v7426_v58 }
 0x25b   : > { %v763_v14 = vpop.f32.mrb[0].mxu0 }
 0x25c   : > { %v786_v16 = vadd.f32 %v784_v59, %v763_v14  ;;  %v765_v17 = vpop.f32.mrb[1].mxu0  ;;  %v776_v26 = vadd.f32 %v775_v25, %v763_v14 }
 0x25d   : > { %v7648_v18 = vadd.f32 %v791_v13, %v765_v17  ;;  %v767_v19 = vpop.f32.mrb[2].mxu0 }
 0x25e   : > { %v787_v20 = vadd.f32 %v784_v59, %v767_v19  ;;  %v769_v21 = vpop.f32.mrb[3].mxu0  ;;  %930 = vrot.lane.b32.xlu1 %v786_v16, %s7425_s22  ;;  %v7663_v27 = vmul.f32 0.25, %v776_v26  ;;  %v777_v28 = vadd.f32 %v775_v25, %v767_v19 }
 0x25f   : > { %v7651_v22 = vadd.f32 %v791_v13, %v769_v21  ;;  %v1285_v23 = vmul.f32 %v7646_v15, %v7648_v18 }
 0x260   : > { %1008 = vrot.lane.b32.xlu0 %v787_v20, %s7425_s22  ;;  %v927_v31 = vmul.f32 %v7666_v29, %v7663_v27  ;;  %v7674_v32 = vmul.f32 0.25, %v777_v28  ;;  %v1115_v40 = vmul.f32 %v7646_v15, %v7663_v27 }
 0x261   : > { %6906 = vmatpush3.msra.mxu0 %v1285_v23  ;;  %v1286_v47 = vmul.f32 %v7646_v15, %v7651_v22 }
 0x262   : > { %6915 = vmatprep.subr.mxu0 %v7426_v58  ;;  %v928_v35 = vmul.f32 %v7666_v29, %v7674_v32  ;;  %v1116_v46 = vmul.f32 %v7646_v15, %v7674_v32 }
 0x2d0   : > { %v7668_v30 = vpop.permute.xlu1 %930 }
 0x2d1   : > { %6886 = vmatpush3.xpose.msk.msra.mxu1 %vm725_vm6, %v7668_v30 }
 0x2d2   : > { %6890 = vmatprep.subr.mxu1 %v7426_v58  ;;  %v7677_v33 = vpop.permute.xlu0 %1008 }
 0x2d4   : > { %6888 = vmatmul.mubr.msk.f32.vlgmr.msra.gmra.mrb[4].mxu1 %vm725_vm6, %v927_v31 }
 0x2d5   : > { %6891 = vmatpush3.xpose.msk.msra.mxu1 %vm725_vm6, %v7677_v33  ;;  %6892 = vmatprep.mubr.msk.f32.mxu1 %vm7427_vm7, %v7426_v58 }
 0x2d6   : > { %6895 = vmatprep.subr.mxu1 %v7426_v58 }
 0x2d8   : > { %6893 = vmatmul.mubr.msk.f32.vlgmr.msra.gmra.mrb[6].mxu1 %vm725_vm6, %v928_v35  ;;  %v1108_v35 = vmul.f32 %v7666_v29, %v7648_v18 }
 0x2d9   : > { %6896 = vmatpush3.xpose.msk.msra.mxu1 %vm725_vm6, %v7668_v30  ;;  %6897 = vmatprep.mubr.msk.f32.mxu1 %vm7427_vm7, %v7426_v58  ;;  %v7698_v39 = vpop.f32.mrb[0].mxu1 }
 0x2da   : > { %6900 = vmatprep.subr.mxu1 %v7426_v58  ;;  %v6883_v42 = vpop.f32.mrb[1].mxu1 }
 0x2db   : > { %v7703_v44 = vpop.f32.mrb[2].mxu1 }
 0x2dc   : > { %6898 = vmatmul.mubr.msk.f32.vlgmr.msra.gmra.mrb[8].mxu1 %vm725_vm6, %v1115_v40  ;;  %v7708_v43 = vadd.f32 %v7692_v37, %v7703_v44  ;;  %v6884_v45 = vpop.f32.mrb[3].mxu1 }
 0x2dd   : > { %6901 = vmatpush3.xpose.msk.msra.mxu1 %vm725_vm6, %v7677_v33  ;;  %6902 = vmatprep.mubr.msk.f32.mxu1 %vm7427_vm7, %v7426_v58  ;;  %v1109_v45 = vmul.f32 %v7666_v29, %v7651_v22 }
 0x2de   : > { %6910 = vmatprep.subr.mxu1 %v7426_v58 }
 0x2e0   : > { %6903 = vmatmul.mubr.msk.f32.vlgmr.msra.gmra.mrb[10].mxu1 %vm725_vm6, %v1116_v46 }
 0x2e1   : > { %6911 = vmatpush3.msra.mxu1 %v1286_v47  ;;  %6912 = vmatprep.mubr.msk.f32.mxu1 %vm7427_vm7, %v7426_v58 }
 0x2e2   : > { %6920 = vmatprep.subr.mxu1 %v7426_v58 }
 0x3a7   : > { %v1003_v48 = vpop.f32.mrb[4].mxu1 }
 0x3a8   : > { %v6889_v49 = vpop.f32.mrb[5].mxu1  ;;  %v1086_v60 = vsel %vm1085_vm12, %v1003_v48, -inf }
 0x3ab   : > { %v1081_v50 = vpop.f32.mrb[6].mxu1 }
 0x3ac   : > { %v6894_v51 = vpop.f32.mrb[7].mxu1  ;;  %v1089_v57 = vsel %vm1085_vm12, %v1081_v50, -inf }
 0x3af   : > { %v1186_v52 = vpop.f32.mrb[8].mxu1 }
 0x3b0   : > { %v6899_v53 = vpop.f32.mrb[9].mxu1  ;;  %v1263_v54 = vsel %vm1085_vm12, %v1186_v52, -inf }
 0x3b1   : > { %1264 = vmax.xlane.f32.xlu1 %v1263_v54 }
 0x3b3   : > { %v1259_v55 = vpop.f32.mrb[10].mxu1 }
 0x3b4   : > { %v6904_v56 = vpop.f32.mrb[11].mxu1  ;;  %v1266_v59 = vsel %vm1085_vm12, %v1259_v55, -inf }
 0x3b5   : > { %1090 = vmax.xlane.f32.xlu1 %v1089_v57  ;;  %1267 = vmax.xlane.f32.xlu0 %v1266_v59 }
 0x3b9   : > { %1087 = vmax.xlane.f32.xlu0 %v1086_v60 }
 0x43e   : > { %v1265_v61 = vpop.xlane.xlu1 %1264 }
 0x43f   : > { %v1269_v62 = vsub.f32 %v1186_v52, %v1265_v61 }
 0x441   : > { %v1271_v63 = vmul.f32 1.442695, %v1269_v62 }
 0x442   : > { %v1091_v0 = vpop.xlane.xlu1 %1090  ;;  %v1268_v1 = vpop.xlane.xlu0 %1267 }
 0x443   : > { %7299 = vpow2.f32 %v1271_v63  ;;  %v1093_v2 = vsub.f32 %v1081_v50, %v1091_v0  ;;  %v1270_v3 = vsub.f32 %v1259_v55, %v1268_v1 }
 0x445   : > { %v1273_v4 = vmul.f32 1.442695, %v1270_v3  ;;  %v1096_v5 = vmul.f32 1.442695, %v1093_v2 }
 0x446   : > { %v1088_v6 = vpop.xlane.xlu0 %1087 }
 0x447   : > { %v1092_v7 = vsub.f32 %v1003_v48, %v1088_v6  ;;  %7301 = vpow2.f32 %v1273_v4  ;;  %v7745_v48 = vsel %vm1581_vm15, 1.0, %v7426_v58 }
 0x448   : > { %7303 = vpow2.f32 %v1096_v5  ;;  %v1584_v50 = vmul.f32 %v7745_v48, %v7663_v27  ;;  %v1754_v52 = vmul.f32 %v7745_v48, %v7648_v18  ;;  %v1585_v53 = vmul.f32 %v7745_v48, %v7674_v32 }
 0x449   : > { %v1094_v8 = vmul.f32 1.442695, %v1092_v7  ;;  %v1755_v54 = vmul.f32 %v7745_v48, %v7651_v22 }
 0x44b   : > { %7305 = vpow2.f32 %v1094_v8 }
 0x44d   : > { %v7300_v9 = vpop.eup %7299 }
 0x44e   : > { %v1275_v10 = vsel %vm1085_vm12, %v7300_v9, 0.0 }
 0x44f   : > { %1276 = vadd.xlane.f32.xlu0 %v1275_v10 }
 0x451   : > { %v7302_v13 = vpop.eup %7301 }
 0x452   : > { %v1278_v14 = vsel %vm1085_vm12, %v7302_v13, 0.0  ;;  %v7304_v16 = vpop.eup %7303 }
 0x453   : > { %1279 = vadd.xlane.f32.xlu1 %v1278_v14  ;;  %v1101_v20 = vsel %vm1085_vm12, %v7304_v16, 0.0  ;;  %v7783_v14 = vsel %vm1906_vm2, 1.0, %v7426_v58 }
 0x455   : > { %v7306_v17 = vpop.eup %7305 }
 0x456   : > { %v1098_v19 = vsel %vm1085_vm12, %v7306_v17, 0.0 }
 0x457   : > { %1099 = vadd.xlane.f32.xlu0 %v1098_v19  ;;  %1102 = vadd.xlane.f32.xlu1 %v1101_v20  ;;  %v2079_v19 = vmul.f32 %v7783_v14, %v7648_v18  ;;  %v2080_v18 = vmul.f32 %v7783_v14, %v7651_v22 }
 0x4dc   : > { %v1277_v21 = vpop.xlane.xlu0 %1276 }
 0x4dd   : > { %7307 = vrcp.f32 %v1277_v21 }
 0x4e0   : > { %v1280_v23 = vpop.xlane.xlu1 %1279 }
 0x4e1   : > { %7309 = vrcp.f32 %v1280_v23 }
 0x4e4   : > { %v1100_v25 = vpop.xlane.xlu0 %1099  ;;  %v1103_v26 = vpop.xlane.xlu1 %1102 }
 0x4e5   : > { %7311 = vrcp.f32 %v1100_v25 }
 0x4e6   : > { %7313 = vrcp.f32 %v1103_v26 }
 0x4e7   : > { %v7308_v28 = vpop.eup %7307 }
 0x4e8   : > { %v1283_v31 = vmul.f32 %v7308_v28, %v7300_v9 }
 0x4ea   : > { %6908 = vmatmul.mubr.msk.f32.vlgmr.msra.gmra.mrb[4].mxu0 %vm1085_vm12, %v1283_v31 }
 0x4eb   : > { %6916 = vmatpush3.msra.mxu0 %v1108_v35  ;;  %6917 = vmatprep.mubr.msk.f32.mxu0 %vm7427_vm7, %v7426_v58  ;;  %v7310_v40 = vpop.eup %7309 }
 0x4ec   : > { %6925 = vmatprep.subr.mxu0 %v7426_v58  ;;  %v1284_v42 = vmul.f32 %v7310_v40, %v7302_v13 }
 0x4ee   : > { %6913 = vmatmul.mubr.msk.f32.vlgmr.msra.gmra.mrb[12].mxu1 %vm1085_vm12, %v1284_v42 }
 0x4ef   : > { %v7312_v46 = vpop.eup %7311  ;;  %6921 = vmatpush3.msra.mxu1 %v1109_v45  ;;  %6922 = vmatprep.mubr.msk.f32.mxu1 %vm7427_vm7, %v7426_v58 }
 0x4f0   : > { %v1106_v47 = vmul.f32 %v7312_v46, %v7306_v17  ;;  %6930 = vmatprep.subr.mxu1 %v7426_v58  ;;  %v7314_v49 = vpop.eup %7313  ;;  %v1909_v17 = vmul.f32 %v7783_v14, %v7663_v27  ;;  %v1910_v27 = vmul.f32 %v7783_v14, %v7674_v32 }
 0x4f1   : > { %v1107_v51 = vmul.f32 %v7314_v49, %v7304_v16 }
 0x4f2   : > { %6918 = vmatmul.mubr.msk.f32.vlgmr.msra.gmra.mrb[4].mxu0 %vm1085_vm12, %v1106_v47 }
 0x4f3   : > { %6926 = vmatpush3.xpose.msk.msra.mxu0 %vm725_vm6, %v7668_v30  ;;  %6927 = vmatprep.mubr.msk.f32.mxu0 %vm7427_vm7, %v7426_v58 }
 0x4f4   : > { %6935 = vmatprep.subr.mxu0 %v7426_v58 }
 0x4f6   : > { %6928 = vmatmul.mubr.msk.f32.vlgmr.msra.gmra.mrb[6].mxu0 %vm725_vm6, %v1584_v50  ;;  %6923 = vmatmul.mubr.msk.f32.vlgmr.msra.gmra.mrb[12].mxu1 %vm1085_vm12, %v1107_v51  ;;  %v7163_v51 = vld [vmem:[%s7511_s27] sm:$0xff]  }
 0x4f7   : > { %6936 = vmatpush3.msra.mxu0 %v1754_v52  ;;  %6931 = vmatpush3.xpose.msk.msra.mxu1 %vm725_vm6, %v7677_v33 }
 0x4f8   : > { %6932 = vmatprep.mubr.msk.f32.mxu1 %vm7427_vm7, %v7426_v58  ;;  %6940 = vmatprep.subr.mxu1 %v7426_v58 }
 0x4f9   : > { %6937 = vmatprep.mubr.msk.f32.mxu0 %vm7427_vm7, %v7426_v58  ;;  %6945 = vmatprep.subr.mxu0 %v7426_v58 }
 0x4fa   : > { %6933 = vmatmul.mubr.msk.f32.vlgmr.msra.gmra.mrb[14].mxu1 %vm725_vm6, %v1585_v53  ;;  %v7164_v53 = vld [vmem:[%s7511_s27 + $0x8] sm:$0xff]  }
 0x4fb   : > { %6941 = vmatpush3.msra.mxu1 %v1755_v54  ;;  %6942 = vmatprep.mubr.msk.f32.mxu1 %vm7427_vm7, %v7426_v58 }
 0x4fc   : > { %6950 = vmatprep.subr.mxu1 %v7426_v58 }
 0x5c9   : > { %v1655_v55 = vpop.f32.mrb[6].mxu0 }
 0x5ca   : > { %v6929_v56 = vpop.f32.mrb[7].mxu0  ;;  %v1732_v57 = vsel %vm1085_vm12, %v1655_v55, -inf }
 0x5cb   : > { %1733 = vmax.xlane.f32.xlu0 %v1732_v57  ;;  %v7165_v56 = vld [vmem:[%s7511_s27 + $0x10] sm:$0xff]   ;;  %v7375_v57 = vld [vmem:[%s7516_s30] ss:$8 sps:$4 sm:$0xff]  }
 0x5cd   : > { %v1728_v59 = vpop.f32.mrb[14].mxu1 }
 0x5ce   : > { %v6934_v60 = vpop.f32.mrb[15].mxu1  ;;  %v1735_v61 = vsel %vm1085_vm12, %v1728_v59, -inf }
 0x5cf   : > { %1736 = vmax.xlane.f32.xlu1 %v1735_v61  ;;  %v7376_v60 = vld [vmem:[%s7516_s30 + $0x10] ss:$8 sps:$4 sm:$0xff]   ;;  %v7377_v61 = vld [vmem:[%s7516_s30 + $0x20] ss:$8 sps:$4 sm:$0xff]  }
 0x658   : > { %v1734_v62 = vpop.xlane.xlu0 %1733 }
 0x659   : > { %v1738_v63 = vsub.f32 %v1655_v55, %v1734_v62  ;;  %v7378_v62 = vld [vmem:[%s7516_s30 + $0x30] ss:$8 sps:$4 sm:$0xff]  }
 0x65b   : > { %v1740_v0 = vmul.f32 1.442695, %v1738_v63 }
 0x65c   : > { %v1737_v1 = vpop.xlane.xlu1 %1736 }
 0x65d   : > { %7315 = vpow2.f32 %v1740_v0  ;;  %v1739_v2 = vsub.f32 %v1728_v59, %v1737_v1  ;;  %v7166_v59 = vld [vmem:[%s7511_s27 + $0x18] sm:$0xff]  }
 0x65f   : > { %v1742_v3 = vmul.f32 1.442695, %v1739_v2 }
 0x661   : > { %7317 = vpow2.f32 %v1742_v3 }
 0x667   : > { %v7316_v4 = vpop.eup %7315 }
 0x668   : > { %v1744_v5 = vsel %vm1085_vm12, %v7316_v4, 0.0 }
 0x669   : > { %1745 = vadd.xlane.f32.xlu0 %v1744_v5  ;;  %v7850_v5 = vsub.s32 3, %v7585_v38 }
 0x66b   : > { %v7318_v6 = vpop.eup %7317 }
 0x66c   : > { %v1747_v7 = vsel %vm1085_vm12, %v7318_v6, 0.0 }
 0x66d   : > { %1748 = vadd.xlane.f32.xlu1 %v1747_v7 }
 0x6f6   : > { %v1746_v8 = vpop.xlane.xlu0 %1745 }
 0x6f7   : > { %7319 = vrcp.f32 %v1746_v8 }
 0x6fa   : > { %v1749_v9 = vpop.xlane.xlu1 %1748 }
 0x6fb   : > { %7321 = vrcp.f32 %v1749_v9 }
 0x701   : > { %v7320_v10 = vpop.eup %7319 }
 0x702   : > { %v1752_v13 = vmul.f32 %v7320_v10, %v7316_v4  ;;  %v7841_v4 = vadd.f32 %v7692_v37, %v7698_v39 }
 0x704   : > { %6938 = vmatmul.mubr.msk.f32.vlgmr.msra.gmra.mrb[4].mxu0 %vm1085_vm12, %v1752_v13 }
 0x705   : > { %6946 = vmatpush3.xpose.msk.msra.mxu0 %vm725_vm6, %v7668_v30  ;;  %6947 = vmatprep.mubr.msk.f32.mxu0 %vm7427_vm7, %v7426_v58  ;;  %v7322_v16 = vpop.eup %7321 }
 0x706   : > { %6955 = vmatprep.subr.mxu0 %v7426_v58  ;;  %v1753_v11 = vmul.f32 %v7322_v16, %v7318_v6  ;;  %v7853_v6 = vld [vmem:[%s7526_s3] sm:$0xff] }
 0x707   : > { %v2233_v7 = vrot.slane %v7853_v6, %v7850_v5 }
 0x708   : > { %6948 = vmatmul.mubr.msk.f32.vlgmr.msra.gmra.mrb[8].mxu0 %vm725_vm6, %v1909_v17  ;;  %6943 = vmatmul.mubr.msk.f32.vlgmr.msra.gmra.mrb[12].mxu1 %vm1085_vm12, %v1753_v11  ;;  %v7380_v17 = vld [vmem:[#allocation2] sm:$0xff] }
 0x709   : > { %6956 = vmatpush3.msra.mxu0 %v2079_v19  ;;  %6951 = vmatpush3.xpose.msk.msra.mxu1 %vm725_vm6, %v7677_v33 }
 0x70a   : > { %6952 = vmatprep.mubr.msk.f32.mxu1 %vm7427_vm7, %v7426_v58  ;;  %6960 = vmatprep.subr.mxu1 %v7426_v58 }
 0x70b   : > { %6957 = vmatprep.mubr.msk.f32.mxu0 %vm7427_vm7, %v7426_v58  ;;  %6965 = vmatprep.subr.bf16.mxu0 %v7426_v58 }
 0x70c   : > { %6953 = vmatmul.mubr.msk.f32.vlgmr.msra.gmra.mrb[16].mxu1 %vm725_vm6, %v1910_v27  ;;  %v7381_v27 = vld [vmem:[#allocation2 + $0x8] sm:$0xff] }
 0x70d   : > { %6961 = vmatpush3.msra.mxu1 %v2080_v18  ;;  %6962 = vmatprep.mubr.msk.f32.mxu1 %vm7427_vm7, %v7426_v58 }
 0x70e   : > { %6977 = vmatprep.subr.bf16.mxu1 %v7426_v58 }
 0x7db   : > { %v1980_v30 = vpop.f32.mrb[8].mxu0 }
 0x7dc   : > { %v6949_v32 = vpop.f32.mrb[9].mxu0  ;;  %v2057_v33 = vsel %vm1085_vm12, %v1980_v30, -inf }
 0x7dd   : > { %2058 = vmax.xlane.f32.xlu0 %v2057_v33 }
 0x7df   : > { %v2053_v20 = vpop.f32.mrb[16].mxu1 }
 0x7e0   : > { %v6954_v21 = vpop.f32.mrb[17].mxu1  ;;  %v2060_v23 = vsel %vm1085_vm12, %v2053_v20, -inf }
 0x7e1   : > { %2061 = vmax.xlane.f32.xlu1 %v2060_v23 }
 0x86a   : > { %v2059_v22 = vpop.xlane.xlu0 %2058 }
 0x86b   : > { %v2063_v25 = vsub.f32 %v1980_v30, %v2059_v22 }
 0x86d   : > { %v2065_v26 = vmul.f32 1.442695, %v2063_v25 }
 0x86e   : > { %v2062_v28 = vpop.xlane.xlu1 %2061 }
 0x86f   : > { %7323 = vpow2.f32 %v2065_v26  ;;  %v2064_v31 = vsub.f32 %v2053_v20, %v2062_v28 }
 0x871   : > { %v2067_v35 = vmul.f32 1.442695, %v2064_v31 }
 0x873   : > { %7325 = vpow2.f32 %v2067_v35 }
 0x879   : > { %v7324_v40 = vpop.eup %7323 }
 0x87a   : > { %v2069_v42 = vsel %vm1085_vm12, %v7324_v40, 0.0 }
 0x87b   : > { %2070 = vadd.xlane.f32.xlu0 %v2069_v42 }
 0x87d   : > { %v7326_v45 = vpop.eup %7325 }
 0x87e   : > { %v2072_v46 = vsel %vm1085_vm12, %v7326_v45, 0.0 }
 0x87f   : > { %2073 = vadd.xlane.f32.xlu1 %v2072_v46 }
 0x908   : > { %v2071_v47 = vpop.xlane.xlu0 %2070 }
 0x909   : > { %7327 = vrcp.f32 %v2071_v47 }
 0x90c   : > { %v2074_v49 = vpop.xlane.xlu1 %2073 }
 0x90d   : > { %7329 = vrcp.f32 %v2074_v49  ;;  %v7862_v49 = vld [vmem:[%s7526_s3 + $0x8] sm:$0xff] }
 0x913   : > { %v7328_v50 = vpop.eup %7327 }
 0x914   : > { %v2077_v52 = vmul.f32 %v7328_v50, %v7324_v40  ;;  %v2334_v50 = vrot.slane %v7862_v49, %v7658_v24 }
 0x916   : > { %6958 = vmatmul.mubr.msk.f32.vlgmr.msra.gmra.mrb[4].mxu0 %vm1085_vm12, %v2077_v52 }
 0x917   : > { %6966 = vmatpush3.bf16.msra.mxu0 %v7163_v51  ;;  %6973 = vmatprep.mubr.msk.bf16.mxu0 %vm7427_vm7, %v7426_v58  ;;  %v7330_v54 = vpop.eup %7329 }
 0x918   : > { %6967 = vmatprep.subr.bf16.mxu0 %v7426_v58  ;;  %v2078_v55 = vmul.f32 %v7330_v54, %v7326_v45 }
 0x91a   : > { %6963 = vmatmul.mubr.msk.f32.vlgmr.msra.gmra.mrb[12].mxu1 %vm1085_vm12, %v2078_v55 }
 0x91b   : > { %6968 = vmatpush3.bf16.msra.mxu0 %v7164_v53  ;;  %6978 = vmatpush3.bf16.msra.mxu1 %v7375_v57 }
 0x91c   : > { %6969 = vmatprep.subr.bf16.mxu0 %v7426_v58  ;;  %6979 = vmatprep.subr.bf16.mxu1 %v7426_v58 }
 0x91d   : > { %6985 = vmatprep.mubr.msk.bf16.mxu1 %vm7427_vm7, %v7426_v58 }
 0x91f   : > { %6970 = vmatpush3.bf16.msra.mxu0 %v7165_v56  ;;  %6980 = vmatpush3.bf16.msra.mxu1 %v7376_v60  ;;  %v2340_v56 = vrot.slane %v7862_v49, %v7590_v41 }
 0x920   : > { %6971 = vmatprep.subr.bf16.mxu0 %v7426_v58  ;;  %6981 = vmatprep.subr.bf16.mxu1 %v7426_v58 }
 0x923   : > { %6972 = vmatpush3.bf16.msra.mxu0 %v7166_v59  ;;  %6982 = vmatpush3.bf16.msra.mxu1 %v7377_v61 }
 0x924   : > { %6989 = vmatprep.subr.mxu0 %v7426_v58  ;;  %6983 = vmatprep.subr.bf16.mxu1 %v7426_v58 }
 0x927   : > { %6984 = vmatpush3.bf16.msra.mxu1 %v7378_v62  ;;  %v2346_v62 = vsub.s32 4, %v7585_v38 }
 0x928   : > { %6994 = vmatprep.subr.mxu1 %v7426_v58 }
 0x9e9   : > { %v2150_v63 = vpop.f32.mrb[4].mxu0 }
 0x9ea   : > { %v6959_v0 = vpop.f32.mrb[5].mxu0 }
 0x9ed   : > { %v2223_v1 = vpop.f32.mrb[12].mxu1 }
 0x9ee   : > { %v2229_v2 = vpack.c.bf16 %v2223_v1, %v2150_v63  ;;  %v6964_v3 = vpop.f32.mrb[13].mxu1  ;;  %v2347_v63 = vrot.slane %v7853_v6, %v2346_v62 }
 0x9f0   : > { %6974 = vmatmul.mubr.msk.bf16.vlgmr.msra.gmra.mrb[12].mxu0 %vm725_vm6, %v2229_v2 }
 0x9f1   : > { %6990 = vmatpush3.xpose.msk.msra.mxu0 %vm725_vm6, %v7841_v4  ;;  %6991 = vmatprep.mubr.msk.f32.mxu0 %vm7427_vm7, %v7426_v58 }
 0x9f2   : > { %6999 = vmatprep.subr.mxu0 %v7426_v58 }
 0xac3   : > { %v2295_v37 = vpop.f32.mrb[12].mxu0 }
 0xac4   : > { %v2296_v8 = vadd.f32 %v2295_v37, %v2233_v7  ;;  %v6975_v9 = vpop.f32.mrb[13].mxu0 }
 0xac5   : > { %v2298_v10 = vpop.f32.mrb[14].mxu0 }
 0xac6   : > { %v2299_v13 = vadd.f32 %v2298_v10, %v2233_v7  ;;  %v6976_v16 = vpop.f32.mrb[15].mxu0  ;;  %v2302_v11 = vadd.f32 %v7380_v17, %v2296_v8 }
 0xac8   : > { %v2304_v19 = vsel %vm725_vm6, %v2302_v11, 0.0  ;;  %v2303_v18 = vadd.f32 %v7381_v27, %v2299_v13 }
 0xac9   : > { %2305 = vadd.xlane.f32.xlu0 %v2304_v19 }
 0xaca   : > { %v2307_v30 = vsel %vm725_vm6, %v2303_v18, 0.0 }
 0xacb   : > { %2308 = vadd.xlane.f32.xlu1 %v2307_v30 }
 0xb56   : > { %v2306_v32 = vpop.xlane.xlu0 %2305 }
 0xb57   : > { %v2311_v33 = vmul.f32 0.015625, %v2306_v32 }
 0xb58   : > { %v2309_v20 = vpop.xlane.xlu1 %2308 }
 0xb59   : > { %v2313_v21 = vsub.f32 %v2302_v11, %v2311_v33  ;;  %v2312_v23 = vmul.f32 0.015625, %v2309_v20 }
 0xb5b   : > { %v2314_v22 = vsub.f32 %v2303_v18, %v2312_v23  ;;  %v2315_v25 = vmul.f32 %v2313_v21, %v2313_v21 }
 0xb5d   : > { %v2317_v26 = vsel %vm725_vm6, %v2315_v25, 0.0  ;;  %v2316_v28 = vmul.f32 %v2314_v22, %v2314_v22 }
 0xb5e   : > { %2318 = vadd.xlane.f32.xlu0 %v2317_v26  ;;  %v904_v26 = vsub.s32 6, %v7585_v38 }
 0xb5f   : > { %v2320_v31 = vsel %vm725_vm6, %v2316_v28, 0.0 }
 0xb60   : > { %2321 = vadd.xlane.f32.xlu1 %v2320_v31  ;;  %v905_v28 = vrot.slane %v7853_v6, %v904_v26 }
 0xbeb   : > { %v2319_v35 = vpop.xlane.xlu0 %2318 }
 0xbec   : > { %v2323_v40 = vmul.f32 0.015625, %v2319_v35 }
 0xbed   : > { %v2322_v42 = vpop.xlane.xlu1 %2321 }
 0xbee   : > { %v2325_v45 = vadd.f32 1e-05, %v2323_v40  ;;  %v2324_v46 = vmul.f32 0.015625, %v2322_v42 }
 0xbf0   : > { %7331 = vrsqrt.f32 %v2325_v45  ;;  %v2326_v47 = vadd.f32 1e-05, %v2324_v46 }
 0xbf2   : > { %7333 = vrsqrt.f32 %v2326_v47 }
 0xbfa   : > { %v7332_v51 = vpop.eup %7331 }
 0xbfb   : > { %v2329_v52 = vmul.f32 %v7332_v51, %v2313_v21 }
 0xbfc   : > { %v7334_v53 = vpop.eup %7333 }
 0xbfd   : > { %v2335_v54 = vmul.f32 %v2334_v50, %v2329_v52  ;;  %v2330_v55 = vmul.f32 %v7334_v53, %v2314_v22 }
 0xbff   : > { %v2336_v57 = vmul.f32 %v2334_v50, %v2330_v55  ;;  %v7868_v59 = vadd.f32 %v2340_v56, %v2335_v54 }
 0xc01   : > { %v7870_v60 = vadd.f32 %v2340_v56, %v2336_v57 }
 0xc03   : > { %v2343_v61 = vpack.c.bf16 %v7870_v60, %v7868_v59 }
 0xc05   : > { %6986 = vmatmul.mubr.msk.bf16.vlgmr.msra.gmra.mrb[20].mxu1 %vm725_vm6, %v2343_v61 }
 0xc06   : > { %6995 = vmatpush3.xpose.msk.msra.mxu1 %vm725_vm6, %v7708_v43  ;;  %6996 = vmatprep.mubr.msk.f32.mxu1 %vm7427_vm7, %v7426_v58 }
 0xc07   : > { %7004 = vmatprep.subr.mxu1 %v7426_v58 }
 0xcd8   : > { %v2389_v0 = vpop.f32.mrb[20].mxu1 }
 0xcd9   : > { %v2390_v1 = vadd.f32 %v2389_v0, %v2347_v63  ;;  %v6987_v2 = vpop.f32.mrb[21].mxu1 }
 0xcda   : > { %v2392_v3 = vpop.f32.mrb[22].mxu1 }
 0xcdb   : > { %v7884_v7 = vmul.f32 0.25, %v2390_v1  ;;  %v2393_v37 = vadd.f32 %v2392_v3, %v2347_v63  ;;  %v6988_v8 = vpop.f32.mrb[23].mxu1 }
 0xcdd   : > { %v2406_v9 = vmul.f32 %v7666_v29, %v7884_v7  ;;  %v7888_v10 = vmul.f32 0.25, %v2393_v37  ;;  %v2588_v16 = vmul.f32 %v7646_v15, %v7884_v7 }
 0xcdf   : > { %6992 = vmatmul.mubr.msk.f32.vlgmr.msra.gmra.mrb[10].mxu0 %vm725_vm6, %v2406_v9  ;;  %v2407_v13 = vmul.f32 %v7666_v29, %v7888_v10  ;;  %v2589_v17 = vmul.f32 %v7646_v15, %v7888_v10 }
 0xce0   : > { %7000 = vmatpush3.xpose.msk.msra.mxu0 %vm725_vm6, %v7841_v4  ;;  %7001 = vmatprep.mubr.msk.f32.mxu0 %vm7427_vm7, %v7426_v58 }
 0xce1   : > { %7009 = vmatprep.subr.mxu0 %v7426_v58  ;;  %6997 = vmatmul.mubr.msk.f32.vlgmr.msra.gmra.mrb[18].mxu1 %vm725_vm6, %v2407_v13 }
 0xce2   : > { %7005 = vmatpush3.xpose.msk.msra.mxu1 %vm725_vm6, %v7708_v43  ;;  %7006 = vmatprep.mubr.msk.f32.mxu1 %vm7427_vm7, %v7426_v58 }
 0xce3   : > { %7002 = vmatmul.mubr.msk.f32.vlgmr.msra.gmra.mrb[16].mxu0 %vm725_vm6, %v2588_v16  ;;  %7014 = vmatprep.subr.mxu1 %v7426_v58 }
 0xce4   : > { %7011 = vmatprep.mubr.msk.f32.mxu0 %vm7427_vm7, %v7426_v58 }
 0xce5   : > { %7007 = vmatmul.mubr.msk.f32.vlgmr.msra.gmra.mrb[24].mxu1 %vm725_vm6, %v2589_v17 }
 0xce6   : > { %7016 = vmatprep.mubr.msk.f32.mxu1 %vm7427_vm7, %v7426_v58 }
 0xdb2   : > { %v2480_v11 = vpop.f32.mrb[10].mxu0 }
 0xdb3   : > { %v6993_v19 = vpop.f32.mrb[11].mxu0  ;;  %v2560_v22 = vsel %vm1085_vm12, %v2480_v11, -inf }
 0xdb4   : > { %v2556_v27 = vpop.f32.mrb[18].mxu1 }
 0xdb5   : > { %v6998_v18 = vpop.f32.mrb[19].mxu1  ;;  %v2563_v25 = vsel %vm1085_vm12, %v2556_v27, -inf }
 0xdb6   : > { %v2659_v30 = vpop.f32.mrb[16].mxu0 }
 0xdb7   : > { %v7003_v32 = vpop.f32.mrb[17].mxu0  ;;  %v2736_v33 = vsel %vm1085_vm12, %v2659_v30, -inf }
 0xdb8   : > { %2737 = vmax.xlane.f32.xlu0 %v2736_v33  ;;  %v2732_v20 = vpop.f32.mrb[24].mxu1 }
 0xdb9   : > { %v7008_v21 = vpop.f32.mrb[25].mxu1  ;;  %v2739_v23 = vsel %vm1085_vm12, %v2732_v20, -inf }
 0xdba   : > { %2740 = vmax.xlane.f32.xlu1 %v2739_v23  ;;  %v3072_v21 = vmul.f32 %v7745_v48, %v7884_v7 }
 0xdbc   : > { %2561 = vmax.xlane.f32.xlu0 %v2560_v22 }
 0xdbe   : > { %2564 = vmax.xlane.f32.xlu1 %v2563_v25 }
 0xdcf   : > { %2759 = vrot.lane.b32.xlu1 %v7646_v15, %s7425_s22 }
 0xdd2   : > { %907 = vrot.lane.b32.xlu0 %v905_v28, %s7425_s22 }
 0xdd3   : > { %2583 = vrot.lane.b32.xlu1 %v7666_v29, %s7425_s22 }
 0xe45   : > { %v2738_v31 = vpop.xlane.xlu0 %2737 }
 0xe46   : > { %v2742_v45 = vsub.f32 %v2659_v30, %v2738_v31 }
 0xe47   : > { %v2741_v35 = vpop.xlane.xlu1 %2740 }
 0xe48   : > { %v2744_v15 = vmul.f32 1.442695, %v2742_v45  ;;  %v2743_v2 = vsub.f32 %v2732_v20, %v2741_v35 }
 0xe49   : > { %v2562_v40 = vpop.xlane.xlu0 %2561 }
 0xe4a   : > { %v2566_v42 = vsub.f32 %v2480_v11, %v2562_v40  ;;  %v2746_v3 = vmul.f32 1.442695, %v2743_v2  ;;  %v3073_v40 = vmul.f32 %v7745_v48, %v7888_v10 }
 0xe4b   : > { %v2565_v47 = vpop.xlane.xlu1 %2564 }
 0xe4c   : > { %v2568_v46 = vmul.f32 1.442695, %v2566_v42  ;;  %v2567_v50 = vsub.f32 %v2556_v27, %v2565_v47 }
 0xe4d   : > { %v908_v51 = vpop.permute.xlu0 %907 }
 0xe4e   : > { %7335 = vpow2.f32 %v2568_v46  ;;  %v7928_v52 = vadd.f32 %v908_v51, %v7698_v39  ;;  %v2570_v53 = vmul.f32 1.442695, %v2567_v50  ;;  %v7938_v37 = vadd.f32 %v908_v51, %v7703_v44 }
 0xe4f   : > { %v2760_v54 = vpop.permute.xlu1 %2759 }
 0xe50   : > { %7337 = vpow2.f32 %v2570_v53  ;;  %v2762_v55 = vmul.f32 %v2760_v54, %v7928_v52  ;;  %v2763_v8 = vmul.f32 %v2760_v54, %v7938_v37 }
 0xe51   : > { %7339 = vpow2.f32 %v2744_v15 }
 0xe52   : > { %2765 = vrot.lane.b32.xlu1 %v2762_v55, %s7425_s22  ;;  %7341 = vpow2.f32 %v2746_v3 }
 0xe53   : > { %v2584_v29 = vpop.permute.xlu1 %2583 }
 0xe54   : > { %v2586_v56 = vmul.f32 %v2584_v29, %v7928_v52  ;;  %v2587_v16 = vmul.f32 %v2584_v29, %v7938_v37 }
 0xe56   : > { %2919 = vrot.lane.b32.xlu1 %v2586_v56, %s7425_s22 }
 0xe58   : > { %v7336_v57 = vpop.eup %7335 }
 0xe59   : > { %v2572_v61 = vsel %vm1085_vm12, %v7336_v57, 0.0 }
 0xe5a   : > { %2573 = vadd.xlane.f32.xlu0 %v2572_v61  ;;  %v7338_v39 = vpop.eup %7337 }
 0xe5b   : > { %v2575_v63 = vsel %vm1085_vm12, %v7338_v39, 0.0  ;;  %v7340_v0 = vpop.eup %7339 }
 0xe5c   : > { %v2748_v1 = vsel %vm1085_vm12, %v7340_v0, 0.0  ;;  %v7342_v9 = vpop.eup %7341 }
 0xe5d   : > { %v2751_v13 = vsel %vm1085_vm12, %v7342_v9, 0.0 }
 0xe5e   : > { %2576 = vadd.xlane.f32.xlu0 %v2575_v63 }
 0xe62   : > { %2749 = vadd.xlane.f32.xlu0 %v2748_v1 }
 0xe78   : > { %2842 = vrot.lane.b32.xlu0 %v2763_v8, %s7425_s22 }
 0xe7a   : > { %2752 = vadd.xlane.f32.xlu1 %v2751_v13 }
 0xe8b   : > { %2996 = vrot.lane.b32.xlu1 %v2587_v16, %s7425_s22 }
 0xec4   : > { %v2766_v17 = vpop.permute.xlu1 %2765 }
 0xec5   : > { %7010 = vmatpush3.msra.mxu0 %v2766_v17 }
 0xec6   : > { %7019 = vmatprep.subr.mxu0 %v7426_v58 }
 0xec8   : > { %v2920_v32 = vpop.permute.xlu1 %2919 }
 0xee7   : > { %v2574_v11 = vpop.xlane.xlu0 %2573 }
 0xeeb   : > { %v2577_v19 = vpop.xlane.xlu0 %2576 }
 0xeef   : > { %v2750_v44 = vpop.xlane.xlu0 %2749 }
 0xef0   : > { %7343 = vrcp.f32 %v2750_v44  ;;  %v3405_v44 = vmul.f32 %v7783_v14, %v7888_v10 }
 0xef1   : > { %7345 = vrcp.f32 %v2574_v11 }
 0xef3   : > { %v2843_v27 = vpop.permute.xlu0 %2842 }
 0xef4   : > { %7015 = vmatpush3.msra.mxu1 %v2843_v27 }
 0xef5   : > { %7024 = vmatprep.subr.mxu1 %v7426_v58 }
 0xefa   : > { %v7344_v18 = vpop.eup %7343 }
 0xefb   : > { %v2756_v30 = vmul.f32 %v7344_v18, %v7340_v0  ;;  %v7346_v33 = vpop.eup %7345 }
 0xefc   : > { %v2580_v20 = vmul.f32 %v7346_v33, %v7336_v57 }
 0xefd   : > { %7012 = vmatmul.mubr.msk.f32.vlgmr.msra.gmra.mrb[18].mxu0 %vm1085_vm12, %v2756_v30 }
 0xefe   : > { %7020 = vmatpush3.msra.mxu0 %v2920_v32  ;;  %7021 = vmatprep.mubr.msk.f32.mxu0 %vm7427_vm7, %v7426_v58 }
 0xeff   : > { %7029 = vmatprep.subr.mxu0 %v7426_v58 }
 0xf05   : > { %7022 = vmatmul.mubr.msk.f32.vlgmr.msra.gmra.mrb[18].mxu0 %vm1085_vm12, %v2580_v20 }
 0xf06   : > { %7030 = vmatpush3.xpose.msk.msra.mxu0 %vm725_vm6, %v7841_v4  ;;  %7031 = vmatprep.mubr.msk.f32.mxu0 %vm7427_vm7, %v7426_v58 }
 0xf07   : > { %7039 = vmatprep.subr.mxu0 %v7426_v58  ;;  %v2753_v23 = vpop.xlane.xlu1 %2752 }
 0xf08   : > { %7347 = vrcp.f32 %v2753_v23 }
 0xf09   : > { %7032 = vmatmul.mubr.msk.f32.vlgmr.msra.gmra.mrb[20].mxu0 %vm725_vm6, %v3072_v21  ;;  %7349 = vrcp.f32 %v2577_v19  ;;  %v3404_v19 = vmul.f32 %v7783_v14, %v7884_v7 }
 0xf0a   : > { %7041 = vmatprep.mubr.msk.f32.mxu0 %vm7427_vm7, %v7426_v58 }
 0xf0b   : > { %v2997_v28 = vpop.permute.xlu1 %2996 }
 0xf12   : > { %v7348_v22 = vpop.eup %7347 }
 0xf13   : > { %v2757_v25 = vmul.f32 %v7348_v22, %v7342_v9  ;;  %v7350_v31 = vpop.eup %7349 }
 0xf14   : > { %v2581_v35 = vmul.f32 %v7350_v31, %v7338_v39 }
 0xf15   : > { %7017 = vmatmul.mubr.msk.f32.vlgmr.msra.gmra.mrb[26].mxu1 %vm1085_vm12, %v2757_v25 }
 0xf16   : > { %7025 = vmatpush3.msra.mxu1 %v2997_v28  ;;  %7026 = vmatprep.mubr.msk.f32.mxu1 %vm7427_vm7, %v7426_v58 }
 0xf17   : > { %7034 = vmatprep.subr.mxu1 %v7426_v58 }
 0xf1d   : > { %7027 = vmatmul.mubr.msk.f32.vlgmr.msra.gmra.mrb[26].mxu1 %vm1085_vm12, %v2581_v35 }
 0xf1e   : > { %7035 = vmatpush3.xpose.msk.msra.mxu1 %vm725_vm6, %v7708_v43  ;;  %7036 = vmatprep.mubr.msk.f32.mxu1 %vm7427_vm7, %v7426_v58 }
 0xf1f   : > { %7044 = vmatprep.subr.mxu1 %v7426_v58 }
 0xf21   : > { %7037 = vmatmul.mubr.msk.f32.vlgmr.msra.gmra.mrb[28].mxu1 %vm725_vm6, %v3073_v40 }
 0xf22   : > { %7046 = vmatprep.mubr.msk.f32.mxu1 %vm7427_vm7, %v7426_v58 }
 0xfdc   : > { %v3143_v42 = vpop.f32.mrb[20].mxu0 }
 0xfdd   : > { %v7033_v45 = vpop.f32.mrb[21].mxu0  ;;  %v3220_v46 = vsel %vm1085_vm12, %v3143_v42, -inf }
 0xfde   : > { %3221 = vmax.xlane.f32.xlu0 %v3220_v46 }
 0xff4   : > { %3243 = vrot.lane.b32.xlu0 %v7745_v48, %s7425_s22  ;;  %v3216_v47 = vpop.f32.mrb[28].mxu1 }
 0xff5   : > { %v7038_v50 = vpop.f32.mrb[29].mxu1  ;;  %v3223_v51 = vsel %vm1085_vm12, %v3216_v47, -inf }
 0xff6   : > { %3224 = vmax.xlane.f32.xlu1 %v3223_v51  ;;  %v7167_v50 = vld [vmem:[%s7521_s14] sm:$0xff]  }
0x106b   : > { %v3222_v53 = vpop.xlane.xlu0 %3221 }
0x106c   : > { %v3226_v15 = vsub.f32 %v3143_v42, %v3222_v53  ;;  %v7168_v53 = vld [vmem:[%s7521_s14 + $0x8] sm:$0xff]  }
0x106e   : > { %v3228_v54 = vmul.f32 1.442695, %v3226_v15 }
0x106f   : > { %v3244_v55 = vpop.permute.xlu0 %3243 }
0x1070   : > { %7351 = vpow2.f32 %v3228_v54  ;;  %v3247_v29 = vmul.f32 %v3244_v55, %v7938_v37  ;;  %v3246_v1 = vmul.f32 %v3244_v55, %v7928_v52  ;;  %v7169_v54 = vld [vmem:[%s7521_s14 + $0x10] sm:$0xff]   ;;  %v7170_v55 = vld [vmem:[%s7521_s14 + $0x18] sm:$0xff]  }
0x1072   : > { %3326 = vrot.lane.b32.xlu0 %v3247_v29, %s7425_s22 }
0x107a   : > { %v7352_v56 = vpop.eup %7351 }
0x107b   : > { %v3232_v57 = vsel %vm1085_vm12, %v7352_v56, 0.0 }
0x107c   : > { %3233 = vadd.xlane.f32.xlu1 %v3232_v57 }
0x1083   : > { %v3225_v61 = vpop.xlane.xlu1 %3224 }
0x1084   : > { %v3227_v48 = vsub.f32 %v3216_v47, %v3225_v61 }
0x1086   : > { %v3230_v39 = vmul.f32 1.442695, %v3227_v48 }
0x1088   : > { %7353 = vpow2.f32 %v3230_v39  ;;  %v3739_v39 = vsub.s32 7, %v7585_v38 }
0x1092   : > { %v7354_v63 = vpop.eup %7353 }
0x1093   : > { %v3235_v0 = vsel %vm1085_vm12, %v7354_v63, 0.0 }
0x1094   : > { %3236 = vadd.xlane.f32.xlu1 %v3235_v0 }
0x10a5   : > { %3249 = vrot.lane.b32.xlu1 %v3246_v1, %s7425_s22 }
0x10e4   : > { %v3327_v2 = vpop.permute.xlu0 %3326 }
0x10e5   : > { %7045 = vmatpush3.msra.mxu1 %v3327_v2 }
0x10e6   : > { %7054 = vmatprep.subr.mxu1 %v7426_v58 }
0x1109   : > { %v3234_v3 = vpop.xlane.xlu1 %3233 }
0x110a   : > { %7355 = vrcp.f32 %v3234_v3 }
0x1114   : > { %v7356_v9 = vpop.eup %7355 }
0x1115   : > { %v3240_v13 = vmul.f32 %v7356_v9, %v7352_v56 }
0x1121   : > { %v3237_v8 = vpop.xlane.xlu1 %3236 }
0x1122   : > { %7357 = vrcp.f32 %v3237_v8 }
0x1125   : > { %v3250_v16 = vpop.permute.xlu1 %3249 }
0x1126   : > { %7040 = vmatpush3.msra.mxu0 %v3250_v16 }
0x1127   : > { %7042 = vmatmul.mubr.msk.f32.vlgmr.msra.gmra.mrb[18].mxu0 %vm1085_vm12, %v3240_v13  ;;  %7049 = vmatprep.subr.mxu0 %v7426_v58 }
0x1128   : > { %7051 = vmatprep.mubr.msk.f32.mxu0 %vm7427_vm7, %v7426_v58 }
0x112c   : > { %v7358_v17 = vpop.eup %7357 }
0x112d   : > { %v3241_v11 = vmul.f32 %v7358_v17, %v7354_v63  ;;  %7050 = vmatpush3.xpose.msk.msra.mxu0 %vm725_vm6, %v7841_v4  ;;  %v3740_v63 = vrot.slane %v7853_v6, %v3739_v39  ;;  %v4133_v39 = vld [vmem:[%s7531_s4 + $0x10] sm:$0xff] }
0x112e   : > { %7059 = vmatprep.subr.mxu0 %v7426_v58 }
0x112f   : > { %7047 = vmatmul.mubr.msk.f32.vlgmr.msra.gmra.mrb[26].mxu1 %vm1085_vm12, %v3241_v11 }
0x1130   : > { %7055 = vmatpush3.xpose.msk.msra.mxu1 %vm725_vm6, %v7708_v43  ;;  %7052 = vmatmul.mubr.msk.f32.vlgmr.msra.gmra.mrb[22].mxu0 %vm725_vm6, %v3404_v19 }
0x1131   : > { %7056 = vmatprep.mubr.msk.f32.mxu1 %vm7427_vm7, %v7426_v58  ;;  %7064 = vmatprep.subr.mxu1 %v7426_v58 }
0x1132   : > { %7061 = vmatprep.mubr.msk.f32.mxu0 %vm7427_vm7, %v7426_v58 }
0x1133   : > { %7057 = vmatmul.mubr.msk.f32.vlgmr.msra.gmra.mrb[30].mxu1 %vm725_vm6, %v3405_v44 }
0x1134   : > { %7066 = vmatprep.mubr.msk.f32.mxu1 %vm7427_vm7, %v7426_v58 }
0x1203   : > { %v3475_v4 = vpop.f32.mrb[22].mxu0 }
0x1204   : > { %v7053_v43 = vpop.f32.mrb[23].mxu0  ;;  %v3552_v7 = vsel %vm1085_vm12, %v3475_v4, -inf }
0x1205   : > { %3553 = vmax.xlane.f32.xlu0 %v3552_v7 }
0x1206   : > { %v3548_v27 = vpop.f32.mrb[30].mxu1 }
0x1207   : > { %v7058_v10 = vpop.f32.mrb[31].mxu1  ;;  %v3555_v18 = vsel %vm1085_vm12, %v3548_v27, -inf }
0x1208   : > { %3556 = vmax.xlane.f32.xlu1 %v3555_v18  ;;  %v3850_v10 = vld [vmem:[%s7531_s4] sm:$0xff] }
0x1209   : > { %v3852_v18 = vld [vmem:[%s7531_s4 + $0x40] sm:$0xff] }
0x121b   : > { %3575 = vrot.lane.b32.xlu0 %v7783_v14, %s7425_s22 }
0x1292   : > { %v3554_v30 = vpop.xlane.xlu0 %3553 }
0x1293   : > { %v3558_v32 = vsub.f32 %v3475_v4, %v3554_v30  ;;  %v3851_v30 = vld [vmem:[%s7531_s4 + $0x8] sm:$0xff] }
0x1295   : > { %v3560_v33 = vmul.f32 1.442695, %v3558_v32  ;;  %v3557_v20 = vpop.xlane.xlu1 %3556  ;;  %v6373_v32 = vcombine.high %v3850_v10, %v3852_v18 }
0x1296   : > { %v3559_v21 = vsub.f32 %v3548_v27, %v3557_v20  ;;  %v3576_v23 = vpop.permute.xlu0 %3575  ;;  %v6372_v20 = vcombine.low %v3850_v10, %v3852_v18 }
0x1297   : > { %7359 = vpow2.f32 %v3560_v33  ;;  %v3579_v22 = vmul.f32 %v3576_v23, %v7938_v37  ;;  %v3578_v40 = vmul.f32 %v3576_v23, %v7928_v52  ;;  %v3853_v33 = vld [vmem:[%s7531_s4 + $0x48] sm:$0xff] }
0x1298   : > { %v3562_v25 = vmul.f32 1.442695, %v3559_v21  ;;  %v6374_v21 = vcombine.low %v3851_v30, %v3853_v33  ;;  %v6375_v23 = vcombine.high %v3851_v30, %v3853_v33  ;;  %v4137_v30 = vld [vmem:[%s7531_s4 + $0x90] sm:$0xff]  ;;  %v4138_v33 = vld [vmem:[%s7531_s4 + $0x98] sm:$0xff] }
0x1299   : > { %3658 = vrot.lane.b32.xlu0 %v3579_v22, %s7425_s22  ;;  %v3854_v22 = vld [vmem:[%s7531_s4 + $0x80] sm:$0xff] }
0x129a   : > { %7361 = vpow2.f32 %v3562_v25  ;;  %v3856_v25 = vld [vmem:[%s7531_s4 + $0xc0] sm:$0xff] }
0x12a1   : > { %v7360_v28 = vpop.eup %7359 }
0x12a2   : > { %v3564_v31 = vsel %vm1085_vm12, %v7360_v28, 0.0 }
0x12a3   : > { %3565 = vadd.xlane.f32.xlu1 %v3564_v31  ;;  %v6377_v31 = vcombine.high %v3854_v22, %v3856_v25 }
0x12a4   : > { %v7362_v35 = vpop.eup %7361 }
0x12a5   : > { %v3567_v14 = vsel %vm1085_vm12, %v7362_v35, 0.0 }
0x12a7   : > { %3568 = vadd.xlane.f32.xlu1 %v3567_v14  ;;  %v6376_v14 = vcombine.low %v3854_v22, %v3856_v25  ;;  %v4141_v25 = vld [vmem:[%s7531_s4 + $0x110] sm:$0xff] }
0x12b8   : > { %3581 = vrot.lane.b32.xlu1 %v3578_v40, %s7425_s22 }
0x130b   : > { %v3659_v42 = vpop.permute.xlu0 %3658 }
0x130c   : > { %7065 = vmatpush3.msra.mxu1 %v3659_v42 }
0x130d   : > { %3971 = vmatprep.subr.bf16.mxu1 %v6373_v32  ;;  %v4139_v32 = vld [vmem:[%s7531_s4 + $0xd0] sm:$0xff] }
0x130e   : > { %v6395_v22 = vcombine.high %v4137_v30, %v4139_v32 }
0x1330   : > { %v3566_v37 = vpop.xlane.xlu1 %3565 }
0x1331   : > { %7363 = vrcp.f32 %v3566_v37  ;;  %v3858_v37 = vld [vmem:[%s7531_s4 + $0x100] sm:$0xff] }
0x1334   : > { %v3569_v45 = vpop.xlane.xlu1 %3568 }
0x1335   : > { %7365 = vrcp.f32 %v3569_v45  ;;  %v3860_v45 = vld [vmem:[%s7531_s4 + $0x140] sm:$0xff] }
0x1338   : > { %v3582_v46 = vpop.permute.xlu1 %3581 }
0x1339   : > { %7060 = vmatpush3.msra.mxu0 %v3582_v46  ;;  %v3859_v46 = vld [vmem:[%s7531_s4 + $0x108] sm:$0xff] }
0x133a   : > { %7069 = vmatprep.subr.bf16.mxu0 %v7426_v58 }
0x133b   : > { %v7364_v47 = vpop.eup %7363 }
0x133c   : > { %v3572_v51 = vmul.f32 %v7364_v47, %v7360_v28  ;;  %v3855_v28 = vld [vmem:[%s7531_s4 + $0x88] sm:$0xff]  ;;  %v6381_v47 = vcombine.high %v3858_v37, %v3860_v45 }
0x133e   : > { %7062 = vmatmul.mubr.msk.f32.vlgmr.msra.gmra.mrb[18].mxu0 %vm1085_vm12, %v3572_v51  ;;  %v6380_v51 = vcombine.low %v3858_v37, %v3860_v45  ;;  %v4145_v37 = vld [vmem:[%s7531_s4 + $0x190] sm:$0xff] }
0x133f   : > { %v7366_v52 = vpop.eup %7365  ;;  %7070 = vmatpush3.bf16.msra.mxu0 %v7167_v50  ;;  %7077 = vmatprep.mubr.msk.bf16.mxu0 %vm7427_vm7, %v7426_v58  ;;  %v3861_v50 = vld [vmem:[%s7531_s4 + $0x148] sm:$0xff]  ;;  %v4147_v45 = vld [vmem:[%s7531_s4 + $0x1d0] sm:$0xff] }
0x1340   : > { %v3573_v15 = vmul.f32 %v7366_v52, %v7362_v35  ;;  %7071 = vmatprep.subr.bf16.mxu0 %v7426_v58  ;;  %v3857_v35 = vld [vmem:[%s7531_s4 + $0xc8] sm:$0xff]  ;;  %v6382_v52 = vcombine.low %v3859_v46, %v3861_v50 }
0x1341   : > { %v6378_v40 = vcombine.low %v3855_v28, %v3857_v35  ;;  %v6379_v42 = vcombine.high %v3855_v28, %v3857_v35  ;;  %v4142_v28 = vld [vmem:[%s7531_s4 + $0x118] sm:$0xff]  ;;  %v6394_v35 = vcombine.low %v4137_v30, %v4139_v32 }
0x1342   : > { %7067 = vmatmul.mubr.msk.f32.vlgmr.msra.gmra.mrb[26].mxu1 %vm1085_vm12, %v3573_v15  ;;  %v3862_v15 = vld [vmem:[%s7531_s4 + $0x180] sm:$0xff]  ;;  %v7199_v30 = vld [vmem:[%s7541_s5 + $0x178] sm:$0xff]  }
0x1343   : > { %7072 = vmatpush3.bf16.msra.mxu0 %v7168_v53  ;;  %4003 = vmatprep.mubr.bf16.mxu1 %v7424_v36  ;;  %v6383_v53 = vcombine.high %v3859_v46, %v3861_v50  ;;  %v4146_v46 = vld [vmem:[%s7531_s4 + $0x198] sm:$0xff] }
0x1344   : > { %7073 = vmatprep.subr.bf16.mxu0 %v7426_v58  ;;  %3972 = vmatpush1.bf16.msra.mxu1 %v6372_v20  ;;  %v4140_v20 = vld [vmem:[%s7531_s4 + $0xd8] sm:$0xff] }
0x1345   : > { %3973 = vmatprep.subr.bf16.mxu1 %v6377_v31  ;;  %v4144_v31 = vld [vmem:[%s7531_s4 + $0x158] sm:$0xff] }
0x1346   : > { %v7200_v32 = vld [vmem:[%s7541_s5 + $0x1f8] sm:$0xff]  }
0x1347   : > { %7074 = vmatpush3.bf16.msra.mxu0 %v7169_v54  ;;  %v3864_v54 = vld [vmem:[%s7531_s4 + $0x1c0] sm:$0xff] }
0x1348   : > { %7075 = vmatprep.subr.bf16.mxu0 %v7426_v58  ;;  %3974 = vmatpush1.bf16.msra.mxu1 %v6376_v14  ;;  %v6396_v14 = vcombine.low %v4138_v33, %v4140_v20 }
0x1349   : > { %3975 = vmatprep.subr.bf16.mxu1 %v6381_v47  ;;  %v4148_v47 = vld [vmem:[%s7531_s4 + $0x1d8] sm:$0xff] }
0x134b   : > { %7076 = vmatpush3.bf16.msra.mxu0 %v7170_v55  ;;  %v3863_v55 = vld [vmem:[%s7531_s4 + $0x188] sm:$0xff] }
0x134c   : > { %4014 = vmatprep.subr.bf16.mxu0 %v6375_v23  ;;  %3976 = vmatpush1.bf16.msra.mxu1 %v6380_v51  ;;  %v6400_v51 = vcombine.low %v4142_v28, %v4144_v31 }
0x1411   : > { %v3653_v29 = vpop.f32.mrb[18].mxu0 }
0x1412   : > { %v7063_v56 = vpop.f32.mrb[19].mxu0 }
0x1413   : > { %v3865_v56 = vld [vmem:[%s7531_s4 + $0x1c8] sm:$0xff] }
0x1415   : > { %v3730_v57 = vpop.f32.mrb[26].mxu1 }
0x1416   : > { %v3736_v61 = vpack.c.bf16 %v3730_v57, %v3653_v29  ;;  %v7068_v48 = vpop.f32.mrb[27].mxu1  ;;  %v6385_v29 = vcombine.high %v3862_v15, %v3864_v54  ;;  %v6384_v57 = vcombine.low %v3862_v15, %v3864_v54  ;;  %v6402_v15 = vcombine.low %v4145_v37, %v4147_v45 }
0x1417   : > { %v6387_v48 = vcombine.high %v3863_v55, %v3865_v56  ;;  %v6404_v54 = vcombine.low %v4146_v46, %v4148_v47 }
0x1418   : > { %7078 = vmatmul.mubr.msk.bf16.vlgmr.msra.gmra.mrb[24].mxu0 %vm725_vm6, %v3736_v61  ;;  %v6386_v61 = vcombine.low %v3863_v55, %v3865_v56  ;;  %3977 = vmatprep.subr.bf16.mxu1 %v6385_v29  ;;  %v7171_v55 = vld [vmem:[%s7541_s5 + $0x140] sm:$0xff]  }
0x1419   : > { %4046 = vmatprep.mubr.bf16.mxu0 %v7424_v36  ;;  %4015 = vmatpush1.bf16.msra.mxu0 %v6374_v21  ;;  %v7172_v29 = vld [vmem:[%s7541_s5 + $0x1c0] sm:$0xff]  }
0x141a   : > { %4016 = vmatprep.subr.bf16.mxu0 %v6379_v42  ;;  %3978 = vmatpush1.bf16.msra.mxu1 %v6384_v57  ;;  %v6401_v42 = vcombine.high %v4142_v28, %v4144_v31  ;;  %v7173_v56 = vld [vmem:[%s7541_s5 + $0x100] sm:$0xff]  }
0x141b   : > { %v7174_v57 = vld [vmem:[%s7541_s5 + $0x180] sm:$0xff]  }
0x141d   : > { %4017 = vmatpush1.bf16.msra.mxu0 %v6378_v40 }
0x141e   : > { %4018 = vmatprep.subr.bf16.mxu0 %v6383_v53  ;;  %v6405_v53 = vcombine.high %v4146_v46, %v4148_v47 }
0x1421   : > { %4019 = vmatpush1.bf16.msra.mxu0 %v6382_v52  ;;  %v6403_v52 = vcombine.high %v4145_v37, %v4147_v45 }
0x1422   : > { %4020 = vmatprep.subr.bf16.mxu0 %v6387_v48  ;;  %v7176_v48 = vld [vmem:[%s7541_s5 + $0x1c8] sm:$0xff]  }
0x1425   : > { %4021 = vmatpush1.bf16.msra.mxu0 %v6386_v61  ;;  %v7175_v61 = vld [vmem:[%s7541_s5 + $0x148] sm:$0xff]  }
0x14eb   : > { %v3802_v0 = vpop.f32.mrb[24].mxu0 }
0x14ec   : > { %v3803_v1 = vadd.f32 %v3802_v0, %v3740_v63  ;;  %v7079_v2 = vpop.f32.mrb[25].mxu0  ;;  %v4134_v0 = vld [vmem:[%s7531_s4 + $0x18] sm:$0xff] }
0x14ed   : > { %v3805_v3 = vpop.f32.mrb[26].mxu0 }
0x14ee   : > { %v3806_v58 = vadd.f32 %v3805_v3, %v3740_v63  ;;  %v7080_v8 = vpop.f32.mrb[27].mxu0  ;;  %v3809_v9 = vadd.f32 %v3803_v1, %v7868_v59  ;;  %v4135_v63 = vld [vmem:[%s7531_s4 + $0x50] sm:$0xff]  ;;  %v4136_v3 = vld [vmem:[%s7531_s4 + $0x58] sm:$0xff] }
0x14ef   : > { %v6390_v1 = vcombine.low %v4133_v39, %v4135_v63  ;;  %v6391_v2 = vcombine.high %v4133_v39, %v4135_v63  ;;  %v6393_v8 = vcombine.high %v4134_v0, %v4136_v3  ;;  %v7177_v39 = vld [vmem:[%s7541_s5 + $0x108] sm:$0xff]  }
0x14f0   : > { %v3811_v13 = vsel %vm725_vm6, %v3809_v9, 0.0  ;;  %v3810_v16 = vadd.f32 %v3806_v58, %v7870_v60  ;;  %v6392_v58 = vcombine.low %v4134_v0, %v4136_v3  ;;  %v7178_v63 = vld [vmem:[%s7541_s5 + $0x188] sm:$0xff]   ;;  %v7179_v0 = vld [vmem:[%s7541_s5 + $0x150] sm:$0xff]  }
0x14f1   : > { %3812 = vadd.xlane.f32.xlu0 %v3811_v13  ;;  %4251 = vmatprep.subr.bf16.mxu1 %v6391_v2  ;;  %v7181_v2 = vld [vmem:[%s7541_s5 + $0x110] sm:$0xff]  }
0x14f2   : > { %v3814_v17 = vsel %vm725_vm6, %v3810_v16, 0.0  ;;  %4294 = vmatprep.subr.bf16.mxu0 %v6393_v8  ;;  %v7182_v3 = vld [vmem:[%s7541_s5 + $0x190] sm:$0xff]   ;;  %v7184_v8 = vld [vmem:[%s7541_s5 + $0x1d8] sm:$0xff]  }
0x14f3   : > { %3815 = vadd.xlane.f32.xlu1 %v3814_v17 }
0x157e   : > { %v3813_v6 = vpop.xlane.xlu0 %3812 }
0x157f   : > { %v3817_v11 = vmul.f32 0.015625, %v3813_v6 }
0x1580   : > { %v3816_v19 = vpop.xlane.xlu1 %3815 }
0x1581   : > { %v8042_v44 = vsub.f32 %v3809_v9, %v3817_v11  ;;  %v3818_v4 = vmul.f32 0.015625, %v3816_v19 }
0x1583   : > { %v8044_v43 = vsub.f32 %v3810_v16, %v3818_v4  ;;  %v3821_v59 = vmul.f32 %v8042_v44, %v8042_v44  ;;  %v3840_v4 = vrot.slane %v7862_v49, %v7639_v12 }
0x1585   : > { %v3823_v60 = vsel %vm725_vm6, %v3821_v59, 0.0  ;;  %v3822_v7 = vmul.f32 %v8044_v43, %v8044_v43 }
0x1586   : > { %3824 = vadd.xlane.f32.xlu0 %v3823_v60 }
0x1587   : > { %v3826_v27 = vsel %vm725_vm6, %v3822_v7, 0.0  ;;  %v3846_v7 = vrot.slane %v7862_v49, %v7850_v5  ;;  %v6397_v49 = vcombine.high %v4138_v33, %v4140_v20  ;;  %v7201_v33 = vld [vmem:[%s7541_s5 + $0x138] sm:$0xff]  }
0x1588   : > { %v7202_v20 = vld [vmem:[%s7541_s5 + $0x1b8] sm:$0xff]  }
0x158a   : > { %3827 = vadd.xlane.f32.xlu0 %v3826_v27 }
0x1613   : > { %v3825_v9 = vpop.xlane.xlu0 %3824 }
0x1614   : > { %v3829_v13 = vmul.f32 0.015625, %v3825_v9  ;;  %v7185_v9 = vld [vmem:[%s7541_s5 + $0x118] sm:$0xff]  }
0x1616   : > { %v3831_v16 = vadd.f32 1e-05, %v3829_v13  ;;  %v7186_v13 = vld [vmem:[%s7541_s5 + $0x198] sm:$0xff]  }
0x1617   : > { %v3828_v17 = vpop.xlane.xlu0 %3827 }
0x1618   : > { %7367 = vrsqrt.f32 %v3831_v16  ;;  %v3830_v6 = vmul.f32 0.015625, %v3828_v17  ;;  %v7187_v16 = vld [vmem:[%s7541_s5 + $0x160] sm:$0xff]  }
0x1619   : > { %v7188_v17 = vld [vmem:[%s7541_s5 + $0x1e0] sm:$0xff]  }
0x161a   : > { %v3832_v11 = vadd.f32 1e-05, %v3830_v6  ;;  %v7189_v6 = vld [vmem:[%s7541_s5 + $0x120] sm:$0xff]  }
0x161c   : > { %7369 = vrsqrt.f32 %v3832_v11  ;;  %v7190_v11 = vld [vmem:[%s7541_s5 + $0x1a0] sm:$0xff]  }
0x1622   : > { %v7368_v19 = vpop.eup %7367 }
0x1623   : > { %v3835_v59 = vmul.f32 %v7368_v19, %v8042_v44  ;;  %v7191_v19 = vld [vmem:[%s7541_s5 + $0x168] sm:$0xff]  }
0x1625   : > { %v3841_v27 = vmul.f32 %v3840_v4, %v3835_v59  ;;  %v7193_v59 = vld [vmem:[%s7541_s5 + $0x128] sm:$0xff]  }
0x1626   : > { %v7370_v60 = vpop.eup %7369 }
0x1627   : > { %v3836_v10 = vmul.f32 %v7370_v60, %v8044_v43  ;;  %v8082_v21 = vadd.f32 %v3846_v7, %v3841_v27  ;;  %v4143_v43 = vld [vmem:[%s7531_s4 + $0x150] sm:$0xff]  ;;  %v7194_v60 = vld [vmem:[%s7541_s5 + $0x1a8] sm:$0xff]  }
0x1628   : > { %v6399_v40 = vcombine.high %v4141_v25, %v4143_v43  ;;  %v6398_v50 = vcombine.low %v4141_v25, %v4143_v43  ;;  %v7196_v27 = vld [vmem:[%s7541_s5 + $0x1f0] sm:$0xff]   ;;  %v3866_v25 = vld [vmem:[%s7536_s29] sm:$0xf] }
0x1629   : > { %v3842_v18 = vmul.f32 %v3840_v4, %v3836_v10  ;;  %v7192_v4 = vld [vmem:[%s7541_s5 + $0x1e8] sm:$0xff]   ;;  %v7197_v10 = vld [vmem:[%s7541_s5 + $0x130] sm:$0xff]   ;;  %v3871_v43 = vrot.slane %v3866_v25, %v7658_v24  ;;  %v3879_v28 = vrot.slane %v3866_v25, %v7639_v12  ;;  %v3875_v31 = vrot.slane %v3866_v25, %v7590_v41 }
0x162b   : > { %v8084_v23 = vadd.f32 %v3846_v7, %v3842_v18  ;;  %v7195_v7 = vld [vmem:[%s7541_s5 + $0x170] sm:$0xff]  }
0x162c   : > { %v7198_v18 = vld [vmem:[%s7541_s5 + $0x1b0] sm:$0xff]  }
0x162d   : > { %v8088_v44 = vpack.c.bf16 %v8084_v23, %v8082_v21 }
0x162f   : > { %6388 = vmatmul.mubr.msk.bf16.vlgmr.msra.gmra.mrb[32].mxu1 %vm725_vm6, %v8088_v44  ;;  %6389 = vmatmul.mubr.msk.bf16.vlgmr.msra.gmra.mrb[28].mxu0 %vm725_vm6, %v8088_v44 }
0x1630   : > { %4252 = vmatpush1.bf16.msra.mxu1 %v6390_v1  ;;  %4295 = vmatpush1.bf16.msra.mxu0 %v6392_v58  ;;  %v7180_v1 = vld [vmem:[%s7541_s5 + $0x1d0] sm:$0xff]   ;;  %v7183_v58 = vld [vmem:[%s7541_s5 + $0x158] sm:$0xff]  }
0x1631   : > { %4253 = vmatprep.subr.bf16.mxu1 %v6395_v22  ;;  %4296 = vmatprep.subr.bf16.mxu0 %v6397_v49  ;;  %v7203_v22 = vld [vmem:[%s7541_s5 + $0x40] sm:$0xff]  }
0x1632   : > { %4283 = vmatprep.mubr.bf16.mxu1 %v7424_v36  ;;  %4326 = vmatprep.mubr.bf16.mxu0 %v7424_v36  ;;  %v7204_v49 = vld [vmem:[%s7541_s5 + $0xc0] sm:$0xff]  }
0x1634   : > { %4254 = vmatpush1.bf16.msra.mxu1 %v6394_v35  ;;  %4297 = vmatpush1.bf16.msra.mxu0 %v6396_v14  ;;  %v3883_v35 = vrot.slane %v3866_v25, %v7850_v5 }
0x1635   : > { %4255 = vmatprep.subr.bf16.mxu1 %v6399_v40  ;;  %4298 = vmatprep.subr.bf16.mxu0 %v6401_v42 }
0x1638   : > { %4256 = vmatpush1.bf16.msra.mxu1 %v6398_v50  ;;  %4299 = vmatpush1.bf16.msra.mxu0 %v6400_v51 }
0x1639   : > { %4257 = vmatprep.subr.bf16.mxu1 %v6403_v52  ;;  %4300 = vmatprep.subr.bf16.mxu0 %v6405_v53 }
0x163c   : > { %4258 = vmatpush1.bf16.msra.mxu1 %v6402_v15  ;;  %4301 = vmatpush1.bf16.msra.mxu0 %v6404_v54 }
0x163d   : > { %6677 = vmatprep.subr.bf16.mxu1 %v7171_v55  ;;  %6699 = vmatprep.subr.bf16.mxu0 %v7172_v29 }
0x163f   : > { %6406 = vmatmul.mubr.msk.bf16.vlgmr.msra.gmra.mrb[36].mxu1 %vm725_vm6, %v8088_v44  ;;  %6407 = vmatmul.mubr.msk.bf16.vlgmr.msra.gmra.mrb[32].mxu0 %vm725_vm6, %v8088_v44 }
0x1640   : > { %6678 = vmatpush3.bf16.msra.mxu1 %v7173_v56  ;;  %6700 = vmatpush3.bf16.msra.mxu0 %v7174_v57 }
0x1641   : > { %6679 = vmatprep.subr.bf16.mxu1 %v7175_v61  ;;  %6701 = vmatprep.subr.bf16.mxu0 %v7176_v48 }
0x1644   : > { %6680 = vmatpush3.bf16.msra.mxu1 %v7177_v39  ;;  %6702 = vmatpush3.bf16.msra.mxu0 %v7178_v63 }
0x1645   : > { %6681 = vmatprep.subr.bf16.mxu1 %v7179_v0  ;;  %6703 = vmatprep.subr.bf16.mxu0 %v7180_v1 }
0x1648   : > { %6682 = vmatpush3.bf16.msra.mxu1 %v7181_v2  ;;  %6704 = vmatpush3.bf16.msra.mxu0 %v7182_v3 }
0x1649   : > { %6683 = vmatprep.subr.bf16.mxu1 %v7183_v58  ;;  %6705 = vmatprep.subr.bf16.mxu0 %v7184_v8 }
0x164c   : > { %6684 = vmatpush3.bf16.msra.mxu1 %v7185_v9  ;;  %6706 = vmatpush3.bf16.msra.mxu0 %v7186_v13  ;;  %v4149_v13 = vld [vmem:[%s7536_s29 + $0x4] sm:$0xf] }
0x164d   : > { %6685 = vmatprep.subr.bf16.mxu1 %v7187_v16  ;;  %6707 = vmatprep.subr.bf16.mxu0 %v7188_v17  ;;  %v4154_v16 = vrot.slane %v4149_v13, %v7658_v24  ;;  %v4162_v17 = vrot.slane %v4149_v13, %v7639_v12 }
0x1650   : > { %6686 = vmatpush3.bf16.msra.mxu1 %v7189_v6  ;;  %6708 = vmatpush3.bf16.msra.mxu0 %v7190_v11  ;;  %v4158_v6 = vrot.slane %v4149_v13, %v7590_v41  ;;  %v4166_v11 = vrot.slane %v4149_v13, %v7850_v5  ;;  %v7222_v13 = vld [vmem:[%s7541_s5 + $0xa0] sm:$0xff]  }
0x1651   : > { %6687 = vmatprep.subr.bf16.mxu1 %v7191_v19  ;;  %6709 = vmatprep.subr.bf16.mxu0 %v7192_v4 }
0x1654   : > { %6688 = vmatpush3.bf16.msra.mxu1 %v7193_v59  ;;  %6710 = vmatpush3.bf16.msra.mxu0 %v7194_v60 }
0x1655   : > { %6689 = vmatprep.subr.bf16.mxu1 %v7195_v7  ;;  %6711 = vmatprep.subr.bf16.mxu0 %v7196_v27 }
0x1658   : > { %6690 = vmatpush3.bf16.msra.mxu1 %v7197_v10  ;;  %6712 = vmatpush3.bf16.msra.mxu0 %v7198_v18 }
0x1659   : > { %6691 = vmatprep.subr.bf16.mxu1 %v7199_v30  ;;  %6713 = vmatprep.subr.bf16.mxu0 %v7200_v32 }
0x165c   : > { %6692 = vmatpush3.bf16.msra.mxu1 %v7201_v33  ;;  %6714 = vmatpush3.bf16.msra.mxu0 %v7202_v20 }
0x165d   : > { %6721 = vmatprep.subr.bf16.mxu1 %v7203_v22  ;;  %6743 = vmatprep.subr.bf16.mxu0 %v7204_v49 }
0x1702   : > { %v4005_v14 = vpop.f32.mrb[32].mxu1  ;;  %v4048_v40 = vpop.f32.mrb[28].mxu0 }
0x1703   : > { %v4006_v42 = vadd.f32 %v4005_v14, %v3871_v43  ;;  %v4049_v37 = vadd.f32 %v4048_v40, %v3879_v28  ;;  %v4007_v45 = vpop.f32.mrb[33].mxu1  ;;  %v4050_v46 = vpop.f32.mrb[29].mxu0 }
0x1704   : > { %v4008_v47 = vadd.f32 %v4007_v45, %v3875_v31  ;;  %v4051_v50 = vadd.f32 %v4050_v46, %v3883_v35  ;;  %v4009_v51 = vpop.f32.mrb[34].mxu1  ;;  %v4052_v52 = vpop.f32.mrb[30].mxu0 }
0x1705   : > { %v4010_v53 = vadd.f32 %v4009_v51, %v3871_v43  ;;  %v4053_v15 = vadd.f32 %v4052_v52, %v3879_v28  ;;  %v4011_v54 = vpop.f32.mrb[35].mxu1  ;;  %v4054_v55 = vpop.f32.mrb[31].mxu0  ;;  %v4057_v57 = vmax.f32 %v4006_v42, 0.0  ;;  %v4059_v61 = vmax.f32 %v4049_v37, 0.0  ;;  %v7205_v52 = vld [vmem:[%s7541_s5] sm:$0xff]  }
0x1706   : > { %v4012_v29 = vadd.f32 %v4011_v54, %v3875_v31  ;;  %v4055_v56 = vadd.f32 %v4054_v55, %v3883_v35  ;;  %v4058_v63 = vmax.f32 %v4008_v47, 0.0  ;;  %v4060_v0 = vmax.f32 %v4051_v50, 0.0  ;;  %v7208_v54 = vld [vmem:[%s7541_s5 + $0xc8] sm:$0xff]  }
0x1707   : > { %v4061_v48 = vmax.f32 %v4010_v53, 0.0  ;;  %v4063_v39 = vmax.f32 %v4053_v15, 0.0  ;;  %v7206_v53 = vld [vmem:[%s7541_s5 + $0x80] sm:$0xff]   ;;  %v7207_v15 = vld [vmem:[%s7541_s5 + $0x48] sm:$0xff]  }
0x1708   : > { %v4062_v1 = vmax.f32 %v4012_v29, 0.0  ;;  %v4064_v2 = vmax.f32 %v4055_v56, 0.0  ;;  %v7209_v55 = vld [vmem:[%s7541_s5 + $0x8] sm:$0xff]   ;;  %v7211_v56 = vld [vmem:[%s7541_s5 + $0x50] sm:$0xff]  }
0x1709   : > { %v8147_v3 = vpack.c.bf16 %v4061_v48, %v4057_v57  ;;  %v8149_v58 = vpack.c.bf16 %v4063_v39, %v4059_v61  ;;  %v7210_v29 = vld [vmem:[%s7541_s5 + $0x88] sm:$0xff]   ;;  %v7212_v57 = vld [vmem:[%s7541_s5 + $0xd0] sm:$0xff]   ;;  %v7215_v39 = vld [vmem:[%s7541_s5 + $0x58] sm:$0xff]  }
0x170a   : > { %v4066_v8 = vpack.c.bf16 %v4062_v1, %v4058_v63  ;;  %v4068_v9 = vpack.c.bf16 %v4064_v2, %v4060_v0  ;;  %v7213_v61 = vld [vmem:[%s7541_s5 + $0x10] sm:$0xff]   ;;  %v7216_v63 = vld [vmem:[%s7541_s5 + $0xd8] sm:$0xff]   ;;  %v7219_v2 = vld [vmem:[%s7541_s5 + $0x60] sm:$0xff]  }
0x170b   : > { %v7214_v48 = vld [vmem:[%s7541_s5 + $0x90] sm:$0xff]   ;;  %v7217_v0 = vld [vmem:[%s7541_s5 + $0x18] sm:$0xff]  }
0x170c   : > { %v7218_v1 = vld [vmem:[%s7541_s5 + $0x98] sm:$0xff]  }
0x1712   : > { %v4285_v19 = vpop.f32.mrb[36].mxu1  ;;  %v4328_v4 = vpop.f32.mrb[32].mxu0 }
0x1713   : > { %v4286_v59 = vadd.f32 %v4285_v19, %v4154_v16  ;;  %v4329_v60 = vadd.f32 %v4328_v4, %v4162_v17  ;;  %v4287_v7 = vpop.f32.mrb[37].mxu1  ;;  %v4330_v27 = vpop.f32.mrb[33].mxu0  ;;  %v7227_v19 = vld [vmem:[%s7541_s5 + $0x70] sm:$0xff]  }
0x1714   : > { %v4288_v10 = vadd.f32 %v4287_v7, %v4158_v6  ;;  %v4331_v18 = vadd.f32 %v4330_v27, %v4166_v11  ;;  %v4289_v30 = vpop.f32.mrb[38].mxu1  ;;  %v4332_v32 = vpop.f32.mrb[34].mxu0  ;;  %v7228_v4 = vld [vmem:[%s7541_s5 + $0xf0] sm:$0xff]   ;;  %v7231_v7 = vld [vmem:[%s7541_s5 + $0x78] sm:$0xff]  }
0x1715   : > { %v4290_v33 = vadd.f32 %v4289_v30, %v4154_v16  ;;  %v4333_v20 = vadd.f32 %v4332_v32, %v4162_v17  ;;  %v4291_v22 = vpop.f32.mrb[39].mxu1  ;;  %v4334_v49 = vpop.f32.mrb[35].mxu0  ;;  %v4337_v28 = vmax.f32 %v4286_v59, 0.0  ;;  %v4339_v31 = vmax.f32 %v4329_v60, 0.0  ;;  %v7223_v16 = vld [vmem:[%s7541_s5 + $0x68] sm:$0xff]   ;;  %v7229_v59 = vld [vmem:[%s7541_s5 + $0x30] sm:$0xff]  }
0x1716   : > { %v4292_v25 = vadd.f32 %v4291_v22, %v4158_v6  ;;  %v4335_v43 = vadd.f32 %v4334_v49, %v4166_v11  ;;  %v4338_v40 = vmax.f32 %v4288_v10, 0.0  ;;  %v4340_v42 = vmax.f32 %v4331_v18, 0.0  ;;  %v7224_v17 = vld [vmem:[%s7541_s5 + $0xe8] sm:$0xff]   ;;  %v7230_v60 = vld [vmem:[%s7541_s5 + $0xb0] sm:$0xff]   ;;  %v7232_v27 = vld [vmem:[%s7541_s5 + $0xf8] sm:$0xff]  }
0x1717   : > { %v4341_v35 = vmax.f32 %v4290_v33, 0.0  ;;  %v4343_v14 = vmax.f32 %v4333_v20, 0.0  ;;  %v7225_v6 = vld [vmem:[%s7541_s5 + $0x28] sm:$0xff]   ;;  %v4961_v10 = vld [vmem:[%s7531_s4 + $0x20] sm:$0xff]  ;;  %v7233_v33 = vld [vmem:[%s7541_s5 + $0x38] sm:$0xff]  }
0x1718   : > { %v4342_v37 = vmax.f32 %v4292_v25, 0.0  ;;  %v4344_v45 = vmax.f32 %v4335_v43, 0.0  ;;  %v7226_v11 = vld [vmem:[%s7541_s5 + $0xa8] sm:$0xff]   ;;  %v4963_v18 = vld [vmem:[%s7531_s4 + $0x60] sm:$0xff]  ;;  %v7234_v20 = vld [vmem:[%s7541_s5 + $0xb8] sm:$0xff]  }
0x1719   : > { %v4345_v46 = vpack.c.bf16 %v4341_v35, %v4337_v28  ;;  %v4347_v47 = vpack.c.bf16 %v4343_v14, %v4339_v31  ;;  %v4962_v30 = vld [vmem:[%s7531_s4 + $0x28] sm:$0xff]  ;;  %v6473_v22 = vcombine.high %v4961_v10, %v4963_v18  ;;  %v4965_v25 = vld [vmem:[%s7531_s4 + $0xa0] sm:$0xff]  ;;  %v6472_v35 = vcombine.low %v4961_v10, %v4963_v18 }
0x171a   : > { %v4346_v50 = vpack.c.bf16 %v4342_v37, %v4338_v40  ;;  %v4348_v51 = vpack.c.bf16 %v4344_v45, %v4340_v42  ;;  %v4964_v32 = vld [vmem:[%s7531_s4 + $0x68] sm:$0xff]  ;;  %v4967_v43 = vld [vmem:[%s7531_s4 + $0xe0] sm:$0xff] }
0x171b   : > { %v6475_v49 = vcombine.high %v4962_v30, %v4964_v32  ;;  %v4966_v28 = vld [vmem:[%s7531_s4 + $0xa8] sm:$0xff]  ;;  %v6474_v14 = vcombine.low %v4962_v30, %v4964_v32  ;;  %v6477_v40 = vcombine.high %v4965_v25, %v4967_v43  ;;  %v4969_v37 = vld [vmem:[%s7531_s4 + $0x120] sm:$0xff] }
0x171c   : > { %4637 = vmatprep.mubr.bf16.mxu1 %v4346_v50  ;;  %4678 = vmatprep.mubr.bf16.mxu0 %v4348_v51  ;;  %v4968_v31 = vld [vmem:[%s7531_s4 + $0xe8] sm:$0xff]  ;;  %v4971_v45 = vld [vmem:[%s7531_s4 + $0x160] sm:$0xff]  ;;  %v6476_v50 = vcombine.low %v4965_v25, %v4967_v43  ;;  %v7261_v25 = vld [vmem:[%s7541_s5 + $0x230] sm:$0xff]  }
0x171d   : > { %4638 = vmatmul.mubr.bf16.vlgmr.msra.gmra.mrb[40].mxu1 %v4345_v46  ;;  %4679 = vmatmul.mubr.bf16.vlgmr.msra.gmra.mrb[36].mxu0 %v4347_v47  ;;  %v6479_v42 = vcombine.high %v4966_v28, %v4968_v31  ;;  %v4970_v46 = vld [vmem:[%s7531_s4 + $0x128] sm:$0xff]  ;;  %v6478_v51 = vcombine.low %v4966_v28, %v4968_v31  ;;  %v7253_v10 = vld [vmem:[%s7541_s5 + $0x220] sm:$0xff]   ;;  %v7262_v43 = vld [vmem:[%s7541_s5 + $0x2b0] sm:$0xff]  }
0x171e   : > { %6722 = vmatpush3.bf16.msra.mxu1 %v7205_v52  ;;  %6744 = vmatpush3.bf16.msra.mxu0 %v7206_v53  ;;  %v4972_v47 = vld [vmem:[%s7531_s4 + $0x168] sm:$0xff]  ;;  %v6481_v52 = vcombine.high %v4969_v37, %v4971_v45  ;;  %v7254_v18 = vld [vmem:[%s7541_s5 + $0x2a0] sm:$0xff]   ;;  %v7263_v28 = vld [vmem:[%s7541_s5 + $0x278] sm:$0xff]  }
0x171f   : > { %4911 = vmatprep.mubr.bf16.mxu1 %v4066_v8  ;;  %4952 = vmatprep.mubr.bf16.mxu0 %v4068_v9  ;;  %v7220_v8 = vld [vmem:[%s7541_s5 + $0xe0] sm:$0xff]   ;;  %v6483_v53 = vcombine.high %v4970_v46, %v4972_v47  ;;  %v7255_v30 = vld [vmem:[%s7541_s5 + $0x268] sm:$0xff]   ;;  %v7264_v31 = vld [vmem:[%s7541_s5 + $0x2f8] sm:$0xff]  }
0x1720   : > { %6723 = vmatprep.subr.bf16.mxu1 %v7207_v15  ;;  %6745 = vmatprep.subr.bf16.mxu0 %v7208_v54  ;;  %v7221_v9 = vld [vmem:[%s7541_s5 + $0x20] sm:$0xff]   ;;  %v7256_v32 = vld [vmem:[%s7541_s5 + $0x2e8] sm:$0xff]  }
0x1721   : > { %v4973_v15 = vld [vmem:[%s7531_s4 + $0x1a0] sm:$0xff] }
0x1722   : > { %6724 = vmatpush3.bf16.msra.mxu1 %v7209_v55  ;;  %6746 = vmatpush3.bf16.msra.mxu0 %v7210_v29  ;;  %v4975_v54 = vld [vmem:[%s7531_s4 + $0x1e0] sm:$0xff]  ;;  %v4974_v55 = vld [vmem:[%s7531_s4 + $0x1a8] sm:$0xff] }
0x1723   : > { %6725 = vmatprep.subr.bf16.mxu1 %v7211_v56  ;;  %6747 = vmatprep.subr.bf16.mxu0 %v7212_v57  ;;  %v4976_v29 = vld [vmem:[%s7531_s4 + $0x1e8] sm:$0xff]  ;;  %v6485_v56 = vcombine.high %v4973_v15, %v4975_v54 }
0x1724   : > { %v6487_v57 = vcombine.high %v4974_v55, %v4976_v29 }
0x1726   : > { %6726 = vmatpush3.bf16.msra.mxu1 %v7213_v61  ;;  %6748 = vmatpush3.bf16.msra.mxu0 %v7214_v48  ;;  %v6484_v61 = vcombine.low %v4973_v15, %v4975_v54  ;;  %v6486_v48 = vcombine.low %v4974_v55, %v4976_v29 }
0x1727   : > { %6727 = vmatprep.subr.bf16.mxu1 %v7215_v39  ;;  %6749 = vmatprep.subr.bf16.mxu0 %v7216_v63  ;;  %v7235_v39 = vld [vmem:[%s7541_s5 + $0x240] sm:$0xff]  }
0x1728   : > { %v7236_v63 = vld [vmem:[%s7541_s5 + $0x2c0] sm:$0xff]  }
0x172a   : > { %6728 = vmatpush3.bf16.msra.mxu1 %v7217_v0  ;;  %6750 = vmatpush3.bf16.msra.mxu0 %v7218_v1  ;;  %v7237_v0 = vld [vmem:[%s7541_s5 + $0x200] sm:$0xff]  }
0x172b   : > { %6729 = vmatprep.subr.bf16.mxu1 %v7219_v2  ;;  %6751 = vmatprep.subr.bf16.mxu0 %v7220_v8  ;;  %v7238_v1 = vld [vmem:[%s7541_s5 + $0x280] sm:$0xff]   ;;  %v7239_v2 = vld [vmem:[%s7541_s5 + $0x248] sm:$0xff]  }
0x172c   : > { %v7240_v8 = vld [vmem:[%s7541_s5 + $0x2c8] sm:$0xff]  }
0x172e   : > { %6730 = vmatpush3.bf16.msra.mxu1 %v7221_v9  ;;  %6752 = vmatpush3.bf16.msra.mxu0 %v7222_v13  ;;  %v7241_v9 = vld [vmem:[%s7541_s5 + $0x208] sm:$0xff]  }
0x172f   : > { %6731 = vmatprep.subr.bf16.mxu1 %v7223_v16  ;;  %6753 = vmatprep.subr.bf16.mxu0 %v7224_v17  ;;  %v7242_v13 = vld [vmem:[%s7541_s5 + $0x288] sm:$0xff]   ;;  %v7243_v16 = vld [vmem:[%s7541_s5 + $0x250] sm:$0xff]  }
0x1730   : > { %v7244_v17 = vld [vmem:[%s7541_s5 + $0x2d0] sm:$0xff]  }
0x1732   : > { %6732 = vmatpush3.bf16.msra.mxu1 %v7225_v6  ;;  %6754 = vmatpush3.bf16.msra.mxu0 %v7226_v11  ;;  %v7245_v6 = vld [vmem:[%s7541_s5 + $0x210] sm:$0xff]  }
0x1733   : > { %6733 = vmatprep.subr.bf16.mxu1 %v7227_v19  ;;  %6755 = vmatprep.subr.bf16.mxu0 %v7228_v4  ;;  %v7246_v11 = vld [vmem:[%s7541_s5 + $0x290] sm:$0xff]   ;;  %v7247_v19 = vld [vmem:[%s7541_s5 + $0x258] sm:$0xff]  }
0x1734   : > { %v7248_v4 = vld [vmem:[%s7541_s5 + $0x2d8] sm:$0xff]  }
0x1736   : > { %6734 = vmatpush3.bf16.msra.mxu1 %v7229_v59  ;;  %6756 = vmatpush3.bf16.msra.mxu0 %v7230_v60  ;;  %v7249_v59 = vld [vmem:[%s7541_s5 + $0x218] sm:$0xff]  }
0x1737   : > { %6735 = vmatprep.subr.bf16.mxu1 %v7231_v7  ;;  %6757 = vmatprep.subr.bf16.mxu0 %v7232_v27  ;;  %v7250_v60 = vld [vmem:[%s7541_s5 + $0x298] sm:$0xff]   ;;  %v7251_v7 = vld [vmem:[%s7541_s5 + $0x260] sm:$0xff]  }
0x1738   : > { %v7252_v27 = vld [vmem:[%s7541_s5 + $0x2e0] sm:$0xff]  }
0x173a   : > { %6736 = vmatpush3.bf16.msra.mxu1 %v7233_v33  ;;  %6758 = vmatpush3.bf16.msra.mxu0 %v7234_v20  ;;  %v7257_v33 = vld [vmem:[%s7541_s5 + $0x228] sm:$0xff]  }
0x173b   : > { %5079 = vmatprep.subr.bf16.mxu1 %v6473_v22  ;;  %5122 = vmatprep.subr.bf16.mxu0 %v6475_v49  ;;  %v7258_v20 = vld [vmem:[%s7541_s5 + $0x2a8] sm:$0xff]   ;;  %v7259_v22 = vld [vmem:[%s7541_s5 + $0x270] sm:$0xff]  }
0x173c   : > { %v7260_v49 = vld [vmem:[%s7541_s5 + $0x2f0] sm:$0xff]  }
0x173d   : > { %4912 = vmatmul.mubr.bf16.vlgmr.msra.gmra.mrb[44].mxu1 %v8147_v3  ;;  %4953 = vmatmul.mubr.bf16.vlgmr.msra.gmra.mrb[40].mxu0 %v8149_v58  ;;  %v6480_v3 = vcombine.low %v4969_v37, %v4971_v45  ;;  %v6482_v58 = vcombine.low %v4970_v46, %v4972_v47  ;;  %v8249_v37 = vld [vmem:[%s7531_s4 + $0x38] sm:$0xff] }
0x173e   : > { %5080 = vmatpush1.bf16.msra.mxu1 %v6472_v35  ;;  %5123 = vmatpush1.bf16.msra.mxu0 %v6474_v14  ;;  %v7265_v35 = vld [vmem:[%s7541_s5 + $0x238] sm:$0xff]  }
0x173f   : > { %5081 = vmatprep.subr.bf16.mxu1 %v6477_v40  ;;  %5124 = vmatprep.subr.bf16.mxu0 %v6479_v42  ;;  %v7266_v14 = vld [vmem:[%s7541_s5 + $0x2b8] sm:$0xff]   ;;  %v8243_v40 = vld [vmem:[%s7531_s4 + $0x30] sm:$0xff] }
0x1740   : > { %5111 = vmatprep.mubr.bf16.mxu1 %v7424_v36  ;;  %5154 = vmatprep.mubr.bf16.mxu0 %v7424_v36  ;;  %v8246_v42 = vld [vmem:[%s7531_s4 + $0x70] sm:$0xff]  ;;  %v8254_v46 = vld [vmem:[%s7531_s4 + $0x78] sm:$0xff] }
0x1741   : > { %v6523_v45 = vcombine.high %v8243_v40, %v8246_v42  ;;  %v6522_v47 = vcombine.low %v8243_v40, %v8246_v42 }
0x1742   : > { %5082 = vmatpush1.bf16.msra.mxu1 %v6476_v50  ;;  %5125 = vmatpush1.bf16.msra.mxu0 %v6478_v51  ;;  %v6524_v50 = vcombine.low %v8249_v37, %v8254_v46  ;;  %v6525_v51 = vcombine.high %v8249_v37, %v8254_v46 }
0x1743   : > { %5083 = vmatprep.subr.bf16.mxu1 %v6481_v52  ;;  %5126 = vmatprep.subr.bf16.mxu0 %v6483_v53 }
0x1746   : > { %5084 = vmatpush1.bf16.msra.mxu1 %v6480_v3  ;;  %5127 = vmatpush1.bf16.msra.mxu0 %v6482_v58 }
0x1747   : > { %5085 = vmatprep.subr.bf16.mxu1 %v6485_v56  ;;  %5128 = vmatprep.subr.bf16.mxu0 %v6487_v57 }
0x174a   : > { %5086 = vmatpush1.bf16.msra.mxu1 %v6484_v61  ;;  %5129 = vmatpush1.bf16.msra.mxu0 %v6486_v48 }
0x174b   : > { %6765 = vmatprep.subr.bf16.mxu1 %v7235_v39  ;;  %6787 = vmatprep.subr.bf16.mxu0 %v7236_v63 }
0x174d   : > { %6488 = vmatmul.mubr.msk.bf16.vlgmr.msra.gmra.mrb[48].mxu1 %vm725_vm6, %v8088_v44  ;;  %6489 = vmatmul.mubr.msk.bf16.vlgmr.msra.gmra.mrb[44].mxu0 %vm725_vm6, %v8088_v44 }
0x174e   : > { %6766 = vmatpush3.bf16.msra.mxu1 %v7237_v0  ;;  %6788 = vmatpush3.bf16.msra.mxu0 %v7238_v1 }
0x174f   : > { %6767 = vmatprep.subr.bf16.mxu1 %v7239_v2  ;;  %6789 = vmatprep.subr.bf16.mxu0 %v7240_v8 }
0x1752   : > { %6768 = vmatpush3.bf16.msra.mxu1 %v7241_v9  ;;  %6790 = vmatpush3.bf16.msra.mxu0 %v7242_v13 }
0x1753   : > { %6769 = vmatprep.subr.bf16.mxu1 %v7243_v16  ;;  %6791 = vmatprep.subr.bf16.mxu0 %v7244_v17 }
0x1756   : > { %6770 = vmatpush3.bf16.msra.mxu1 %v7245_v6  ;;  %6792 = vmatpush3.bf16.msra.mxu0 %v7246_v11 }
0x1757   : > { %6771 = vmatprep.subr.bf16.mxu1 %v7247_v19  ;;  %6793 = vmatprep.subr.bf16.mxu0 %v7248_v4 }
0x175a   : > { %6772 = vmatpush3.bf16.msra.mxu1 %v7249_v59  ;;  %6794 = vmatpush3.bf16.msra.mxu0 %v7250_v60 }
0x175b   : > { %6773 = vmatprep.subr.bf16.mxu1 %v7251_v7  ;;  %6795 = vmatprep.subr.bf16.mxu0 %v7252_v27 }
0x175e   : > { %6774 = vmatpush3.bf16.msra.mxu1 %v7253_v10  ;;  %6796 = vmatpush3.bf16.msra.mxu0 %v7254_v18  ;;  %v4977_v10 = vld [vmem:[%s7536_s29 + $0x8] sm:$0xf] }
0x175f   : > { %6775 = vmatprep.subr.bf16.mxu1 %v7255_v30  ;;  %6797 = vmatprep.subr.bf16.mxu0 %v7256_v32  ;;  %v4982_v18 = vrot.slane %v4977_v10, %v7658_v24  ;;  %v4990_v30 = vrot.slane %v4977_v10, %v7639_v12  ;;  %v4986_v32 = vrot.slane %v4977_v10, %v7590_v41 }
0x1762   : > { %6776 = vmatpush3.bf16.msra.mxu1 %v7257_v33  ;;  %6798 = vmatpush3.bf16.msra.mxu0 %v7258_v20  ;;  %v4994_v33 = vrot.slane %v4977_v10, %v7850_v5 }
0x1763   : > { %6777 = vmatprep.subr.bf16.mxu1 %v7259_v22  ;;  %6799 = vmatprep.subr.bf16.mxu0 %v7260_v49 }
0x1766   : > { %6778 = vmatpush3.bf16.msra.mxu1 %v7261_v25  ;;  %6800 = vmatpush3.bf16.msra.mxu0 %v7262_v43 }
0x1767   : > { %6779 = vmatprep.subr.bf16.mxu1 %v7263_v28  ;;  %6801 = vmatprep.subr.bf16.mxu0 %v7264_v31 }
0x176a   : > { %6780 = vmatpush3.bf16.msra.mxu1 %v7265_v35  ;;  %6802 = vmatpush3.bf16.msra.mxu0 %v7266_v14 }
0x176b   : > { %5635 = vmatprep.subr.bf16.mxu1 %v6523_v45  ;;  %5678 = vmatprep.subr.bf16.mxu0 %v6525_v51 }
0x17f0   : > { %v6693_v52 = vpop.f32.mrb[40].mxu1  ;;  %v6715_v53 = vpop.f32.mrb[36].mxu0 }
0x17f1   : > { %v6694_v15 = vpop.f32.mrb[41].mxu1  ;;  %v6716_v54 = vpop.f32.mrb[37].mxu0 }
0x17f2   : > { %v6695_v55 = vadd.f32 %v6694_v15, %v6693_v52  ;;  %v6717_v29 = vadd.f32 %v6716_v54, %v6715_v53  ;;  %v6696_v3 = vpop.f32.mrb[42].mxu1  ;;  %v6718_v58 = vpop.f32.mrb[38].mxu0 }
0x17f3   : > { %v6697_v56 = vpop.f32.mrb[43].mxu1  ;;  %v6719_v57 = vpop.f32.mrb[39].mxu0 }
0x17f4   : > { %v4681_v61 = vadd.f32 %v6717_v29, %v6695_v55  ;;  %v6698_v48 = vadd.f32 %v6697_v56, %v6696_v3  ;;  %v6720_v39 = vadd.f32 %v6719_v57, %v6718_v58  ;;  %v5521_v57 = vld [vmem:[%s7531_s4 + $0xb0] sm:$0xff] }
0x17f6   : > { %v4684_v63 = vadd.f32 %v6720_v39, %v6698_v48 }
0x1810   : > { %v6737_v0 = vpop.f32.mrb[44].mxu1  ;;  %v6759_v1 = vpop.f32.mrb[40].mxu0 }
0x1811   : > { %v6738_v2 = vpop.f32.mrb[45].mxu1  ;;  %v6760_v8 = vpop.f32.mrb[41].mxu0 }
0x1812   : > { %v6739_v9 = vadd.f32 %v6738_v2, %v6737_v0  ;;  %v6761_v13 = vadd.f32 %v6760_v8, %v6759_v1  ;;  %v6740_v16 = vpop.f32.mrb[46].mxu1  ;;  %v6762_v17 = vpop.f32.mrb[42].mxu0  ;;  %v5522_v1 = vld [vmem:[%s7531_s4 + $0xb8] sm:$0xff] }
0x1813   : > { %v6741_v6 = vpop.f32.mrb[47].mxu1  ;;  %v6763_v11 = vpop.f32.mrb[43].mxu0  ;;  %v5524_v2 = vld [vmem:[%s7531_s4 + $0xf8] sm:$0xff] }
0x1814   : > { %v4914_v19 = vadd.f32 %v6739_v9, %v4681_v61  ;;  %v6742_v4 = vadd.f32 %v6741_v6, %v6740_v16  ;;  %v6764_v59 = vadd.f32 %v6763_v11, %v6762_v17  ;;  %v5523_v61 = vld [vmem:[%s7531_s4 + $0xf0] sm:$0xff]  ;;  %v6529_v6 = vcombine.high %v5522_v1, %v5524_v2 }
0x1815   : > { %v6527_v17 = vcombine.high %v5521_v57, %v5523_v61  ;;  %v5525_v11 = vld [vmem:[%s7531_s4 + $0x130] sm:$0xff]  ;;  %v6528_v10 = vcombine.low %v5522_v1, %v5524_v2 }
0x1816   : > { %v8262_v60 = vadd.f32 %v6761_v13, %v4914_v19  ;;  %v4917_v7 = vadd.f32 %v6742_v4, %v4684_v63  ;;  %v5527_v19 = vld [vmem:[%s7531_s4 + $0x170] sm:$0xff]  ;;  %v5526_v4 = vld [vmem:[%s7531_s4 + $0x138] sm:$0xff] }
0x1817   : > { %v6530_v40 = vcombine.low %v5525_v11, %v5527_v19  ;;  %v7293_v1 = vld [vmem:[%s7541_s5 + $0x330] sm:$0xff]  }
0x1818   : > { %v8264_v27 = vadd.f32 %v6764_v59, %v4917_v7  ;;  %v5528_v59 = vld [vmem:[%s7531_s4 + $0x178] sm:$0xff]  ;;  %v6526_v7 = vcombine.low %v5521_v57, %v5523_v61  ;;  %v7287_v57 = vld [vmem:[%s7541_s5 + $0x368] sm:$0xff]   ;;  %v7294_v2 = vld [vmem:[%s7541_s5 + $0x3b0] sm:$0xff]  }
0x1819   : > { %v6532_v42 = vcombine.low %v5526_v4, %v5528_v59  ;;  %v7288_v61 = vld [vmem:[%s7541_s5 + $0x3e8] sm:$0xff]  }
0x1820   : > { %v5113_v20 = vpop.f32.mrb[48].mxu1  ;;  %v5156_v22 = vpop.f32.mrb[44].mxu0 }
0x1821   : > { %v5114_v49 = vadd.f32 %v5113_v20, %v4982_v18  ;;  %v5157_v25 = vadd.f32 %v5156_v22, %v4990_v30  ;;  %v5115_v43 = vpop.f32.mrb[49].mxu1  ;;  %v5158_v28 = vpop.f32.mrb[45].mxu0  ;;  %v5530_v20 = vld [vmem:[%s7531_s4 + $0x1b8] sm:$0xff] }
0x1822   : > { %v5116_v31 = vadd.f32 %v5115_v43, %v4986_v32  ;;  %v5159_v35 = vadd.f32 %v5158_v28, %v4994_v33  ;;  %v5117_v14 = vpop.f32.mrb[50].mxu1  ;;  %v5160_v45 = vpop.f32.mrb[46].mxu0  ;;  %v5532_v22 = vld [vmem:[%s7531_s4 + $0x1f8] sm:$0xff]  ;;  %v7270_v43 = vld [vmem:[%s7541_s5 + $0x380] sm:$0xff]   ;;  %v7271_v28 = vld [vmem:[%s7541_s5 + $0x348] sm:$0xff]  }
0x1823   : > { %v5118_v51 = vadd.f32 %v5117_v14, %v4982_v18  ;;  %v5161_v52 = vadd.f32 %v5160_v45, %v4990_v30  ;;  %v5119_v53 = vpop.f32.mrb[51].mxu1  ;;  %v5162_v15 = vpop.f32.mrb[47].mxu0  ;;  %v5165_v29 = vmax.f32 %v5114_v49, 0.0  ;;  %v5167_v3 = vmax.f32 %v5157_v25, 0.0  ;;  %v7268_v49 = vld [vmem:[%s7541_s5 + $0x3c0] sm:$0xff]   ;;  %v7274_v14 = vld [vmem:[%s7541_s5 + $0x388] sm:$0xff]  }
0x1824   : > { %v5120_v54 = vadd.f32 %v5119_v53, %v4986_v32  ;;  %v5163_v55 = vadd.f32 %v5162_v15, %v4994_v33  ;;  %v5166_v48 = vmax.f32 %v5116_v31, 0.0  ;;  %v5168_v39 = vmax.f32 %v5159_v35, 0.0  ;;  %v5529_v32 = vld [vmem:[%s7531_s4 + $0x1b0] sm:$0xff]  ;;  %v7269_v25 = vld [vmem:[%s7541_s5 + $0x300] sm:$0xff]   ;;  %v7272_v31 = vld [vmem:[%s7541_s5 + $0x3c8] sm:$0xff]  }
0x1825   : > { %v5169_v58 = vmax.f32 %v5118_v51, 0.0  ;;  %v5171_v56 = vmax.f32 %v5161_v52, 0.0  ;;  %v6531_v18 = vcombine.high %v5525_v11, %v5527_v19  ;;  %v6533_v30 = vcombine.high %v5526_v4, %v5528_v59  ;;  %v5531_v33 = vld [vmem:[%s7531_s4 + $0x1f0] sm:$0xff]  ;;  %v7273_v35 = vld [vmem:[%s7541_s5 + $0x308] sm:$0xff]   ;;  %v7280_v15 = vld [vmem:[%s7541_s5 + $0x3d8] sm:$0xff]  }
0x1826   : > { %v5170_v63 = vmax.f32 %v5120_v54, 0.0  ;;  %v5172_v0 = vmax.f32 %v5163_v55, 0.0  ;;  %v6535_v37 = vcombine.high %v5529_v32, %v5531_v33  ;;  %v6537_v46 = vcombine.high %v5530_v20, %v5532_v22  ;;  %v7275_v45 = vld [vmem:[%s7541_s5 + $0x350] sm:$0xff]   ;;  %v7281_v54 = vld [vmem:[%s7541_s5 + $0x318] sm:$0xff]  }
0x1827   : > { %v5173_v8 = vpack.c.bf16 %v5169_v58, %v5165_v29  ;;  %v5175_v9 = vpack.c.bf16 %v5171_v56, %v5167_v3  ;;  %v7276_v51 = vld [vmem:[%s7541_s5 + $0x3d0] sm:$0xff]   ;;  %v7282_v55 = vld [vmem:[%s7541_s5 + $0x398] sm:$0xff]   ;;  %v7283_v29 = vld [vmem:[%s7541_s5 + $0x360] sm:$0xff]  }
0x1828   : > { %v5174_v13 = vpack.c.bf16 %v5170_v63, %v5166_v48  ;;  %v5176_v16 = vpack.c.bf16 %v5172_v0, %v5168_v39  ;;  %v7277_v52 = vld [vmem:[%s7541_s5 + $0x310] sm:$0xff]   ;;  %v7284_v3 = vld [vmem:[%s7541_s5 + $0x3e0] sm:$0xff]   ;;  %v7289_v48 = vld [vmem:[%s7541_s5 + $0x328] sm:$0xff]  }
0x1829   : > { %v7278_v53 = vld [vmem:[%s7541_s5 + $0x390] sm:$0xff]   ;;  %v7285_v58 = vld [vmem:[%s7541_s5 + $0x320] sm:$0xff]   ;;  %v7290_v39 = vld [vmem:[%s7541_s5 + $0x3a8] sm:$0xff]  }
0x182a   : > { %5465 = vmatprep.mubr.bf16.mxu1 %v5174_v13  ;;  %5506 = vmatprep.mubr.bf16.mxu0 %v5176_v16  ;;  %v7286_v56 = vld [vmem:[%s7541_s5 + $0x3a0] sm:$0xff]   ;;  %v7291_v63 = vld [vmem:[%s7541_s5 + $0x370] sm:$0xff]   ;;  %v7297_v13 = vld [vmem:[%s7541_s5 + $0x338] sm:$0xff]  }
0x182b   : > { %5466 = vmatmul.mubr.bf16.vlgmr.msra.gmra.mrb[52].mxu1 %v5173_v8  ;;  %5507 = vmatmul.mubr.bf16.vlgmr.msra.gmra.mrb[48].mxu0 %v5175_v9  ;;  %v7292_v0 = vld [vmem:[%s7541_s5 + $0x3f0] sm:$0xff]   ;;  %v7295_v8 = vld [vmem:[%s7541_s5 + $0x378] sm:$0xff]  }
0x182c   : > { %5636 = vmatpush1.bf16.msra.mxu1 %v6522_v47  ;;  %5679 = vmatpush1.bf16.msra.mxu0 %v6524_v50  ;;  %v6534_v47 = vcombine.low %v5529_v32, %v5531_v33  ;;  %v6536_v50 = vcombine.low %v5530_v20, %v5532_v22  ;;  %v7296_v9 = vld [vmem:[%s7541_s5 + $0x3f8] sm:$0xff]  }
0x182d   : > { %5637 = vmatprep.subr.bf16.mxu1 %v6527_v17  ;;  %5680 = vmatprep.subr.bf16.mxu0 %v6529_v6  ;;  %v7298_v16 = vld [vmem:[%s7541_s5 + $0x3b8] sm:$0xff]  }
0x182e   : > { %5667 = vmatprep.mubr.bf16.mxu1 %v7424_v36  ;;  %5710 = vmatprep.mubr.bf16.mxu0 %v7424_v36  ;;  %v7267_v36 = vld [vmem:[%s7541_s5 + $0x340] sm:$0xff]  }
0x1830   : > { %5638 = vmatpush1.bf16.msra.mxu1 %v6526_v7  ;;  %5681 = vmatpush1.bf16.msra.mxu0 %v6528_v10 }
0x1831   : > { %5639 = vmatprep.subr.bf16.mxu1 %v6531_v18  ;;  %5682 = vmatprep.subr.bf16.mxu0 %v6533_v30 }
0x1834   : > { %5640 = vmatpush1.bf16.msra.mxu1 %v6530_v40  ;;  %5683 = vmatpush1.bf16.msra.mxu0 %v6532_v42 }
0x1835   : > { %5641 = vmatprep.subr.bf16.mxu1 %v6535_v37  ;;  %5684 = vmatprep.subr.bf16.mxu0 %v6537_v46  ;;  %v5533_v37 = vld [vmem:[%s7536_s29 + $0xc] sm:$0xf] }
0x1836   : > { %v5538_v46 = vrot.slane %v5533_v37, %v7658_v24 }
0x1838   : > { %5642 = vmatpush1.bf16.msra.mxu1 %v6534_v47  ;;  %5685 = vmatpush1.bf16.msra.mxu0 %v6536_v50  ;;  %v5546_v47 = vrot.slane %v5533_v37, %v7639_v12  ;;  %v5542_v50 = vrot.slane %v5533_v37, %v7590_v41 }
0x1839   : > { %6809 = vmatprep.subr.bf16.mxu1 %v7267_v36  ;;  %6831 = vmatprep.subr.bf16.mxu0 %v7268_v49  ;;  %v5550_v36 = vrot.slane %v5533_v37, %v7850_v5 }
0x183b   : > { %6538 = vmatmul.mubr.msk.bf16.vlgmr.msra.gmra.mrb[56].mxu1 %vm725_vm6, %v8088_v44  ;;  %6539 = vmatmul.mubr.msk.bf16.vlgmr.msra.gmra.mrb[52].mxu0 %vm725_vm6, %v8088_v44  ;;  %v7279_v44 = vld [vmem:[%s7541_s5 + $0x358] sm:$0xff]  }
0x183c   : > { %6810 = vmatpush3.bf16.msra.mxu1 %v7269_v25  ;;  %6832 = vmatpush3.bf16.msra.mxu0 %v7270_v43 }
0x183d   : > { %6811 = vmatprep.subr.bf16.mxu1 %v7271_v28  ;;  %6833 = vmatprep.subr.bf16.mxu0 %v7272_v31 }
0x1840   : > { %6812 = vmatpush3.bf16.msra.mxu1 %v7273_v35  ;;  %6834 = vmatpush3.bf16.msra.mxu0 %v7274_v14 }
0x1841   : > { %6813 = vmatprep.subr.bf16.mxu1 %v7275_v45  ;;  %6835 = vmatprep.subr.bf16.mxu0 %v7276_v51 }
0x1844   : > { %6814 = vmatpush3.bf16.msra.mxu1 %v7277_v52  ;;  %6836 = vmatpush3.bf16.msra.mxu0 %v7278_v53 }
0x1845   : > { %6815 = vmatprep.subr.bf16.mxu1 %v7279_v44  ;;  %6837 = vmatprep.subr.bf16.mxu0 %v7280_v15 }
0x1848   : > { %6816 = vmatpush3.bf16.msra.mxu1 %v7281_v54  ;;  %6838 = vmatpush3.bf16.msra.mxu0 %v7282_v55 }
0x1849   : > { %6817 = vmatprep.subr.bf16.mxu1 %v7283_v29  ;;  %6839 = vmatprep.subr.bf16.mxu0 %v7284_v3 }
0x184c   : > { %6818 = vmatpush3.bf16.msra.mxu1 %v7285_v58  ;;  %6840 = vmatpush3.bf16.msra.mxu0 %v7286_v56 }
0x184d   : > { %6819 = vmatprep.subr.bf16.mxu1 %v7287_v57  ;;  %6841 = vmatprep.subr.bf16.mxu0 %v7288_v61 }
0x1850   : > { %6820 = vmatpush3.bf16.msra.mxu1 %v7289_v48  ;;  %6842 = vmatpush3.bf16.msra.mxu0 %v7290_v39 }
0x1851   : > { %6821 = vmatprep.subr.bf16.mxu1 %v7291_v63  ;;  %6843 = vmatprep.subr.bf16.mxu0 %v7292_v0 }
0x1854   : > { %6822 = vmatpush3.bf16.msra.mxu1 %v7293_v1  ;;  %6844 = vmatpush3.bf16.msra.mxu0 %v7294_v2 }
0x1855   : > { %6823 = vmatprep.subr.bf16.mxu1 %v7295_v8  ;;  %6845 = vmatprep.subr.bf16.mxu0 %v7296_v9 }
0x1858   : > { %6824 = vmatpush3.bf16.msra.mxu1 %v7297_v13  ;;  %6846 = vmatpush3.bf16.msra.mxu0 %v7298_v16 }
0x18fe   : > { %v6781_v17 = vpop.f32.mrb[52].mxu1  ;;  %v6803_v6 = vpop.f32.mrb[48].mxu0 }
0x18ff   : > { %v6782_v11 = vpop.f32.mrb[53].mxu1  ;;  %v6804_v19 = vpop.f32.mrb[49].mxu0 }
0x1900   : > { %v6783_v4 = vadd.f32 %v6782_v11, %v6781_v17  ;;  %v6805_v59 = vadd.f32 %v6804_v19, %v6803_v6  ;;  %v6784_v7 = vpop.f32.mrb[54].mxu1  ;;  %v6806_v10 = vpop.f32.mrb[50].mxu0 }
0x1901   : > { %v6785_v18 = vpop.f32.mrb[55].mxu1  ;;  %v6807_v30 = vpop.f32.mrb[51].mxu0 }
0x1902   : > { %v5509_v32 = vadd.f32 %v6805_v59, %v6783_v4  ;;  %v6786_v33 = vadd.f32 %v6785_v18, %v6784_v7  ;;  %v6808_v20 = vadd.f32 %v6807_v30, %v6806_v10  ;;  %v7382_v4 = vld [vmem:[%s7526_s3 + $0x8] sm:$0xff] }
0x1903   : > { %v6076_v59 = vrot.slane %v7382_v4, %v904_v26 }
0x1904   : > { %v5515_v22 = vadd.f32 %v5509_v32, %v8262_v60  ;;  %v5512_v40 = vadd.f32 %v6808_v20, %v6786_v33 }
0x1906   : > { %v5516_v42 = vadd.f32 %v5512_v40, %v8264_v27 }
0x190e   : > { %v5669_v49 = vpop.f32.mrb[56].mxu1  ;;  %v5712_v25 = vpop.f32.mrb[52].mxu0 }
0x190f   : > { %v5670_v43 = vadd.f32 %v5669_v49, %v5538_v46  ;;  %v5713_v28 = vadd.f32 %v5712_v25, %v5546_v47  ;;  %v5671_v31 = vpop.f32.mrb[57].mxu1  ;;  %v5714_v35 = vpop.f32.mrb[53].mxu0 }
0x1910   : > { %v5672_v14 = vadd.f32 %v5671_v31, %v5542_v50  ;;  %v5715_v60 = vadd.f32 %v5714_v35, %v5550_v36  ;;  %v5673_v45 = vpop.f32.mrb[58].mxu1  ;;  %v5716_v51 = vpop.f32.mrb[54].mxu0 }
0x1911   : > { %v5674_v27 = vadd.f32 %v5673_v45, %v5538_v46  ;;  %v5717_v52 = vadd.f32 %v5716_v51, %v5546_v47  ;;  %v5675_v53 = vpop.f32.mrb[59].mxu1  ;;  %v5718_v24 = vpop.f32.mrb[55].mxu0  ;;  %v5721_v15 = vmax.f32 %v5670_v43, 0.0  ;;  %v5723_v41 = vmax.f32 %v5713_v28, 0.0 }
0x1912   : > { %v5676_v44 = vadd.f32 %v5675_v53, %v5542_v50  ;;  %v5719_v12 = vadd.f32 %v5718_v24, %v5550_v36  ;;  %v5722_v55 = vmax.f32 %v5672_v14, 0.0  ;;  %v5724_v29 = vmax.f32 %v5715_v60, 0.0 }
0x1913   : > { %v5725_v54 = vmax.f32 %v5674_v27, 0.0  ;;  %v5727_v5 = vmax.f32 %v5717_v52, 0.0  ;;  %v6110_v60 = vrot.slane %v7382_v4, %v2346_v62  ;;  %v6116_v51 = vrot.slane %v7382_v4, %v898_v34 }
0x1914   : > { %v5726_v3 = vmax.f32 %v5676_v44, 0.0  ;;  %v5728_v58 = vmax.f32 %v5719_v12, 0.0 }
0x1915   : > { %v5729_v56 = vpack.c.bf16 %v5725_v54, %v5721_v15  ;;  %v5731_v57 = vpack.c.bf16 %v5727_v5, %v5723_v41 }
0x1916   : > { %v5730_v61 = vpack.c.bf16 %v5726_v3, %v5722_v55  ;;  %v5732_v48 = vpack.c.bf16 %v5728_v58, %v5724_v29 }
0x1918   : > { %6021 = vmatprep.mubr.bf16.mxu1 %v5730_v61  ;;  %6062 = vmatprep.mubr.bf16.mxu0 %v5732_v48 }
0x1919   : > { %6022 = vmatmul.mubr.bf16.vlgmr.msra.gmra.mrb[60].mxu1 %v5729_v56  ;;  %6063 = vmatmul.mubr.bf16.vlgmr.msra.gmra.mrb[56].mxu0 %v5731_v57 }
0x19ec   : > { %v6825_v39 = vpop.f32.mrb[60].mxu1  ;;  %v6847_v63 = vpop.f32.mrb[56].mxu0 }
0x19ed   : > { %v6826_v0 = vpop.f32.mrb[61].mxu1  ;;  %v6848_v1 = vpop.f32.mrb[57].mxu0 }
0x19ee   : > { %v6827_v2 = vadd.f32 %v6826_v0, %v6825_v39  ;;  %v6849_v8 = vadd.f32 %v6848_v1, %v6847_v63  ;;  %v6828_v9 = vpop.f32.mrb[62].mxu1  ;;  %v6850_v13 = vpop.f32.mrb[58].mxu0 }
0x19ef   : > { %v6829_v16 = vpop.f32.mrb[63].mxu1  ;;  %v6851_v17 = vpop.f32.mrb[59].mxu0 }
0x19f0   : > { %v6065_v6 = vadd.f32 %v6849_v8, %v6827_v2  ;;  %v6830_v11 = vadd.f32 %v6829_v16, %v6828_v9  ;;  %v6852_v19 = vadd.f32 %v6851_v17, %v6850_v13 }
0x19f2   : > { %v6071_v7 = vadd.f32 %v6065_v6, %v5515_v22  ;;  %v6068_v10 = vadd.f32 %v6852_v19, %v6830_v11 }
0x19f4   : > { %v6072_v18 = vadd.f32 %v6068_v10, %v5516_v42  ;;  %v6077_v30 = vadd.f32 %v6076_v59, %v6071_v7 }
0x19f6   : > { %v6079_v32 = vadd.f32 %v6077_v30, %v8082_v21  ;;  %v6078_v33 = vadd.f32 %v6076_v59, %v6072_v18 }
0x19f8   : > { %v6081_v20 = vsel %vm725_vm6, %v6079_v32, 0.0  ;;  %v6080_v40 = vadd.f32 %v6078_v33, %v8084_v23 }
0x19f9   : > { %6082 = vadd.xlane.f32.xlu0 %v6081_v20 }
0x19fa   : > { %v6084_v37 = vsel %vm725_vm6, %v6080_v40, 0.0 }
0x19fd   : > { %6085 = vadd.xlane.f32.xlu0 %v6084_v37 }
0x1a86   : > { %v6083_v46 = vpop.xlane.xlu0 %6082 }
0x1a87   : > { %v6087_v47 = vmul.f32 0.015625, %v6083_v46 }
0x1a89   : > { %v6089_v50 = vsub.f32 %v6079_v32, %v6087_v47 }
0x1a8a   : > { %v6086_v36 = vpop.xlane.xlu0 %6085 }
0x1a8b   : > { %v6088_v26 = vmul.f32 0.015625, %v6086_v36  ;;  %v6091_v22 = vmul.f32 %v6089_v50, %v6089_v50 }
0x1a8d   : > { %v6090_v49 = vsub.f32 %v6080_v40, %v6088_v26  ;;  %v6093_v42 = vsel %vm725_vm6, %v6091_v22, 0.0 }
0x1a8e   : > { %6094 = vadd.xlane.f32.xlu1 %v6093_v42 }
0x1a8f   : > { %v6092_v21 = vmul.f32 %v6090_v49, %v6090_v49 }
0x1a91   : > { %v6096_v25 = vsel %vm725_vm6, %v6092_v21, 0.0 }
0x1a92   : > { %6097 = vadd.xlane.f32.xlu0 %v6096_v25 }
0x1b1b   : > { %v6095_v43 = vpop.xlane.xlu1 %6094 }
0x1b1c   : > { %v6099_v23 = vmul.f32 0.015625, %v6095_v43 }
0x1b1e   : > { %v6101_v28 = vadd.f32 1e-05, %v6099_v23 }
0x1b1f   : > { %v6098_v31 = vpop.xlane.xlu0 %6097 }
0x1b20   : > { %7371 = vrsqrt.f32 %v6101_v28  ;;  %v6100_v35 = vmul.f32 0.015625, %v6098_v31 }
0x1b22   : > { %v6102_v14 = vadd.f32 1e-05, %v6100_v35 }
0x1b24   : > { %7373 = vrsqrt.f32 %v6102_v14 }
0x1b2a   : > { %v7372_v45 = vpop.eup %7371 }
0x1b2b   : > { %v6105_v27 = vmul.f32 %v7372_v45, %v6089_v50 }
0x1b2d   : > { %v6111_v52 = vmul.f32 %v6110_v60, %v6105_v27 }
0x1b2e   : > { %v7374_v53 = vpop.eup %7373 }
0x1b2f   : > { %v6117_v24 = vadd.f32 %v6116_v51, %v6111_v52  ;;  %v6106_v44 = vmul.f32 %v7374_v53, %v6090_v49  ;;  %6124 = sbr.rel (%p6572_p5) target bundleno = 6966 (0x1b36), region = 72 }
0x1b31   : > { %6119 = vst.msk [vmem:[#allocation2] sm:$0xff] %vm725_vm6, %v6117_v24  ;;  %v6112_v12 = vmul.f32 %v6110_v60, %v6106_v44  ;;  %6125 = vst.msk [vmem:[#allocation4] sm:$0xff] (!%p6572_p5), %vm725_vm6, %v6117_v24 }
0x1b33   : > { %v6118_v15 = vadd.f32 %v6116_v51, %v6112_v12 }
0x1b35   : > { %6120 = vst.msk [vmem:[#allocation2 + $0x8] sm:$0xff] %vm725_vm6, %v6118_v15  ;;  %6126 = vst.msk [vmem:[#allocation4 + $0x8] sm:$0xff] (!%p6572_p5), %vm725_vm6, %v6118_v15 }
0x1b36 PF: > { %p7109_p6 = scmp.eq.s32.totalorder %s7497_s18, 1  ;;  %s7428_s3 = smov [#allocation4]  }
0x1b37   : > { %s6133_s4 = sshll.u32 %s7428_s3, 4  ;;  %s6134_s4 = int_to_ptr.vmem [resolvable:$true] %s6133_s4 }
0x1b38   : > { %s7383_s5 = scalar_lea.vmem %s6134_s4, 256  ;;  %p7390_p10 = scmp.lt.s32.totalorder %s6134_s4, %s6134_s4 }
0x1b39   : > { %p7384_p7 = scmp.ne.s32.totalorder %s6134_s4, %s7383_s5  ;;  %p7391_p11 = scmp.lt.s32.totalorder %s7383_s5, %s7383_s5 }
0x1b3b   : > { %p7385_p8 = pnand %p7384_p7, %p7109_p6  ;;  %p7392_p12 = por %p7391_p11, %p7390_p10 }
0x1b3d   : > { %p7386_p9 = pneg %p7385_p8 }
0x1b3f   : > { %p7393_p13 = pnand %p7392_p12, %p7386_p9 }
0x1b41   : > { %7396 = shalt.err (!%p7393_p13)
}
0x1b42   : > { %s7397_s30 = scalar_lea.hbm %s8389_s11, 256 }
0x1b43   : > { %p7398_p0 = scmp.ne.s32.totalorder %s8389_s11, %s7397_s30  ;;  %p7403_p3 = scmp.lt.u32.totalorder %s7397_s30, %s8389_s11 }
0x1b45   : > { %p7399_p1 = pnand %p7398_p0, %p7109_p6 }
0x1b47   : > { %p7400_p2 = pneg %p7399_p1 }
0x1b49   : > { %p7405_p4 = pnand %p7403_p3, %p7400_p2 }
0x1b4b   : > { %7408 = shalt.err (!%p7405_p4)
}
0x1b4c   : > { %s7429_s25 = smov 128   ;;  %s7430_s19 = smov 8  }
0x1b4d   : > { %7106 = dma.vmem_to_hbm [thread:$0]  (%p7109_p6), %s6134_s4, 256, %s8389_s11, [#allocation5], %s7429_s25, %s7429_s25, %s7430_s19  }
0x1b4e   : > { %7414 = dma.done.wait (%p7109_p6), [#allocation5], 256  }
0x1b4f   : > { %7416 = vsyncadd (%p7109_p6), [#allocation5], 4294967040 }
0x1b50 PF: > { %s22_s17 = sadd.s32 1, %s7419_s17  }
0x1b51   : > { %p19_p5 = scmp.ge.s32.totalorder %s22_s17, 4  }
0x1b53   :  { %21 = sbr.rel (!%p19_p5) target bundleno = 5 (0x5), region = 120 }
0x1b5a   :  { %6149 = vsyncpa [#allocation5], 1 }
0x1b5b   :  { %6151 = vsyncpa [#allocation5 + $0x1], 1 }

</bundles_post_ra>
